<compile_context>
chip_gen: v7x
topology: tpu7x:2x2x1
jax: 0.10.0
libtpu: 0.0.40
codegen_flags: <defaults>
</compile_context>

<pallas_src>
import numpy as np
import jax
import jax.numpy as jnp
from jax.experimental import pallas as pl
from jax.experimental.pallas import tpu as pltpu


def _next_pow2(n):
    return 1 << (n - 1).bit_length()


def _round_up(n, m):
    return ((n + m - 1) // m) * m


def _make_chrombpnet_kernel(num_layers, kp_pad, win_start, win_len, crop_off,
                            outlen_pad):
    n_dil = num_layers - 1
    n_steps = kp_pad.bit_length() - 1          # kp_pad is a power of two

    def kernel(x_ref, w0_ref, b0_ref, *rest):
        w_dil = rest[:n_dil]
        b_dil = rest[n_dil:2 * n_dil]
        wp_ref, wd_ref, bp_ref, bd_ref = rest[2 * n_dil:2 * n_dil + 4]
        prof_ref, count_ref = rest[2 * n_dil + 4:]

        # ---- first conv: one im2col MXU matmul (+ bias + ReLU) -----------
        # contraction dim zero-padded to 128 on the host (lane-aligned).
        x = jnp.maximum(
            jnp.dot(x_ref[0], w0_ref[...], preferred_element_type=jnp.float32)
            + b0_ref[...], 0.0)                                # (L0, F) f32

        # ---- dilated residual conv stack (kernel=3, dilation=2**i) -------
        for i in range(1, num_layers):
            d = 2 ** i
            L = x.shape[0]
            L_out = L - 2 * d
            xb = x.astype(jnp.bfloat16)    # ONE cast per layer; taps slice it
            w = w_dil[i - 1]
            z = jnp.dot(xb[0:L_out, :], w[0],
                        preferred_element_type=jnp.float32)
            z = z + jnp.dot(xb[d:d + L_out, :], w[1],
                            preferred_element_type=jnp.float32)
            z = z + jnp.dot(xb[2 * d:2 * d + L_out, :], w[2],
                            preferred_element_type=jnp.float32)
            # crop-and-add residual (crop == dilation), kept in f32
            x = x[d:d + L_out, :] + jnp.maximum(z + b_dil[i - 1][...], 0.0)

        # ---- count head: global average pool + dense(F -> 1) -------------
        gap = jnp.mean(x, axis=0, keepdims=True)               # (1, F) f32
        count_ref[0] = (jnp.sum(gap * wd_ref[...], axis=1, keepdims=True)
                        + bd_ref[0, 0])                        # (1, 1)

        # ---- profile head: one MXU matmul + diagonal-band reduction ------
        # Only the sublane-aligned row window that contributes to the cropped
        # output is used: rows [win_start, win_start + win_len) of x.
        xw = x[win_start:win_start + win_len, :].astype(jnp.bfloat16)
        y = jnp.dot(xw, wp_ref[...],
                    preferred_element_type=jnp.float32)        # (win_len, kp_pad)
        # After n_steps doubling rounds: band[j, 0] = sum_t y[(j+t)%win_len, t].
        # Columns t >= Kp of wp are zero, so row wrap-around never contributes
        # to the rows we read (win_len >= crop_off + outlen + Kp - 1).
        band = y
        for step in range(n_steps):
            s = 1 << step
            # sh[j, k] = band[(j + s) % win_len, (k + s) % kp_pad]
            sh = pltpu.roll(band, shift=win_len - s, axis=0)
            sh = pltpu.roll(sh, shift=kp_pad - s, axis=1)
            band = band + sh
        win = band[crop_off:crop_off + outlen_pad, :]       # (outlen_pad, kp_pad)
        # Full-width transpose (proven Mosaic shape); column 0 is the profile.
        prof_ref[0] = jnp.transpose(win, (1, 0))[0:1, :] + bp_ref[0, 0]

    return kernel


def chrombpnet_forward(x_ncl, params, *, num_layers, conv_kernel_size,
                       profile_kernel_size, outlen):
    """x_ncl: (B, 4, seqlen) float32 in PyTorch Conv1d layout.
    Returns (prof (B, outlen) f32, count (B,) f32)."""
    B, in_ch, seqlen = x_ncl.shape
    K0 = conv_kernel_size
    Kp = profile_kernel_size
    filters = params["w0"].shape[2]
    L0 = seqlen - K0 + 1

    # valid-length bookkeeping (mirrors the asserts in the PyTorch module)
    L = L0
    for i in range(1, num_layers):
        L -= 2 * (2 ** i)
        assert L > 0
    L_p = L - Kp + 1
    assert L_p % 2 == 0 and (L_p - outlen) >= 0 and (L_p - outlen) % 2 == 0
    crop = (L_p - outlen) // 2

    # ---- profile-head row window (sublane-aligned) + lane-padded output --
    kp_pad = max(128, _next_pow2(Kp))
    outlen_pad = _round_up(outlen, 128)
    win_start = (crop // 8) * 8
    crop_off = crop - win_start
    win_len = _round_up(crop_off + max(outlen + Kp - 1, outlen_pad), 8)
    if win_start + win_len > L:
        # fall back to the full activation window (always correct)
        win_start, crop_off, win_len = 0, crop, L
        if crop + outlen_pad > L:
            outlen_pad = outlen          # accept a masked final store instead

    # ---- host-side layout prep (pure relayout / casts, no math) ----------
    # lane-dense im2col input for the first conv, contraction padded to 128
    k_raw = K0 * in_ch
    k_pad = _round_up(k_raw, 128)
    x_nlc = jnp.transpose(x_ncl, (0, 2, 1))
    x_col = jnp.concatenate([x_nlc[:, k:k + L0, :] for k in range(K0)],
                            axis=-1)
    x_col = jnp.pad(x_col, ((0, 0), (0, 0), (0, k_pad - k_raw)))
    x_col = x_col.astype(jnp.bfloat16)                       # (B, L0, k_pad)

    w0 = params["w0"].reshape(k_raw, filters)
    w0 = jnp.pad(w0, ((0, k_pad - k_raw), (0, 0))).astype(jnp.bfloat16)
    b0 = params["b0"].astype(jnp.float32)

    w_dil = [w.astype(jnp.bfloat16) for w in params["w_dil"]]   # (3, F, F)
    b_dil = [b.astype(jnp.float32) for b in params["b_dil"]]    # (1, F)

    # profile conv weight as (F, kp_pad) so the head is a single MXU matmul
    wp = jnp.zeros((filters, kp_pad), jnp.float32)
    wp = wp.at[:, :Kp].set(jnp.transpose(params["wp"][:, 0, :], (1, 0)))
    wp = wp.astype(jnp.bfloat16)
    wd = params["wd"].reshape(1, filters).astype(jnp.float32)
    bp = params["bp"].reshape(1, 1).astype(jnp.float32)
    bd = params["bd"].reshape(1, 1).astype(jnp.float32)

    flat = [x_col, w0, b0] + w_dil + b_dil + [wp, wd, bp, bd]

    kernel = _make_chrombpnet_kernel(num_layers, kp_pad, win_start, win_len,
                                     crop_off, outlen_pad)

    # weights are grid-invariant: a single resident VMEM copy (no double
    # buffering); bp/bd are true scalars and live in SMEM.
    vmem = pl.BlockSpec(memory_space=pltpu.MemorySpace.VMEM)
    smem = pl.BlockSpec(memory_space=pltpu.MemorySpace.SMEM)
    n_vmem_weights = 2 + 2 * (num_layers - 1) + 2
    in_specs = ([pl.BlockSpec((1, L0, k_pad), lambda b: (b, 0, 0))]
                + [vmem] * n_vmem_weights + [smem, smem])

    out_shape = (jax.ShapeDtypeStruct((B, 1, outlen_pad), jnp.float32),
                 jax.ShapeDtypeStruct((B, 1, 1), jnp.float32))
    out_specs = (pl.BlockSpec((1, 1, outlen_pad), lambda b: (b, 0, 0)),
                 pl.BlockSpec((1, 1, 1), lambda b: (b, 0, 0)))

    # advisory cost estimate for XLA scheduling around the custom call
    flops = 2 * B * L0 * k_pad * filters
    Lr = L0
    for i in range(1, num_layers):
        Lr -= 2 * (2 ** i)
        flops += 2 * B * Lr * filters * filters * 3
    flops += 2 * B * win_len * filters * kp_pad + 2 * B * filters
    bytes_accessed = (sum(int(a.size) * a.dtype.itemsize for a in flat)
                      + B * (outlen_pad + 1) * 4)

    # VMEM budget: resident weights + double-buffered I/O blocks + activation
    # working set, doubled for headroom; never request all of a v7x core's
    # 64 MiB of VMEM.
    weight_bytes = sum(int(a.size) * a.dtype.itemsize for a in flat[1:])
    io_block_bytes = 2 * (L0 * k_pad * 2) + 2 * (outlen_pad + 1) * 4
    act_bytes = (3 * L0 * filters * 4 + 2 * L0 * filters * 2
                 + 3 * win_len * kp_pad * 4)
    vmem_limit = int(min(56 * 2 ** 20,
                         max(32 * 2 ** 20,
                             2 * (weight_bytes + io_block_bytes + act_bytes))))

    prof, count = pl.pallas_call(
        kernel,
        grid=(B,),
        in_specs=in_specs,
        out_specs=out_specs,
        out_shape=out_shape,
        compiler_params=pltpu.CompilerParams(
            dimension_semantics=("parallel",),
            vmem_limit_bytes=vmem_limit),
        cost_estimate=pl.CostEstimate(flops=int(flops), transcendentals=0,
                                      bytes_accessed=int(bytes_accessed)),
    )(*flat)
    return prof[:, 0, :outlen], count.reshape(B)


def init_params(key, filters, conv_kernel_size, profile_kernel_size, num_layers):
    keys = jax.random.split(key, 2 * num_layers + 4)
    s = 0.1
    params = {
        "w0": s * jax.random.normal(keys[0], (conv_kernel_size, 4, filters), jnp.float32),
        "b0": s * jax.random.normal(keys[1], (1, filters), jnp.float32),
        "w_dil": [],
        "b_dil": [],
    }
    for i in range(1, num_layers):
        params["w_dil"].append(
            s * jax.random.normal(keys[2 * i], (3, filters, filters), jnp.float32))
        params["b_dil"].append(
            s * jax.random.normal(keys[2 * i + 1], (1, filters), jnp.float32))
    params["wp"] = s * jax.random.normal(keys[2 * num_layers],
                                         (profile_kernel_size, 1, filters), jnp.float32)
    params["bp"] = s * jax.random.normal(keys[2 * num_layers + 1], (1, 1), jnp.float32)
    params["wd"] = s * jax.random.normal(keys[2 * num_layers + 2], (filters, 1), jnp.float32)
    params["bd"] = s * jax.random.normal(keys[2 * num_layers + 3], (1, 1), jnp.float32)
    return params


def reference_forward(x_ncl, params, *, num_layers, outlen):
    """Pure-JAX reference (bf16 matmul operands, f32 accumulation) matching the
    PyTorch ChromBPNet forward semantics."""
    def conv1d(x, w_kio, b, dilation):
        w_t = jnp.transpose(w_kio, (2, 1, 0)).astype(jnp.bfloat16)  # (Cout,Cin,K)
        out = jax.lax.conv_general_dilated(
            x.astype(jnp.bfloat16), w_t, window_strides=(1,), padding="VALID",
            rhs_dilation=(dilation,),
            dimension_numbers=("NCH", "OIH", "NCH"),
            preferred_element_type=jnp.float32)
        return out + b.reshape(1, -1, 1).astype(jnp.float32)

    x = jax.nn.relu(conv1d(x_ncl, params["w0"], params["b0"], 1))
    for i in range(1, num_layers):
        conv_x = jax.nn.relu(
            conv1d(x, params["w_dil"][i - 1], params["b_dil"][i - 1], 2 ** i))
        crop = (x.shape[2] - conv_x.shape[2]) // 2
        x = x[:, :, crop:x.shape[2] - crop] + conv_x

    wp_t = jnp.transpose(params["wp"], (1, 2, 0)).astype(jnp.bfloat16)  # (1, F, Kp)
    prof_pre = jax.lax.conv_general_dilated(
        x.astype(jnp.bfloat16), wp_t, window_strides=(1,), padding="VALID",
        rhs_dilation=(1,), dimension_numbers=("NCH", "OIH", "NCH"),
        preferred_element_type=jnp.float32) + params["bp"].reshape(1, 1, 1)
    crop = (prof_pre.shape[2] - outlen) // 2
    prof = prof_pre[:, 0, crop:prof_pre.shape[2] - crop]
    gap = jnp.mean(x, axis=2)
    count = (gap @ params["wd"] + params["bd"]).reshape(-1)
    return prof, count


if __name__ == "__main__":
    # Small but structurally faithful configuration.
    filters = 8
    conv_kernel_size = 21
    profile_kernel_size = 75
    num_layers = 3          # dilations 2, 4
    seqlen = 256
    outlen = 128            # profile pre-crop length = 150 (even), crop = 11
    B = 2                   # even batch keeps both v7x TensorCores busy

    key = jax.random.PRNGKey(0)
    kx, kp = jax.random.split(key)
    x_ncl = jax.random.normal(kx, (B, 4, seqlen), jnp.float32)  # PyTorch (N, C, L)
    params = init_params(kp, filters, conv_kernel_size, profile_kernel_size,
                         num_layers)

    prof, count = chrombpnet_forward(
        x_ncl, params, num_layers=num_layers,
        conv_kernel_size=conv_kernel_size,
        profile_kernel_size=profile_kernel_size, outlen=outlen)
    jax.block_until_ready((prof, count))

    prof_ref, count_ref = reference_forward(
        x_ncl, params, num_layers=num_layers, outlen=outlen)

    assert prof.shape == (B, outlen) and count.shape == (B,)
    # bf16 operand rounding is applied identically in kernel and reference;
    # remaining differences are f32 accumulation-order noise.
    np.testing.assert_allclose(np.asarray(prof), np.asarray(prof_ref),
                               rtol=1e-3, atol=1e-3)
    np.testing.assert_allclose(np.asarray(count), np.asarray(count_ref),
                               rtol=1e-3, atol=1e-3)
    print("KERNEL_OK")
</pallas_src>

<mosaic_0001>
module attributes {stable_mosaic.version = 11 : i64} {
  func.func @kernel(%arg0: i32, %arg1: memref<1x236x128xbf16, #tpu.memory_space<vmem>>, %arg2: memref<128x8xbf16, #tpu.memory_space<vmem>>, %arg3: memref<1x8xf32, #tpu.memory_space<vmem>>, %arg4: memref<3x8x8xbf16, #tpu.memory_space<vmem>>, %arg5: memref<3x8x8xbf16, #tpu.memory_space<vmem>>, %arg6: memref<1x8xf32, #tpu.memory_space<vmem>>, %arg7: memref<1x8xf32, #tpu.memory_space<vmem>>, %arg8: memref<8x128xbf16, #tpu.memory_space<vmem>>, %arg9: memref<1x8xf32, #tpu.memory_space<vmem>>, %arg10: memref<1x1xf32, #tpu.memory_space<smem>>, %arg11: memref<1x1xf32, #tpu.memory_space<smem>>, %arg12: memref<1x1x128xf32, #tpu.memory_space<vmem>>, %arg13: memref<1x1x1xf32, #tpu.memory_space<vmem>>) attributes {dimension_semantics = [#tpu.dimension_semantics<parallel>], iteration_bounds = array<i64: 2>, scalar_prefetch = 0 : i64, scratch_operands = 0 : i64, tpu.core_type = #tpu.core_type<tc>, window_params = [{transform_indices = @transform_0, window_bounds = array<i64: 1, 236, 128>}, {pipeline_mode = #tpu.pipeline_mode<synchronous>, transform_indices = @transform_1, window_bounds = array<i64: 128, 8>}, {pipeline_mode = #tpu.pipeline_mode<synchronous>, transform_indices = @transform_2, window_bounds = array<i64: 1, 8>}, {pipeline_mode = #tpu.pipeline_mode<synchronous>, transform_indices = @transform_3, window_bounds = array<i64: 3, 8, 8>}, {pipeline_mode = #tpu.pipeline_mode<synchronous>, transform_indices = @transform_4, window_bounds = array<i64: 3, 8, 8>}, {pipeline_mode = #tpu.pipeline_mode<synchronous>, transform_indices = @transform_5, window_bounds = array<i64: 1, 8>}, {pipeline_mode = #tpu.pipeline_mode<synchronous>, transform_indices = @transform_6, window_bounds = array<i64: 1, 8>}, {pipeline_mode = #tpu.pipeline_mode<synchronous>, transform_indices = @transform_7, window_bounds = array<i64: 8, 128>}, {pipeline_mode = #tpu.pipeline_mode<synchronous>, transform_indices = @transform_8, window_bounds = array<i64: 1, 8>}, {transform_indices = @transform_9, window_bounds = array<i64: 1, 1>}, {transform_indices = @transform_10, window_bounds = array<i64: 1, 1>}, {transform_indices = @transform_11, window_bounds = array<i64: 1, 1, 128>}, {transform_indices = @transform_12, window_bounds = array<i64: 1, 1, 1>}]} {
    %c0 = arith.constant 0 : index
    %c0_0 = arith.constant 0 : index
    %c0_1 = arith.constant 0 : index
    %0 = vector.load %arg1[%c0, %c0_0, %c0_1] : memref<1x236x128xbf16, #tpu.memory_space<vmem>>, vector<1x236x128xbf16>
    %1 = vector.shape_cast %0 : vector<1x236x128xbf16> to vector<236x128xbf16>
    %c0_2 = arith.constant 0 : index
    %c0_3 = arith.constant 0 : index
    %2 = vector.load %arg2[%c0_2, %c0_3] : memref<128x8xbf16, #tpu.memory_space<vmem>>, vector<128x8xbf16>
    %cst = arith.constant dense<0.000000e+00> : vector<236x8xf32>
    %3 = tpu.matmul %1, %2, %cst {dimension_numbers = #tpu.dot_dimension_numbers<[1], [0], [0], [1], [0, 0, 1, 1], [], []>} : vector<236x128xbf16>, vector<128x8xbf16>, vector<236x8xf32> -> vector<236x8xf32>
    %c0_4 = arith.constant 0 : index
    %c0_5 = arith.constant 0 : index
    %4 = vector.load %arg3[%c0_4, %c0_5] : memref<1x8xf32, #tpu.memory_space<vmem>>, vector<1x8xf32>
    %5 = vector.broadcast %4 : vector<1x8xf32> to vector<236x8xf32>
    %6 = arith.addf %3, %5 : vector<236x8xf32>
    %cst_6 = arith.constant 0.000000e+00 : f32
    %7 = vector.broadcast %cst_6 : f32 to vector<236x8xf32>
    %8 = arith.maximumf %6, %7 : vector<236x8xf32>
    %9 = arith.truncf %8 : vector<236x8xf32> to vector<236x8xbf16>
    %10 = vector.extract_strided_slice %9 {offsets = [0, 0], sizes = [232, 8], strides = [1, 1]} : vector<236x8xbf16> to vector<232x8xbf16>
    %c0_7 = arith.constant 0 : index
    %c0_8 = arith.constant 0 : index
    %c0_9 = arith.constant 0 : index
    %11 = vector.load %arg4[%c0_7, %c0_8, %c0_9] : memref<3x8x8xbf16, #tpu.memory_space<vmem>>, vector<1x8x8xbf16>
    %12 = vector.shape_cast %11 : vector<1x8x8xbf16> to vector<8x8xbf16>
    %cst_10 = arith.constant dense<0.000000e+00> : vector<232x8xf32>
    %13 = tpu.matmul %10, %12, %cst_10 {dimension_numbers = #tpu.dot_dimension_numbers<[1], [0], [0], [1], [0, 0, 1, 1], [], []>} : vector<232x8xbf16>, vector<8x8xbf16>, vector<232x8xf32> -> vector<232x8xf32>
    %14 = vector.extract_strided_slice %9 {offsets = [2, 0], sizes = [232, 8], strides = [1, 1]} : vector<236x8xbf16> to vector<232x8xbf16>
    %c1 = arith.constant 1 : index
    %c0_11 = arith.constant 0 : index
    %c0_12 = arith.constant 0 : index
    %15 = vector.load %arg4[%c1, %c0_11, %c0_12] : memref<3x8x8xbf16, #tpu.memory_space<vmem>>, vector<1x8x8xbf16>
    %16 = vector.shape_cast %15 : vector<1x8x8xbf16> to vector<8x8xbf16>
    %cst_13 = arith.constant dense<0.000000e+00> : vector<232x8xf32>
    %17 = tpu.matmul %14, %16, %cst_13 {dimension_numbers = #tpu.dot_dimension_numbers<[1], [0], [0], [1], [0, 0, 1, 1], [], []>} : vector<232x8xbf16>, vector<8x8xbf16>, vector<232x8xf32> -> vector<232x8xf32>
    %18 = arith.addf %13, %17 : vector<232x8xf32>
    %19 = vector.extract_strided_slice %9 {offsets = [4, 0], sizes = [232, 8], strides = [1, 1]} : vector<236x8xbf16> to vector<232x8xbf16>
    %c2 = arith.constant 2 : index
    %c0_14 = arith.constant 0 : index
    %c0_15 = arith.constant 0 : index
    %20 = vector.load %arg4[%c2, %c0_14, %c0_15] : memref<3x8x8xbf16, #tpu.memory_space<vmem>>, vector<1x8x8xbf16>
    %21 = vector.shape_cast %20 : vector<1x8x8xbf16> to vector<8x8xbf16>
    %cst_16 = arith.constant dense<0.000000e+00> : vector<232x8xf32>
    %22 = tpu.matmul %19, %21, %cst_16 {dimension_numbers = #tpu.dot_dimension_numbers<[1], [0], [0], [1], [0, 0, 1, 1], [], []>} : vector<232x8xbf16>, vector<8x8xbf16>, vector<232x8xf32> -> vector<232x8xf32>
    %23 = arith.addf %18, %22 : vector<232x8xf32>
    %24 = vector.extract_strided_slice %8 {offsets = [2, 0], sizes = [232, 8], strides = [1, 1]} : vector<236x8xf32> to vector<232x8xf32>
    %c0_17 = arith.constant 0 : index
    %c0_18 = arith.constant 0 : index
    %25 = vector.load %arg6[%c0_17, %c0_18] : memref<1x8xf32, #tpu.memory_space<vmem>>, vector<1x8xf32>
    %26 = vector.broadcast %25 : vector<1x8xf32> to vector<232x8xf32>
    %27 = arith.addf %23, %26 : vector<232x8xf32>
    %cst_19 = arith.constant 0.000000e+00 : f32
    %28 = vector.broadcast %cst_19 : f32 to vector<232x8xf32>
    %29 = arith.maximumf %27, %28 : vector<232x8xf32>
    %30 = arith.addf %24, %29 : vector<232x8xf32>
    %31 = arith.truncf %30 : vector<232x8xf32> to vector<232x8xbf16>
    %32 = vector.extract_strided_slice %31 {offsets = [0, 0], sizes = [224, 8], strides = [1, 1]} : vector<232x8xbf16> to vector<224x8xbf16>
    %c0_20 = arith.constant 0 : index
    %c0_21 = arith.constant 0 : index
    %c0_22 = arith.constant 0 : index
    %33 = vector.load %arg5[%c0_20, %c0_21, %c0_22] : memref<3x8x8xbf16, #tpu.memory_space<vmem>>, vector<1x8x8xbf16>
    %34 = vector.shape_cast %33 : vector<1x8x8xbf16> to vector<8x8xbf16>
    %cst_23 = arith.constant dense<0.000000e+00> : vector<224x8xf32>
    %35 = tpu.matmul %32, %34, %cst_23 {dimension_numbers = #tpu.dot_dimension_numbers<[1], [0], [0], [1], [0, 0, 1, 1], [], []>} : vector<224x8xbf16>, vector<8x8xbf16>, vector<224x8xf32> -> vector<224x8xf32>
    %36 = vector.extract_strided_slice %31 {offsets = [4, 0], sizes = [224, 8], strides = [1, 1]} : vector<232x8xbf16> to vector<224x8xbf16>
    %c1_24 = arith.constant 1 : index
    %c0_25 = arith.constant 0 : index
    %c0_26 = arith.constant 0 : index
    %37 = vector.load %arg5[%c1_24, %c0_25, %c0_26] : memref<3x8x8xbf16, #tpu.memory_space<vmem>>, vector<1x8x8xbf16>
    %38 = vector.shape_cast %37 : vector<1x8x8xbf16> to vector<8x8xbf16>
    %cst_27 = arith.constant dense<0.000000e+00> : vector<224x8xf32>
    %39 = tpu.matmul %36, %38, %cst_27 {dimension_numbers = #tpu.dot_dimension_numbers<[1], [0], [0], [1], [0, 0, 1, 1], [], []>} : vector<224x8xbf16>, vector<8x8xbf16>, vector<224x8xf32> -> vector<224x8xf32>
    %40 = arith.addf %35, %39 : vector<224x8xf32>
    %41 = vector.extract_strided_slice %31 {offsets = [8, 0], sizes = [224, 8], strides = [1, 1]} : vector<232x8xbf16> to vector<224x8xbf16>
    %c2_28 = arith.constant 2 : index
    %c0_29 = arith.constant 0 : index
    %c0_30 = arith.constant 0 : index
    %42 = vector.load %arg5[%c2_28, %c0_29, %c0_30] : memref<3x8x8xbf16, #tpu.memory_space<vmem>>, vector<1x8x8xbf16>
    %43 = vector.shape_cast %42 : vector<1x8x8xbf16> to vector<8x8xbf16>
    %cst_31 = arith.constant dense<0.000000e+00> : vector<224x8xf32>
    %44 = tpu.matmul %41, %43, %cst_31 {dimension_numbers = #tpu.dot_dimension_numbers<[1], [0], [0], [1], [0, 0, 1, 1], [], []>} : vector<224x8xbf16>, vector<8x8xbf16>, vector<224x8xf32> -> vector<224x8xf32>
    %45 = arith.addf %40, %44 : vector<224x8xf32>
    %46 = vector.extract_strided_slice %30 {offsets = [4, 0], sizes = [224, 8], strides = [1, 1]} : vector<232x8xf32> to vector<224x8xf32>
    %c0_32 = arith.constant 0 : index
    %c0_33 = arith.constant 0 : index
    %47 = vector.load %arg7[%c0_32, %c0_33] : memref<1x8xf32, #tpu.memory_space<vmem>>, vector<1x8xf32>
    %48 = vector.broadcast %47 : vector<1x8xf32> to vector<224x8xf32>
    %49 = arith.addf %45, %48 : vector<224x8xf32>
    %cst_34 = arith.constant 0.000000e+00 : f32
    %50 = vector.broadcast %cst_34 : f32 to vector<224x8xf32>
    %51 = arith.maximumf %49, %50 : vector<224x8xf32>
    %52 = arith.addf %46, %51 : vector<224x8xf32>
    %cst_35 = arith.constant dense<0.000000e+00> : vector<8xf32>
    %53 = vector.multi_reduction <add>, %52, %cst_35 [0] : vector<224x8xf32> to vector<8xf32>
    %54 = vector.shape_cast %53 : vector<8xf32> to vector<1x8xf32>
    %cst_36 = arith.constant 2.240000e+02 : f32
    %55 = vector.broadcast %cst_36 : f32 to vector<1x8xf32>
    %56 = arith.divf %54, %55 : vector<1x8xf32>
    %c0_37 = arith.constant 0 : index
    %c0_38 = arith.constant 0 : index
    %57 = vector.load %arg9[%c0_37, %c0_38] : memref<1x8xf32, #tpu.memory_space<vmem>>, vector<1x8xf32>
    %58 = arith.mulf %56, %57 : vector<1x8xf32>
    %cst_39 = arith.constant dense<0.000000e+00> : vector<1xf32>
    %59 = vector.multi_reduction <add>, %58, %cst_39 [1] : vector<1x8xf32> to vector<1xf32>
    %60 = vector.shape_cast %59 : vector<1xf32> to vector<1x1xf32>
    %c0_40 = arith.constant 0 : index
    %c0_41 = arith.constant 0 : index
    %61 = memref.load %arg11[%c0_40, %c0_41] : memref<1x1xf32, #tpu.memory_space<smem>>
    %62 = vector.broadcast %61 : f32 to vector<1x1xf32>
    %63 = arith.addf %60, %62 : vector<1x1xf32>
    %c0_42 = arith.constant 0 : index
    %c0_43 = arith.constant 0 : index
    %c0_44 = arith.constant 0 : index
    %64 = vector.load %arg13[%c0_42, %c0_43, %c0_44] : memref<1x1x1xf32, #tpu.memory_space<vmem>>, vector<1x1x1xf32>
    %65 = vector.shape_cast %64 : vector<1x1x1xf32> to vector<1x1xf32>
    %66 = vector.shape_cast %63 : vector<1x1xf32> to vector<1x1x1xf32>
    tpu.vector_store %arg13[%c0_42, %c0_43, %c0_44], %66 {strides = array<i32>} : memref<1x1x1xf32, #tpu.memory_space<vmem>>, vector<1x1x1xf32>,
    %67 = vector.extract_strided_slice %52 {offsets = [8, 0], sizes = [208, 8], strides = [1, 1]} : vector<224x8xf32> to vector<208x8xf32>
    %68 = arith.truncf %67 : vector<208x8xf32> to vector<208x8xbf16>
    %c0_45 = arith.constant 0 : index
    %c0_46 = arith.constant 0 : index
    %69 = vector.load %arg8[%c0_45, %c0_46] : memref<8x128xbf16, #tpu.memory_space<vmem>>, vector<8x128xbf16>
    %cst_47 = arith.constant dense<0.000000e+00> : vector<208x128xf32>
    %70 = tpu.matmul %68, %69, %cst_47 {dimension_numbers = #tpu.dot_dimension_numbers<[1], [0], [0], [1], [0, 0, 1, 1], [], []>} : vector<208x8xbf16>, vector<8x128xbf16>, vector<208x128xf32> -> vector<208x128xf32>
    %c207_i32 = arith.constant 207 : i32
    %71 = tpu.dynamic_rotate %70 by %c207_i32 dim 0 : vector<208x128xf32>, i32 -> vector<208x128xf32>
    %c127_i32 = arith.constant 127 : i32
    %72 = tpu.dynamic_rotate %71 by %c127_i32 dim 1 : vector<208x128xf32>, i32 -> vector<208x128xf32>
    %73 = arith.addf %70, %72 : vector<208x128xf32>
    %c206_i32 = arith.constant 206 : i32
    %74 = tpu.dynamic_rotate %73 by %c206_i32 dim 0 : vector<208x128xf32>, i32 -> vector<208x128xf32>
    %c126_i32 = arith.constant 126 : i32
    %75 = tpu.dynamic_rotate %74 by %c126_i32 dim 1 : vector<208x128xf32>, i32 -> vector<208x128xf32>
    %76 = arith.addf %73, %75 : vector<208x128xf32>
    %c204_i32 = arith.constant 204 : i32
    %77 = tpu.dynamic_rotate %76 by %c204_i32 dim 0 : vector<208x128xf32>, i32 -> vector<208x128xf32>
    %c124_i32 = arith.constant 124 : i32
    %78 = tpu.dynamic_rotate %77 by %c124_i32 dim 1 : vector<208x128xf32>, i32 -> vector<208x128xf32>
    %79 = arith.addf %76, %78 : vector<208x128xf32>
    %c200_i32 = arith.constant 200 : i32
    %80 = tpu.dynamic_rotate %79 by %c200_i32 dim 0 : vector<208x128xf32>, i32 -> vector<208x128xf32>
    %c120_i32 = arith.constant 120 : i32
    %81 = tpu.dynamic_rotate %80 by %c120_i32 dim 1 : vector<208x128xf32>, i32 -> vector<208x128xf32>
    %82 = arith.addf %79, %81 : vector<208x128xf32>
    %c192_i32 = arith.constant 192 : i32
    %83 = tpu.dynamic_rotate %82 by %c192_i32 dim 0 : vector<208x128xf32>, i32 -> vector<208x128xf32>
    %c112_i32 = arith.constant 112 : i32
    %84 = tpu.dynamic_rotate %83 by %c112_i32 dim 1 : vector<208x128xf32>, i32 -> vector<208x128xf32>
    %85 = arith.addf %82, %84 : vector<208x128xf32>
    %c176_i32 = arith.constant 176 : i32
    %86 = tpu.dynamic_rotate %85 by %c176_i32 dim 0 : vector<208x128xf32>, i32 -> vector<208x128xf32>
    %c96_i32 = arith.constant 96 : i32
    %87 = tpu.dynamic_rotate %86 by %c96_i32 dim 1 : vector<208x128xf32>, i32 -> vector<208x128xf32>
    %88 = arith.addf %85, %87 : vector<208x128xf32>
    %c144_i32 = arith.constant 144 : i32
    %89 = tpu.dynamic_rotate %88 by %c144_i32 dim 0 : vector<208x128xf32>, i32 -> vector<208x128xf32>
    %c64_i32 = arith.constant 64 : i32
    %90 = tpu.dynamic_rotate %89 by %c64_i32 dim 1 : vector<208x128xf32>, i32 -> vector<208x128xf32>
    %91 = arith.addf %88, %90 : vector<208x128xf32>
    %92 = vector.extract_strided_slice %91 {offsets = [3, 0], sizes = [128, 128], strides = [1, 1]} : vector<208x128xf32> to vector<128x128xf32>
    %93 = tpu.transpose %92, [1, 0] : vector<128x128xf32> -> vector<128x128xf32>
    %94 = vector.extract_strided_slice %93 {offsets = [0, 0], sizes = [1, 128], strides = [1, 1]} : vector<128x128xf32> to vector<1x128xf32>
    %c0_48 = arith.constant 0 : index
    %c0_49 = arith.constant 0 : index
    %95 = memref.load %arg10[%c0_48, %c0_49] : memref<1x1xf32, #tpu.memory_space<smem>>
    %96 = vector.broadcast %95 : f32 to vector<1x128xf32>
    %97 = arith.addf %94, %96 : vector<1x128xf32>
    %c0_50 = arith.constant 0 : index
    %c0_51 = arith.constant 0 : index
    %c0_52 = arith.constant 0 : index
    %98 = vector.load %arg12[%c0_50, %c0_51, %c0_52] : memref<1x1x128xf32, #tpu.memory_space<vmem>>, vector<1x1x128xf32>
    %99 = vector.shape_cast %98 : vector<1x1x128xf32> to vector<1x128xf32>
    %100 = vector.shape_cast %97 : vector<1x128xf32> to vector<1x1x128xf32>
    tpu.vector_store %arg12[%c0_50, %c0_51, %c0_52], %100 {strides = array<i32>} : memref<1x1x128xf32, #tpu.memory_space<vmem>>, vector<1x1x128xf32>,
    return
  }
  func.func @transform_0(%arg0: i32) -> (i32, i32, i32) {
    %c0_i32 = arith.constant 0 : i32
    %c0_i32_0 = arith.constant 0 : i32
    %c0_i32_1 = arith.constant 0 : i32
    return %arg0, %c0_i32, %c0_i32_0 : i32, i32, i32
  }
  func.func @transform_1(%arg0: i32) -> (i32, i32) {
    %c0_i32 = arith.constant 0 : i32
    %c0_i32_0 = arith.constant 0 : i32
    %c0_i32_1 = arith.constant 0 : i32
    return %c0_i32, %c0_i32_0 : i32, i32
  }
  func.func @transform_2(%arg0: i32) -> (i32, i32) {
    %c0_i32 = arith.constant 0 : i32
    %c0_i32_0 = arith.constant 0 : i32
    %c0_i32_1 = arith.constant 0 : i32
    return %c0_i32, %c0_i32_0 : i32, i32
  }
  func.func @transform_3(%arg0: i32) -> (i32, i32, i32) {
    %c0_i32 = arith.constant 0 : i32
    %c0_i32_0 = arith.constant 0 : i32
    %c0_i32_1 = arith.constant 0 : i32
    %c0_i32_2 = arith.constant 0 : i32
    return %c0_i32, %c0_i32_0, %c0_i32_1 : i32, i32, i32
  }
  func.func @transform_4(%arg0: i32) -> (i32, i32, i32) {
    %c0_i32 = arith.constant 0 : i32
    %c0_i32_0 = arith.constant 0 : i32
    %c0_i32_1 = arith.constant 0 : i32
    %c0_i32_2 = arith.constant 0 : i32
    return %c0_i32, %c0_i32_0, %c0_i32_1 : i32, i32, i32
  }
  func.func @transform_5(%arg0: i32) -> (i32, i32) {
    %c0_i32 = arith.constant 0 : i32
    %c0_i32_0 = arith.constant 0 : i32
    %c0_i32_1 = arith.constant 0 : i32
    return %c0_i32, %c0_i32_0 : i32, i32
  }
  func.func @transform_6(%arg0: i32) -> (i32, i32) {
    %c0_i32 = arith.constant 0 : i32
    %c0_i32_0 = arith.constant 0 : i32
    %c0_i32_1 = arith.constant 0 : i32
    return %c0_i32, %c0_i32_0 : i32, i32
  }
  func.func @transform_7(%arg0: i32) -> (i32, i32) {
    %c0_i32 = arith.constant 0 : i32
    %c0_i32_0 = arith.constant 0 : i32
    %c0_i32_1 = arith.constant 0 : i32
    return %c0_i32, %c0_i32_0 : i32, i32
  }
  func.func @transform_8(%arg0: i32) -> (i32, i32) {
    %c0_i32 = arith.constant 0 : i32
    %c0_i32_0 = arith.constant 0 : i32
    %c0_i32_1 = arith.constant 0 : i32
    return %c0_i32, %c0_i32_0 : i32, i32
  }
  func.func @transform_9(%arg0: i32) -> (i32, i32) {
    %c0_i32 = arith.constant 0 : i32
    %c0_i32_0 = arith.constant 0 : i32
    %c0_i32_1 = arith.constant 0 : i32
    return %c0_i32, %c0_i32_0 : i32, i32
  }
  func.func @transform_10(%arg0: i32) -> (i32, i32) {
    %c0_i32 = arith.constant 0 : i32
    %c0_i32_0 = arith.constant 0 : i32
    %c0_i32_1 = arith.constant 0 : i32
    return %c0_i32, %c0_i32_0 : i32, i32
  }
  func.func @transform_11(%arg0: i32) -> (i32, i32, i32) {
    %c0_i32 = arith.constant 0 : i32
    %c0_i32_0 = arith.constant 0 : i32
    %c0_i32_1 = arith.constant 0 : i32
    return %arg0, %c0_i32, %c0_i32_0 : i32, i32, i32
  }
  func.func @transform_12(%arg0: i32) -> (i32, i32, i32) {
    %c0_i32 = arith.constant 0 : i32
    %c0_i32_0 = arith.constant 0 : i32
    %c0_i32_1 = arith.constant 0 : i32
    return %arg0, %c0_i32, %c0_i32_0 : i32, i32, i32
  }
}

</mosaic_0001>

<bundles_post_ra>
// kernel: tpu_custom_call.1
= control target key start
LH: loop header
LB: loop body
LE: loop exit
PB: predicated region body
PF: predicated region fallthrough
CT: control target
= control target key end

     0   :  { %s7403_s0 = inlined_call_operand.vmem [shape: bf16[2,236,128], index: 0, kind: input, shape index: {}]   ;;  %s7404_s1 = inlined_call_operand.vmem [shape: bf16[128,8], index: 1, kind: input, shape index: {}]   ;;  %s7405_s2 = inlined_call_operand.vmem [shape: f32[1,8], index: 2, kind: input, shape index: {}]   ;;  %s7406_s3 = inlined_call_operand.vmem [shape: bf16[3,8,8], index: 3, kind: input, shape index: {}]   ;;  %s7407_s4 = inlined_call_operand.vmem [shape: bf16[3,8,8], index: 4, kind: input, shape index: {}]   ;;  %s7408_s5 = inlined_call_operand.vmem [shape: f32[1,8], index: 5, kind: input, shape index: {}]   ;;  %s7409_s6 = inlined_call_operand.vmem [shape: f32[1,8], index: 6, kind: input, shape index: {}]   ;;  %s7410_s7 = inlined_call_operand.vmem [shape: bf16[8,128], index: 7, kind: input, shape index: {}]   ;;  %s7411_s8 = inlined_call_operand.vmem [shape: f32[1,8], index: 8, kind: input, shape index: {}]   ;;  %s7412_s9 = inlined_call_operand.<no memory space> [shape: f32[1,1], index: 9, kind: input, shape index: {}]   ;;  %s7413_s10 = inlined_call_operand.<no memory space> [shape: f32[1,1], index: 10, kind: input, shape index: {}]   ;;  %s7414_s11 = inlined_call_operand.hbm [shape: f32[2,1,128], index: 11, kind: output, shape index: {0}]   ;;  %s7415_s12 = inlined_call_operand.vmem [shape: f32[2,1,1], index: 12, kind: output, shape index: {1}]  }
   0x1   :  { %7475 = sst [smem:[#allocation47_spill]] %s7403_s0 }
   0x2   :  { %18 = sst [smem:[#allocation2]] %s7412_s9 }
   0x3   :  { %19 = sst [smem:[#allocation3]] %s7413_s10 }
   0x4   :  { %20 = vsyncpa [#allocation5], 0 }
   0x5   :  { %22 = vsyncpa [#allocation5 + $0x1], 0  ;;  %s4910_s25 = smov 0   ;;  %s4912_s26 = smov 0  }
   0x6   :  { %s4914_s27 = smov 0   ;;  %s4916_s28 = smov 0  }
   0x7 LB: > { %s4931_s9 = sadd.s32 4294967295, %s4827_s28   ;;  %s3958_s10 = sadd.s32 4294967294, %s4827_s28   ;;  %s4827_s28 = sphi %s4916_s28, %s7614_s28   ;;  %s4823_s27 = sphi %s4914_s27, %s7613_s27   ;;  %s4819_s26 = sphi %s4912_s26, %s7612_s26   ;;  %s4815_s25 = sphi %s4910_s25, %s7611_s25  }
   0x8   : > { %s4935_s29 = sadd.s32 1, %s4827_s28   ;;  %s271_s30 = sadd.s32 1, %s4823_s27 }
   0x9   : > { %s268_s13 = ssub.s32 %s4827_s28, %s4935_s29  ;;  %p281_p0 = scmp.ne.s32.totalorder %s4823_s27, %s4819_s26 }
   0xa   : > { %p269_p1 = scmp.eq.s32.totalorder %s268_s13, 0  ;;  %p282_p2 = scmp.eq.s32.totalorder %s4931_s9, 1 }
   0xb   : > { %p287_p3 = scmp.ne.s32.totalorder %s4819_s26, %s4815_s25  ;;  %p288_p4 = scmp.eq.s32.totalorder %s3958_s10, 1 }
   0xc   : > { %s4946_s14 = scalar_select %p269_p1, %s4823_s27, %s271_s30  }
   0xd   : > { %p4948_p5 = por %p282_p2, %p281_p0  ;;  %p4952_p6 = por %p288_p4, %p287_p3 }
   0xe   : > { %p3961_p7 = scmp.ge.s32.totalorder %s4827_s28, 1  ;;  %p370_p8 = scmp.lt.s32.totalorder %s4827_s28, 3 }
  0x10   : > { %p371_p9 = pnand %p3961_p7, %p370_p8 }
  0x12   : > { %374 = sbr.rel (%p371_p9) target bundleno = 2378 (0x94a), region = 64 }
  0x19   : > { %v4742_v0 = vld [vmem:[%s7404_s1] sm:$0xff]   ;;  %v7438_v1 = vmov 0.0   ;;  %v4743_v2 = vld [vmem:[%s7404_s1 + $0x8] sm:$0xff]   ;;  %vm4830_vm0 = vmmov 0   ;;  %p414_p10 = scmp.lt.s32.totalorder %s4931_s9, 1  ;;  %v4744_v3 = vld [vmem:[%s7404_s1 + $0x10] sm:$0xff]  }
  0x1a   : > { %4226 = vmatprep.subr.bf16.mxu0 %v7438_v1  ;;  %4632 = vmatprep.subr.bf16.mxu1 %v7438_v1  ;;  %s7478_s0 = sld [smem:[#allocation47_spill]]  ;;  %v4745_v4 = vld [vmem:[%s7404_s1 + $0x18] sm:$0xff]   ;;  %v4746_v5 = vld [vmem:[%s7404_s1 + $0x20] sm:$0xff]   ;;  %v4747_v6 = vld [vmem:[%s7404_s1 + $0x28] sm:$0xff]   ;;  %vm906_vm1 = vcmask 1043456   ;;  %vm830_vm2 = vcmask 1046528  }
  0x1b   : > { %4227 = vmatpush3.bf16.msra.mxu0 %v4742_v0  ;;  %4242 = vmatprep.mubr.msk.bf16.mxu0 %vm4830_vm0, %v7438_v1  ;;  %s4973_s21 = scalar_select %p414_p10, %s4931_s9, 1  ;;  %v4748_v7 = vld [vmem:[%s7404_s1 + $0x30] sm:$0xff]   ;;  %v4749_v8 = vld [vmem:[%s7404_s1 + $0x38] sm:$0xff]   ;;  %v3987_v22 = vld [vmem:[%s7406_s3 + $0x4] sm:$0xf]  ;;  %vm860_vm3 = vcmask 64512  }
  0x1c   : > { %4228 = vmatprep.subr.bf16.mxu0 %v7438_v1  ;;  %4312 = vmatprep.mubr.msk.bf16.mxu1 %vm4830_vm0, %v7438_v1  ;;  %v908_v23 = vsel %vm906_vm1, %v3987_v22, 0  ;;  %v5060_v30 = vld [vmem:[%s7405_s2] ss:$0 sm:$0xff]  ;;  %v4018_v45 = vld [vmem:[%s7406_s3 + $0x8] sm:$0xf]  ;;  %vm1264_vm4 = vcmask 1045504  }
  0x1d   : > { %s4693_s24 = smul.u32 120, %s4973_s21  ;;  %4633 = vmatpush3.bf16.msra.mxu1 %v908_v23  ;;  %v1340_v52 = vsel %vm906_vm1, %v4018_v45, 0  ;;  %vm1617_vm5 = vcmask 1041408   ;;  %vm1768_vm6 = vcmask 1044480   ;;  %vm2209_vm7 = vcmask 1042432   ;;  %s4831_s18 = smov 127  }
  0x1e   : > { %4364 = vmatprep.subr.bf16.mxu1 %v7438_v1  ;;  %s4832_s19 = smov 126   ;;  %s4833_s20 = smov 124   ;;  %vm2841_vm11 = vcmask 57344   ;;  %vm2848_vm12 = vcmask 0  }
  0x1f   : > { %4229 = vmatpush3.bf16.msra.mxu0 %v4743_v2  ;;  %s4834_s22 = smov 120   ;;  %s4836_s23 = smov 96  }
  0x20   : > { %4230 = vmatprep.subr.bf16.mxu0 %v7438_v1  ;;  %s4983_s13 = scalar_lea.vmem %s7478_s0, %s4693_s24  ;;  %s4837_s24 = smov 64  }
  0x21   : > { %v4750_v9 = vld [vmem:[%s4983_s13] sm:$0xff]   ;;  %v4751_v10 = vld [vmem:[%s4983_s13 + $0x8] sm:$0xff]   ;;  %v4752_v11 = vld [vmem:[%s4983_s13 + $0x10] sm:$0xff]   ;;  %s2845_s17 = sld [smem:[#allocation3]] }
  0x22   : > { %v4753_v12 = vld [vmem:[%s4983_s13 + $0x18] sm:$0xff]   ;;  %v4754_v13 = vld [vmem:[%s4983_s13 + $0x20] sm:$0xff]   ;;  %v4755_v14 = vld [vmem:[%s4983_s13 + $0x28] sm:$0xff]  }
  0x23   : > { %4231 = vmatpush3.bf16.msra.mxu0 %v4744_v3  ;;  %v4756_v15 = vld [vmem:[%s4983_s13 + $0x30] sm:$0xff]   ;;  %v4757_v16 = vld [vmem:[%s4983_s13 + $0x38] sm:$0xff]   ;;  %v4758_v17 = vld [vmem:[%s4983_s13 + $0x40] sm:$0xff]  }
  0x24   : > { %4232 = vmatprep.subr.bf16.mxu0 %v7438_v1  ;;  %v4759_v18 = vld [vmem:[%s4983_s13 + $0x48] sm:$0xff]   ;;  %v4760_v19 = vld [vmem:[%s4983_s13 + $0x50] sm:$0xff]   ;;  %v4761_v20 = vld [vmem:[%s4983_s13 + $0x58] sm:$0xff]  }
  0x25   : > { %v4762_v21 = vld [vmem:[%s4983_s13 + $0x60] sm:$0xff]   ;;  %v4763_v24 = vld [vmem:[%s4983_s13 + $0x68] sm:$0xff]   ;;  %v4764_v25 = vld [vmem:[%s4983_s13 + $0x70] sm:$0x3f]   ;;  %s4835_s13 = smov 112  }
  0x27   : > { %4233 = vmatpush3.bf16.msra.mxu0 %v4745_v4 }
  0x28   : > { %4234 = vmatprep.subr.bf16.mxu0 %v7438_v1 }
  0x2b   : > { %4235 = vmatpush3.bf16.msra.mxu0 %v4746_v5 }
  0x2c   : > { %4236 = vmatprep.subr.bf16.mxu0 %v7438_v1 }
  0x2f   : > { %4237 = vmatpush3.bf16.msra.mxu0 %v4747_v6 }
  0x30   : > { %4238 = vmatprep.subr.bf16.mxu0 %v7438_v1 }
  0x33   : > { %4239 = vmatpush3.bf16.msra.mxu0 %v4748_v7 }
  0x34   : > { %4240 = vmatprep.subr.bf16.mxu0 %v7438_v1 }
  0x37   : > { %4241 = vmatpush3.bf16.msra.mxu0 %v4749_v8  ;;  %v812_v8 = vld [vmem:[%s7406_s3] sm:$0xf] }
  0x38   : > { %4302 = vmatprep.subr.bf16.mxu0 %v7438_v1 }
  0x3a   : > { %4243 = vmatmul.mubr.bf16.vlgmr.msra.gmra.mrb[0].mxu0 %v4750_v9 }
  0x3b   : > { %4246 = vmatprep.mubr.msk.bf16.mxu0 %vm4830_vm0, %v7438_v1  ;;  %4303 = vmatpush3.bf16.msra.mxu0 %v908_v23 }
  0x3c   : > { %4426 = vmatprep.subr.bf16.mxu0 %v7438_v1 }
  0x42   : > { %4247 = vmatmul.mubr.bf16.gmra.mrb[4].mxu0 %v4751_v10 }
  0x43   : > { %4250 = vmatprep.mubr.msk.bf16.mxu0 %vm4830_vm0, %v7438_v1 }
  0x4a   : > { %4251 = vmatmul.mubr.bf16.gmra.mrb[8].mxu0 %v4752_v11 }
  0x4b   : > { %4254 = vmatprep.mubr.msk.bf16.mxu0 %vm4830_vm0, %v7438_v1 }
  0x52   : > { %4255 = vmatmul.mubr.bf16.gmra.mrb[12].mxu0 %v4753_v12 }
  0x53   : > { %4258 = vmatprep.mubr.msk.bf16.mxu0 %vm4830_vm0, %v7438_v1 }
  0x5a   : > { %4259 = vmatmul.mubr.bf16.gmra.mrb[16].mxu0 %v4754_v13 }
  0x5b   : > { %4262 = vmatprep.mubr.msk.bf16.mxu0 %vm4830_vm0, %v7438_v1 }
  0x62   : > { %4263 = vmatmul.mubr.bf16.gmra.mrb[20].mxu0 %v4755_v14 }
  0x63   : > { %4266 = vmatprep.mubr.msk.bf16.mxu0 %vm4830_vm0, %v7438_v1 }
  0x6a   : > { %4267 = vmatmul.mubr.bf16.gmra.mrb[24].mxu0 %v4756_v15  ;;  %v1108_v15 = vsel %vm906_vm1, %v812_v8, 0 }
  0x6b   : > { %4270 = vmatprep.mubr.msk.bf16.mxu0 %vm4830_vm0, %v7438_v1 }
  0x72   : > { %4271 = vmatmul.mubr.bf16.gmra.mrb[28].mxu0 %v4757_v16 }
  0x73   : > { %4274 = vmatprep.mubr.msk.bf16.mxu0 %vm4830_vm0, %v7438_v1 }
  0x7a   : > { %4275 = vmatmul.mubr.bf16.gmra.mrb[32].mxu0 %v4758_v17 }
  0x7b   : > { %4278 = vmatprep.mubr.msk.bf16.mxu0 %vm4830_vm0, %v7438_v1 }
  0x82   : > { %4279 = vmatmul.mubr.bf16.gmra.mrb[36].mxu0 %v4759_v18 }
  0x83   : > { %4282 = vmatprep.mubr.msk.bf16.mxu0 %vm4830_vm0, %v7438_v1 }
  0x8a   : > { %4283 = vmatmul.mubr.bf16.gmra.mrb[40].mxu0 %v4760_v19 }
  0x8b   : > { %4286 = vmatprep.mubr.msk.bf16.mxu0 %vm4830_vm0, %v7438_v1 }
  0x92   : > { %4287 = vmatmul.mubr.bf16.gmra.mrb[44].mxu0 %v4761_v20 }
  0x93   : > { %4290 = vmatprep.mubr.msk.bf16.mxu0 %vm4830_vm0, %v7438_v1 }
  0x9a   : > { %4291 = vmatmul.mubr.bf16.gmra.mrb[48].mxu0 %v4762_v21 }
  0x9b   : > { %4294 = vmatprep.mubr.msk.bf16.mxu0 %vm4830_vm0, %v7438_v1 }
  0xa2   : > { %4295 = vmatmul.mubr.bf16.gmra.mrb[52].mxu0 %v4763_v24 }
  0xa3   : > { %4298 = vmatprep.mubr.msk.bf16.mxu0 %vm4830_vm0, %v7438_v1 }
  0xaa   : > { %4299 = vmatmul.mubr.bf16.gmra.mrb[56].mxu0 %v4764_v25 }
  0xab   : > { %4304 = vmatprep.mubr.msk.bf16.mxu0 %vm4830_vm0, %v7438_v1 }
 0x10d   : > { %v648_v26 = vpop.f32.mrb[0].mxu0 }
 0x10e   : > { %v4244_v27 = vpop.f32.mrb[1].mxu0  ;;  %v5066_v32 = vadd.f32 %v5060_v30, %v648_v26 }
 0x10f   : > { %v651_v28 = vpop.f32.mrb[2].mxu0 }
 0x110   : > { %v4245_v29 = vpop.f32.mrb[3].mxu0  ;;  %v5063_v31 = vadd.f32 %v5060_v30, %v651_v28  ;;  %v7446_v38 = vmax.f32 %v5066_v32, 0.0 }
 0x112   : > { %v7447_v34 = vmax.f32 %v5063_v31, 0.0 }
 0x114   : > { %v5080_v41 = vpack.c.bf16 %v7447_v34, %v7446_v38 }
 0x115   : > { %v656_v33 = vpop.f32.mrb[4].mxu0 }
 0x116   : > { %v5070_v35 = vadd.f32 %v5060_v30, %v656_v33  ;;  %v4248_v36 = vpop.f32.mrb[5].mxu0  ;;  %v831_v47 = vrot.slane %v5080_v41, 1  ;;  %v1265_v10 = vrot.slane %v5080_v41, 2 }
 0x117   : > { %v659_v37 = vpop.f32.mrb[6].mxu0 }
 0x118   : > { %v5074_v39 = vadd.f32 %v5060_v30, %v659_v37  ;;  %v4249_v40 = vpop.f32.mrb[7].mxu0  ;;  %v7445_v42 = vmax.f32 %v5070_v35, 0.0 }
 0x11a   : > { %v7444_v43 = vmax.f32 %v5074_v39, 0.0 }
 0x11c   : > { %v5088_v44 = vpack.c.bf16 %v7444_v43, %v7445_v42 }
 0x11d   : > { %v664_v46 = vpop.f32.mrb[8].mxu0 }
 0x11e   : > { %v832_v48 = vrot.slane %v5088_v44, 1  ;;  %v5096_v49 = vadd.f32 %v5060_v30, %v664_v46  ;;  %v4252_v50 = vpop.f32.mrb[9].mxu0  ;;  %v1266_v6 = vrot.slane %v5088_v44, 2 }
 0x11f   : > { %v667_v51 = vpop.f32.mrb[10].mxu0 }
 0x120   : > { %v5100_v53 = vadd.f32 %v5060_v30, %v667_v51  ;;  %v4253_v54 = vpop.f32.mrb[11].mxu0  ;;  %v833_v55 = vsel %vm830_vm2, %v831_v47, %v832_v48  ;;  %v7443_v56 = vmax.f32 %v5096_v49, 0.0  ;;  %v1267_v19 = vsel %vm1264_vm4, %v1265_v10, %v1266_v6 }
 0x121   : > { %4305 = vmatmul.mubr.msk.bf16.vlgmr.msra.gmra.mrb[60].mxu0 %vm860_vm3, %v833_v55 }
 0x122   : > { %v7442_v57 = vmax.f32 %v5100_v53, 0.0  ;;  %4308 = vmatprep.mubr.msk.bf16.mxu0 %vm4830_vm0, %v7438_v1  ;;  %4427 = vmatpush3.bf16.msra.mxu0 %v1340_v52 }
 0x123   : > { %4578 = vmatprep.subr.bf16.mxu0 %v7438_v1 }
 0x124   : > { %v5113_v58 = vpack.c.bf16 %v7442_v57, %v7443_v56 }
 0x125   : > { %v672_v59 = vpop.f32.mrb[12].mxu0 }
 0x126   : > { %v834_v60 = vrot.slane %v5113_v58, 1  ;;  %v5117_v61 = vadd.f32 %v5060_v30, %v672_v59  ;;  %v4256_v62 = vpop.f32.mrb[13].mxu0  ;;  %v1268_v22 = vrot.slane %v5113_v58, 2 }
 0x127   : > { %v675_v63 = vpop.f32.mrb[14].mxu0 }
 0x128   : > { %v5120_v0 = vadd.f32 %v5060_v30, %v675_v63  ;;  %v4257_v2 = vpop.f32.mrb[15].mxu0  ;;  %v835_v3 = vsel %vm830_vm2, %v832_v48, %v834_v60  ;;  %v7435_v4 = vmax.f32 %v5117_v61, 0.0  ;;  %v1269_v37 = vsel %vm1264_vm4, %v1266_v6, %v1268_v22 }
 0x129   : > { %4309 = vmatmul.mubr.msk.bf16.gmra.mrb[64].mxu0 %vm860_vm3, %v835_v3 }
 0x12a   : > { %v7434_v5 = vmax.f32 %v5120_v0, 0.0  ;;  %4428 = vmatprep.mubr.msk.bf16.mxu0 %vm4830_vm0, %v7438_v1 }
 0x12c   : > { %v5133_v7 = vpack.c.bf16 %v7434_v5, %v7435_v4 }
 0x12d   : > { %v680_v9 = vpop.f32.mrb[16].mxu0 }
 0x12e   : > { %v836_v11 = vrot.slane %v5133_v7, 1  ;;  %v5141_v12 = vadd.f32 %v5060_v30, %v680_v9  ;;  %v4260_v13 = vpop.f32.mrb[17].mxu0  ;;  %v1270_v46 = vrot.slane %v5133_v7, 2 }
 0x12f   : > { %v683_v14 = vpop.f32.mrb[18].mxu0 }
 0x130   : > { %v5145_v16 = vadd.f32 %v5060_v30, %v683_v14  ;;  %v4261_v17 = vpop.f32.mrb[19].mxu0  ;;  %v837_v18 = vsel %vm830_vm2, %v834_v60, %v836_v11  ;;  %v7433_v20 = vmax.f32 %v5141_v12, 0.0  ;;  %v1271_v62 = vsel %vm1264_vm4, %v1268_v22, %v1270_v46 }
 0x131   : > { %4313 = vmatmul.mubr.msk.bf16.vlgmr.msra.gmra.mrb[0].mxu1 %vm860_vm3, %v837_v18  ;;  %4429 = vmatmul.mubr.msk.bf16.vlgmr.msra.gmra.mrb[68].mxu0 %vm860_vm3, %v1267_v19 }
 0x132   : > { %v7430_v21 = vmax.f32 %v5145_v16, 0.0  ;;  %4365 = vmatpush3.bf16.msra.mxu1 %v1108_v15  ;;  %4316 = vmatprep.mubr.msk.bf16.mxu1 %vm4830_vm0, %v7438_v1 }
 0x133   : > { %4432 = vmatprep.mubr.msk.bf16.mxu0 %vm4830_vm0, %v7438_v1 }
 0x134   : > { %v5162_v23 = vpack.c.bf16 %v7430_v21, %v7433_v20 }
 0x135   : > { %v688_v24 = vpop.f32.mrb[20].mxu0 }
 0x136   : > { %v838_v25 = vrot.slane %v5162_v23, 1  ;;  %v5166_v26 = vadd.f32 %v5060_v30, %v688_v24  ;;  %v4264_v27 = vpop.f32.mrb[21].mxu0  ;;  %v1272_v3 = vrot.slane %v5162_v23, 2 }
 0x137   : > { %v691_v28 = vpop.f32.mrb[22].mxu0 }
 0x138   : > { %v5169_v29 = vadd.f32 %v5060_v30, %v691_v28  ;;  %v4265_v33 = vpop.f32.mrb[23].mxu0  ;;  %v839_v36 = vsel %vm830_vm2, %v836_v11, %v838_v25  ;;  %v7429_v40 = vmax.f32 %v5166_v26, 0.0  ;;  %v1273_v18 = vsel %vm1264_vm4, %v1270_v46, %v1272_v3 }
 0x139   : > { %4317 = vmatmul.mubr.msk.bf16.gmra.mrb[4].mxu1 %vm860_vm3, %v839_v36  ;;  %4433 = vmatmul.mubr.msk.bf16.gmra.mrb[72].mxu0 %vm860_vm3, %v1269_v37 }
 0x13a   : > { %v7428_v45 = vmax.f32 %v5169_v29, 0.0  ;;  %4320 = vmatprep.mubr.msk.bf16.mxu1 %vm4830_vm0, %v7438_v1  ;;  %4436 = vmatprep.mubr.msk.bf16.mxu0 %vm4830_vm0, %v7438_v1 }
 0x13c   : > { %v5186_v47 = vpack.c.bf16 %v7428_v45, %v7429_v40 }
 0x13d   : > { %v696_v48 = vpop.f32.mrb[24].mxu0 }
 0x13e   : > { %v840_v50 = vrot.slane %v5186_v47, 1  ;;  %v5190_v51 = vadd.f32 %v5060_v30, %v696_v48  ;;  %v4268_v52 = vpop.f32.mrb[25].mxu0  ;;  %v1274_v24 = vrot.slane %v5186_v47, 2 }
 0x13f   : > { %v699_v54 = vpop.f32.mrb[26].mxu0 }
 0x140   : > { %v5193_v55 = vadd.f32 %v5060_v30, %v699_v54  ;;  %v4269_v59 = vpop.f32.mrb[27].mxu0  ;;  %v841_v60 = vsel %vm830_vm2, %v838_v25, %v840_v50  ;;  %v7425_v63 = vmax.f32 %v5190_v51, 0.0  ;;  %v1275_v52 = vsel %vm1264_vm4, %v1272_v3, %v1274_v24 }
 0x141   : > { %4321 = vmatmul.mubr.msk.bf16.gmra.mrb[8].mxu1 %vm860_vm3, %v841_v60  ;;  %4437 = vmatmul.mubr.msk.bf16.gmra.mrb[76].mxu0 %vm860_vm3, %v1271_v62 }
 0x142   : > { %v7424_v2 = vmax.f32 %v5193_v55, 0.0  ;;  %4324 = vmatprep.mubr.msk.bf16.mxu1 %vm4830_vm0, %v7438_v1  ;;  %4440 = vmatprep.mubr.msk.bf16.mxu0 %vm4830_vm0, %v7438_v1 }
 0x144   : > { %v5210_v6 = vpack.c.bf16 %v7424_v2, %v7425_v63 }
 0x145   : > { %v704_v8 = vpop.f32.mrb[28].mxu0 }
 0x146   : > { %v842_v9 = vrot.slane %v5210_v6, 1  ;;  %v5214_v10 = vadd.f32 %v5060_v30, %v704_v8  ;;  %v4272_v11 = vpop.f32.mrb[29].mxu0  ;;  %v1276_v60 = vrot.slane %v5210_v6, 2 }
 0x147   : > { %v707_v13 = vpop.f32.mrb[30].mxu0 }
 0x148   : > { %7479 = vst [vmem:[#allocation7_spill] sm:$0xff] %v5214_v10  ;;  %v5217_v14 = vadd.f32 %v5060_v30, %v707_v13  ;;  %v4273_v15 = vpop.f32.mrb[31].mxu0  ;;  %v843_v17 = vsel %vm830_vm2, %v840_v50, %v842_v9  ;;  %v7423_v19 = vmax.f32 %v5214_v10, 0.0 }
 0x149   : > { %4325 = vmatmul.mubr.msk.bf16.gmra.mrb[12].mxu1 %vm860_vm3, %v843_v17  ;;  %4441 = vmatmul.mubr.msk.bf16.gmra.mrb[80].mxu0 %vm860_vm3, %v1273_v18 }
 0x14a   : > { %7480 = vst [vmem:[#allocation8_spill] sm:$0xff] %v5217_v14  ;;  %v7420_v22 = vmax.f32 %v5217_v14, 0.0  ;;  %4328 = vmatprep.mubr.msk.bf16.mxu1 %vm4830_vm0, %v7438_v1  ;;  %4444 = vmatprep.mubr.msk.bf16.mxu0 %vm4830_vm0, %v7438_v1 }
 0x14c   : > { %v5234_v25 = vpack.c.bf16 %v7420_v22, %v7423_v19 }
 0x14d   : > { %v712_v27 = vpop.f32.mrb[32].mxu0 }
 0x14e   : > { %v844_v28 = vrot.slane %v5234_v25, 1  ;;  %v5238_v33 = vadd.f32 %v5060_v30, %v712_v27  ;;  %v4276_v36 = vpop.f32.mrb[33].mxu0  ;;  %v1277_v27 = vsel %vm1264_vm4, %v1274_v24, %v1276_v60 }
 0x14f   : > { %v715_v37 = vpop.f32.mrb[34].mxu0 }
 0x150   : > { %7481 = vst [vmem:[#allocation9_spill] sm:$0xff] %v5238_v33  ;;  %v5241_v46 = vadd.f32 %v5060_v30, %v715_v37  ;;  %v4277_v48 = vpop.f32.mrb[35].mxu0  ;;  %v845_v50 = vsel %vm830_vm2, %v842_v9, %v844_v28  ;;  %v7419_v54 = vmax.f32 %v5238_v33, 0.0 }
 0x151   : > { %4329 = vmatmul.mubr.msk.bf16.gmra.mrb[16].mxu1 %vm860_vm3, %v845_v50  ;;  %4445 = vmatmul.mubr.msk.bf16.gmra.mrb[84].mxu0 %vm860_vm3, %v1275_v52  ;;  %v1278_v48 = vrot.slane %v5234_v25, 2 }
 0x152   : > { %7482 = vst [vmem:[#allocation10_spill] sm:$0xff] %v5241_v46  ;;  %v7418_v59 = vmax.f32 %v5241_v46, 0.0  ;;  %4332 = vmatprep.mubr.msk.bf16.mxu1 %vm4830_vm0, %v7438_v1  ;;  %4448 = vmatprep.mubr.msk.bf16.mxu0 %vm4830_vm0, %v7438_v1 }
 0x154   : > { %v5258_v62 = vpack.c.bf16 %v7418_v59, %v7419_v54 }
 0x155   : > { %v720_v3 = vpop.f32.mrb[36].mxu0 }
 0x156   : > { %v846_v8 = vrot.slane %v5258_v62, 1  ;;  %v5262_v9 = vadd.f32 %v5060_v30, %v720_v3  ;;  %v4280_v11 = vpop.f32.mrb[37].mxu0 }
 0x157   : > { %v723_v13 = vpop.f32.mrb[38].mxu0 }
 0x158   : > { %7483 = vst [vmem:[#allocation11_spill] sm:$0xff] %v5262_v9  ;;  %v5265_v15 = vadd.f32 %v5060_v30, %v723_v13  ;;  %v4281_v17 = vpop.f32.mrb[39].mxu0  ;;  %v847_v18 = vsel %vm830_vm2, %v844_v28, %v846_v8  ;;  %v7417_v36 = vmax.f32 %v5262_v9, 0.0 }
 0x159   : > { %4333 = vmatmul.mubr.msk.bf16.gmra.mrb[20].mxu1 %vm860_vm3, %v847_v18  ;;  %4449 = vmatmul.mubr.msk.bf16.gmra.mrb[88].mxu0 %vm860_vm3, %v1277_v27  ;;  %v1279_v27 = vsel %vm1264_vm4, %v1276_v60, %v1278_v48 }
 0x15a   : > { %7484 = vst [vmem:[#allocation12_spill] sm:$0xff] %v5265_v15  ;;  %v7416_v37 = vmax.f32 %v5265_v15, 0.0  ;;  %4336 = vmatprep.mubr.msk.bf16.mxu1 %vm4830_vm0, %v7438_v1  ;;  %4452 = vmatprep.mubr.msk.bf16.mxu0 %vm4830_vm0, %v7438_v1 }
 0x15c   : > { %v5282_v24 = vpack.c.bf16 %v7416_v37, %v7417_v36 }
 0x15d   : > { %v728_v28 = vpop.f32.mrb[40].mxu0 }
 0x15e   : > { %v848_v50 = vrot.slane %v5282_v24, 1  ;;  %v5286_v52 = vadd.f32 %v5060_v30, %v728_v28  ;;  %v4284_v3 = vpop.f32.mrb[41].mxu0  ;;  %v1280_v28 = vrot.slane %v5258_v62, 2 }
 0x15f   : > { %v731_v11 = vpop.f32.mrb[42].mxu0 }
 0x160   : > { %7485 = vst [vmem:[#allocation13_spill] sm:$0xff] %v5286_v52  ;;  %v5289_v13 = vadd.f32 %v5060_v30, %v731_v11  ;;  %v4285_v17 = vpop.f32.mrb[43].mxu0  ;;  %v849_v18 = vsel %vm830_vm2, %v846_v8, %v848_v50  ;;  %v7422_v37 = vmax.f32 %v5286_v52, 0.0  ;;  %v1281_v22 = vsel %vm1264_vm4, %v1278_v48, %v1280_v28 }
 0x161   : > { %4337 = vmatmul.mubr.msk.bf16.gmra.mrb[24].mxu1 %vm860_vm3, %v849_v18  ;;  %4453 = vmatmul.mubr.msk.bf16.gmra.mrb[92].mxu0 %vm860_vm3, %v1279_v27 }
 0x162   : > { %7486 = vst [vmem:[#allocation14_spill] sm:$0xff] %v5289_v13  ;;  %v7421_v36 = vmax.f32 %v5289_v13, 0.0  ;;  %4340 = vmatprep.mubr.msk.bf16.mxu1 %vm4830_vm0, %v7438_v1  ;;  %4456 = vmatprep.mubr.msk.bf16.mxu0 %vm4830_vm0, %v7438_v1 }
 0x164   : > { %v5306_v60 = vpack.c.bf16 %v7421_v36, %v7422_v37 }
 0x165   : > { %v736_v8 = vpop.f32.mrb[44].mxu0 }
 0x166   : > { %v850_v3 = vrot.slane %v5306_v60, 1  ;;  %v5310_v11 = vadd.f32 %v5060_v30, %v736_v8  ;;  %v4288_v17 = vpop.f32.mrb[45].mxu0 }
 0x167   : > { %v739_v18 = vpop.f32.mrb[46].mxu0 }
 0x168   : > { %7487 = vst [vmem:[#allocation15_spill] sm:$0xff] %v5310_v11  ;;  %v5313_v27 = vadd.f32 %v5060_v30, %v739_v18  ;;  %v4289_v59 = vpop.f32.mrb[47].mxu0  ;;  %v851_v54 = vsel %vm830_vm2, %v848_v50, %v850_v3  ;;  %v7427_v36 = vmax.f32 %v5310_v11, 0.0 }
 0x169   : > { %4341 = vmatmul.mubr.msk.bf16.gmra.mrb[28].mxu1 %vm860_vm3, %v851_v54  ;;  %4457 = vmatmul.mubr.msk.bf16.gmra.mrb[96].mxu0 %vm860_vm3, %v1281_v22  ;;  %v1282_v59 = vrot.slane %v5282_v24, 2 }
 0x16a   : > { %7488 = vst [vmem:[#allocation16_spill] sm:$0xff] %v5313_v27  ;;  %v7426_v37 = vmax.f32 %v5313_v27, 0.0  ;;  %4344 = vmatprep.mubr.msk.bf16.mxu1 %vm4830_vm0, %v7438_v1  ;;  %4460 = vmatprep.mubr.msk.bf16.mxu0 %vm4830_vm0, %v7438_v1 }
 0x16b   : > { %v1283_v63 = vsel %vm1264_vm4, %v1280_v28, %v1282_v59 }
 0x16c   : > { %v5330_v48 = vpack.c.bf16 %v7426_v37, %v7427_v36 }
 0x16d   : > { %v744_v54 = vpop.f32.mrb[48].mxu0 }
 0x16e   : > { %v852_v22 = vrot.slane %v5330_v48, 1  ;;  %v5334_v50 = vadd.f32 %v5060_v30, %v744_v54  ;;  %v4292_v8 = vpop.f32.mrb[49].mxu0 }
 0x16f   : > { %v747_v17 = vpop.f32.mrb[50].mxu0 }
 0x170   : > { %7489 = vst [vmem:[#allocation17_spill] sm:$0xff] %v5334_v50  ;;  %v5337_v18 = vadd.f32 %v5060_v30, %v747_v17  ;;  %v4293_v19 = vpop.f32.mrb[51].mxu0  ;;  %v853_v2 = vsel %vm830_vm2, %v850_v3, %v852_v22  ;;  %v7432_v37 = vmax.f32 %v5334_v50, 0.0 }
 0x171   : > { %4345 = vmatmul.mubr.msk.bf16.gmra.mrb[32].mxu1 %vm860_vm3, %v853_v2  ;;  %4461 = vmatmul.mubr.msk.bf16.gmra.mrb[100].mxu0 %vm860_vm3, %v1283_v63  ;;  %v1284_v19 = vrot.slane %v5306_v60, 2 }
 0x172   : > { %7490 = vst [vmem:[#allocation18_spill] sm:$0xff] %v5337_v18  ;;  %v7431_v36 = vmax.f32 %v5337_v18, 0.0  ;;  %4348 = vmatprep.mubr.msk.bf16.mxu1 %vm4830_vm0, %v7438_v1  ;;  %4464 = vmatprep.mubr.msk.bf16.mxu0 %vm4830_vm0, %v7438_v1 }
 0x173   : > { %v1285_v21 = vsel %vm1264_vm4, %v1282_v59, %v1284_v19 }
 0x174   : > { %v5354_v28 = vpack.c.bf16 %v7431_v36, %v7432_v37 }
 0x175   : > { %v752_v2 = vpop.f32.mrb[52].mxu0 }
 0x176   : > { %v854_v63 = vrot.slane %v5354_v28, 1  ;;  %v5358_v3 = vadd.f32 %v5060_v30, %v752_v2  ;;  %v4296_v54 = vpop.f32.mrb[53].mxu0 }
 0x177   : > { %v755_v8 = vpop.f32.mrb[54].mxu0 }
 0x178   : > { %7491 = vst [vmem:[#allocation19_spill] sm:$0xff] %v5358_v3  ;;  %v5361_v17 = vadd.f32 %v5060_v30, %v755_v8  ;;  %v4297_v45 = vpop.f32.mrb[55].mxu0  ;;  %v855_v40 = vsel %vm830_vm2, %v852_v22, %v854_v63  ;;  %v7437_v36 = vmax.f32 %v5358_v3, 0.0 }
 0x179   : > { %4349 = vmatmul.mubr.msk.bf16.gmra.mrb[36].mxu1 %vm860_vm3, %v855_v40  ;;  %4465 = vmatmul.mubr.msk.bf16.gmra.mrb[104].mxu0 %vm860_vm3, %v1285_v21  ;;  %v1286_v45 = vrot.slane %v5330_v48, 2 }
 0x17a   : > { %7492 = vst [vmem:[#allocation20_spill] sm:$0xff] %v5361_v17  ;;  %v7436_v37 = vmax.f32 %v5361_v17, 0.0  ;;  %4352 = vmatprep.mubr.msk.bf16.mxu1 %vm4830_vm0, %v7438_v1  ;;  %4468 = vmatprep.mubr.msk.bf16.mxu0 %vm4830_vm0, %v7438_v1 }
 0x17b   : > { %v1287_v4 = vsel %vm1264_vm4, %v1284_v19, %v1286_v45 }
 0x17c   : > { %v5378_v59 = vpack.c.bf16 %v7436_v37, %v7437_v36 }
 0x17d   : > { %v760_v40 = vpop.f32.mrb[56].mxu0 }
 0x17e   : > { %v856_v21 = vrot.slane %v5378_v59, 1  ;;  %v5382_v22 = vadd.f32 %v5060_v30, %v760_v40  ;;  %v4300_v2 = vpop.f32.mrb[57].mxu0 }
 0x17f   : > { %v763_v54 = vpop.f32.mrb[58].mxu0 }
 0x180   : > { %7493 = vst [vmem:[#allocation21_spill] sm:$0xff] %v5382_v22  ;;  %v5385_v8 = vadd.f32 %v5060_v30, %v763_v54  ;;  %v4301_v20 = vpop.f32.mrb[59].mxu0  ;;  %v857_v5 = vsel %vm830_vm2, %v854_v63, %v856_v21  ;;  %v7440_v37 = vmax.f32 %v5382_v22, 0.0  ;;  %v1288_v30 = vrot.slane %v5354_v28, 2 }
 0x181   : > { %4353 = vmatmul.mubr.msk.bf16.gmra.mrb[40].mxu1 %vm860_vm3, %v857_v5  ;;  %4469 = vmatmul.mubr.msk.bf16.gmra.mrb[108].mxu0 %vm860_vm3, %v1287_v4  ;;  %v1290_v63 = vrot.slane %v5378_v59, 2 }
 0x182   : > { %7494 = vst [vmem:[#allocation22_spill] sm:$0xff] %v5385_v8  ;;  %v7441_v36 = vmax.f32 %v5385_v8, 0.0  ;;  %4356 = vmatprep.mubr.msk.bf16.mxu1 %vm4830_vm0, %v7438_v1  ;;  %4472 = vmatprep.mubr.msk.bf16.mxu0 %vm4830_vm0, %v7438_v1  ;;  %v1289_v19 = vsel %vm1264_vm4, %v1286_v45, %v1288_v30 }
 0x183   : > { %v1291_v40 = vsel %vm1264_vm4, %v1288_v30, %v1290_v63 }
 0x184   : > { %v5402_v20 = vpack.c.bf16 %v7441_v36, %v7440_v37 }
 0x186   : > { %v858_v4 = vrot.slane %v5402_v20, 1  ;;  %v1292_v45 = vrot.slane %v5402_v20, 2 }
 0x188   : > { %v859_v5 = vsel %vm830_vm2, %v856_v21, %v858_v4  ;;  %v1293_v21 = vsel %vm1264_vm4, %v1290_v63, %v1292_v45 }
 0x189   : > { %4357 = vmatmul.mubr.msk.bf16.gmra.mrb[44].mxu1 %vm860_vm3, %v859_v5  ;;  %4473 = vmatmul.mubr.msk.bf16.gmra.mrb[112].mxu0 %vm860_vm3, %v1289_v19 }
 0x18a   : > { %4360 = vmatprep.mubr.msk.bf16.mxu1 %vm4830_vm0, %v7438_v1  ;;  %4476 = vmatprep.mubr.msk.bf16.mxu0 %vm4830_vm0, %v7438_v1 }
 0x191   : > { %4361 = vmatmul.mubr.msk.bf16.gmra.mrb[48].mxu1 %vm860_vm3, %v858_v4  ;;  %4477 = vmatmul.mubr.msk.bf16.gmra.mrb[116].mxu0 %vm860_vm3, %v1291_v40 }
 0x192   : > { %4366 = vmatprep.mubr.msk.bf16.mxu1 %vm4830_vm0, %v7438_v1  ;;  %4480 = vmatprep.mubr.msk.bf16.mxu0 %vm4830_vm0, %v7438_v1 }
 0x199   : > { %4367 = vmatmul.mubr.msk.bf16.vlgmr.msra.gmra.mrb[52].mxu1 %vm860_vm3, %v5080_v41  ;;  %4481 = vmatmul.mubr.msk.bf16.gmra.mrb[120].mxu0 %vm860_vm3, %v1293_v21  ;;  %v4035_v41 = vld [vmem:[%s7407_s4 + $0x4] sm:$0xf] }
 0x19a   : > { %4370 = vmatprep.mubr.msk.bf16.mxu1 %vm4830_vm0, %v7438_v1  ;;  %4484 = vmatprep.mubr.msk.bf16.mxu0 %vm4830_vm0, %v7438_v1 }
 0x19b   : > { %4690 = vmatprep.subr.msk.bf16.mxu1 %vm906_vm1, %v4035_v41 }
 0x1a1   : > { %4371 = vmatmul.mubr.msk.bf16.gmra.mrb[56].mxu1 %vm860_vm3, %v5088_v44  ;;  %4485 = vmatmul.mubr.msk.bf16.gmra.mrb[124].mxu0 %vm860_vm3, %v1292_v45  ;;  %v1841_v44 = vsel %vm906_vm1, %v4035_v41, 0 }
 0x1a2   : > { %4374 = vmatprep.mubr.msk.bf16.mxu1 %vm4830_vm0, %v7438_v1  ;;  %4580 = vmatprep.mubr.msk.bf16.mxu0 %vm4830_vm0, %v7438_v1 }
 0x1a3   : > { %4489 = vmatpush3.bf16.msra.mxu1 %v1841_v44 }
 0x1a9   : > { %4375 = vmatmul.mubr.msk.bf16.gmra.mrb[60].mxu1 %vm860_vm3, %v5113_v58 }
 0x1aa   : > { %4378 = vmatprep.mubr.msk.bf16.mxu1 %vm4830_vm0, %v7438_v1 }
 0x1b1   : > { %4379 = vmatmul.mubr.msk.bf16.gmra.mrb[64].mxu1 %vm860_vm3, %v5133_v7 }
 0x1b2   : > { %4382 = vmatprep.mubr.msk.bf16.mxu1 %vm4830_vm0, %v7438_v1 }
 0x1b9   : > { %4383 = vmatmul.mubr.msk.bf16.gmra.mrb[68].mxu1 %vm860_vm3, %v5162_v23 }
 0x1ba   : > { %4386 = vmatprep.mubr.msk.bf16.mxu1 %vm4830_vm0, %v7438_v1 }
 0x1c1   : > { %4387 = vmatmul.mubr.msk.bf16.gmra.mrb[72].mxu1 %vm860_vm3, %v5186_v47 }
 0x1c2   : > { %4390 = vmatprep.mubr.msk.bf16.mxu1 %vm4830_vm0, %v7438_v1 }
 0x1c9   : > { %4391 = vmatmul.mubr.msk.bf16.gmra.mrb[76].mxu1 %vm860_vm3, %v5210_v6 }
 0x1ca   : > { %4394 = vmatprep.mubr.msk.bf16.mxu1 %vm4830_vm0, %v7438_v1 }
 0x1d1   : > { %4395 = vmatmul.mubr.msk.bf16.gmra.mrb[80].mxu1 %vm860_vm3, %v5234_v25 }
 0x1d2   : > { %4398 = vmatprep.mubr.msk.bf16.mxu1 %vm4830_vm0, %v7438_v1 }
 0x1d9   : > { %4399 = vmatmul.mubr.msk.bf16.gmra.mrb[84].mxu1 %vm860_vm3, %v5258_v62 }
 0x1da   : > { %4402 = vmatprep.mubr.msk.bf16.mxu1 %vm4830_vm0, %v7438_v1 }
 0x1e1   : > { %4403 = vmatmul.mubr.msk.bf16.gmra.mrb[88].mxu1 %vm860_vm3, %v5282_v24 }
 0x1e2   : > { %4406 = vmatprep.mubr.msk.bf16.mxu1 %vm4830_vm0, %v7438_v1 }
 0x1e9   : > { %4407 = vmatmul.mubr.msk.bf16.gmra.mrb[92].mxu1 %vm860_vm3, %v5306_v60 }
 0x1ea   : > { %4410 = vmatprep.mubr.msk.bf16.mxu1 %vm4830_vm0, %v7438_v1 }
 0x1f1   : > { %4411 = vmatmul.mubr.msk.bf16.gmra.mrb[96].mxu1 %vm860_vm3, %v5330_v48 }
 0x1f2   : > { %4414 = vmatprep.mubr.msk.bf16.mxu1 %vm4830_vm0, %v7438_v1 }
 0x1f4   : > { %v5482_v58 = vpop.f32.mrb[60].mxu0 }
 0x1f5   : > { %v4306_v7 = vpop.f32.mrb[61].mxu0 }
 0x1f6   : > { %v5484_v23 = vpop.f32.mrb[62].mxu0 }
 0x1f7   : > { %v4307_v47 = vpop.f32.mrb[63].mxu0 }
 0x1f9   : > { %4415 = vmatmul.mubr.msk.bf16.gmra.mrb[100].mxu1 %vm860_vm3, %v5354_v28 }
 0x1fa   : > { %4418 = vmatprep.mubr.msk.bf16.mxu1 %vm4830_vm0, %v7438_v1 }
 0x1fc   : > { %v5490_v6 = vpop.f32.mrb[64].mxu0 }
 0x1fd   : > { %v4310_v25 = vpop.f32.mrb[65].mxu0 }
 0x1fe   : > { %v5492_v62 = vpop.f32.mrb[66].mxu0 }
 0x1ff   : > { %v4311_v24 = vpop.f32.mrb[67].mxu0 }
 0x201   : > { %4419 = vmatmul.mubr.msk.bf16.gmra.mrb[104].mxu1 %vm860_vm3, %v5378_v59 }
 0x202   : > { %4422 = vmatprep.mubr.msk.bf16.mxu1 %vm4830_vm0, %v7438_v1 }
 0x204   : > { %v5498_v60 = vpop.f32.mrb[0].mxu1  ;;  %v5500_v48 = vpop.f32.mrb[68].mxu0 }
 0x205   : > { %v4314_v28 = vpop.f32.mrb[1].mxu1  ;;  %v4430_v2 = vpop.f32.mrb[69].mxu0 }
 0x206   : > { %v5502_v54 = vpop.f32.mrb[2].mxu1  ;;  %v5504_v30 = vpop.f32.mrb[70].mxu0 }
 0x207   : > { %v4315_v4 = vpop.f32.mrb[3].mxu1  ;;  %v4431_v5 = vpop.f32.mrb[71].mxu0 }
 0x209   : > { %4423 = vmatmul.mubr.msk.bf16.gmra.mrb[108].mxu1 %vm860_vm3, %v5402_v20 }
 0x20c   : > { %v5508_v19 = vpop.f32.mrb[4].mxu1  ;;  %v5510_v59 = vpop.f32.mrb[72].mxu0 }
 0x20d   : > { %v4318_v63 = vpop.f32.mrb[5].mxu1  ;;  %v4434_v40 = vpop.f32.mrb[73].mxu0 }
 0x20e   : > { %v5512_v45 = vpop.f32.mrb[6].mxu1  ;;  %v5514_v21 = vpop.f32.mrb[74].mxu0 }
 0x20f   : > { %v4319_v41 = vpop.f32.mrb[7].mxu1  ;;  %v4435_v44 = vpop.f32.mrb[75].mxu0 }
 0x214   : > { %v5516_v7 = vpop.f32.mrb[8].mxu1  ;;  %v5518_v47 = vpop.f32.mrb[76].mxu0 }
 0x215   : > { %v4322_v25 = vpop.f32.mrb[9].mxu1  ;;  %v4438_v24 = vpop.f32.mrb[77].mxu0 }
 0x216   : > { %v5520_v28 = vpop.f32.mrb[10].mxu1  ;;  %v5522_v20 = vpop.f32.mrb[78].mxu0 }
 0x217   : > { %v4323_v2 = vpop.f32.mrb[11].mxu1  ;;  %v4439_v4 = vpop.f32.mrb[79].mxu0 }
 0x21c   : > { %v5524_v5 = vpop.f32.mrb[12].mxu1  ;;  %v5526_v63 = vpop.f32.mrb[80].mxu0 }
 0x21d   : > { %v4326_v40 = vpop.f32.mrb[13].mxu1  ;;  %v4442_v1 = vpop.f32.mrb[81].mxu0 }
 0x21e   : > { %v5528_v41 = vpop.f32.mrb[14].mxu1  ;;  %v5530_v44 = vpop.f32.mrb[82].mxu0 }
 0x21f   : > { %v4327_v37 = vpop.f32.mrb[15].mxu1  ;;  %v4443_v36 = vpop.f32.mrb[83].mxu0 }
 0x224   : > { %v5532_v25 = vpop.f32.mrb[16].mxu1  ;;  %v5534_v24 = vpop.f32.mrb[84].mxu0 }
 0x225   : > { %v4330_v57 = vpop.f32.mrb[17].mxu1  ;;  %v4446_v56 = vpop.f32.mrb[85].mxu0 }
 0x226   : > { %v5536_v2 = vpop.f32.mrb[18].mxu1  ;;  %v5538_v4 = vpop.f32.mrb[86].mxu0 }
 0x227   : > { %v4331_v43 = vpop.f32.mrb[19].mxu1  ;;  %v4447_v42 = vpop.f32.mrb[87].mxu0 }
 0x22c   : > { %v5540_v40 = vpop.f32.mrb[20].mxu1  ;;  %v5542_v1 = vpop.f32.mrb[88].mxu0 }
 0x22d   : > { %v4334_v38 = vpop.f32.mrb[21].mxu1  ;;  %v4450_v34 = vpop.f32.mrb[89].mxu0 }
 0x22e   : > { %v5544_v37 = vpop.f32.mrb[22].mxu1  ;;  %v5546_v36 = vpop.f32.mrb[90].mxu0 }
 0x22f   : > { %v4335_v22 = vpop.f32.mrb[23].mxu1  ;;  %v4451_v8 = vpop.f32.mrb[91].mxu0 }
 0x234   : > { %v5548_v57 = vpop.f32.mrb[24].mxu1  ;;  %v5550_v56 = vpop.f32.mrb[92].mxu0 }
 0x235   : > { %v4338_v17 = vpop.f32.mrb[25].mxu1  ;;  %v4454_v3 = vpop.f32.mrb[93].mxu0 }
 0x236   : > { %v5552_v43 = vpop.f32.mrb[26].mxu1  ;;  %v5554_v42 = vpop.f32.mrb[94].mxu0 }
 0x237   : > { %7495 = vst [vmem:[#allocation23_spill] sm:$0xff] %v5552_v43  ;;  %v4339_v18 = vpop.f32.mrb[27].mxu1  ;;  %v4455_v50 = vpop.f32.mrb[95].mxu0 }
 0x23c   : > { %v5556_v38 = vpop.f32.mrb[28].mxu1  ;;  %v5558_v34 = vpop.f32.mrb[96].mxu0 }
 0x23d   : > { %7496 = vst [vmem:[#allocation24_spill] sm:$0xff] %v5556_v38  ;;  %v4342_v27 = vpop.f32.mrb[29].mxu1  ;;  %v4458_v11 = vpop.f32.mrb[97].mxu0 }
 0x23e   : > { %v5560_v22 = vpop.f32.mrb[30].mxu1  ;;  %v5562_v8 = vpop.f32.mrb[98].mxu0  ;;  %v5575_v11 = vld [vmem:[%s7407_s4] sm:$0xf] }
 0x23f   : > { %7497 = vst [vmem:[#allocation25_spill] sm:$0xff] %v5560_v22  ;;  %v4343_v13 = vpop.f32.mrb[31].mxu1  ;;  %v4459_v52 = vpop.f32.mrb[99].mxu0  ;;  %4691 = vmatprep.subr.msk.bf16.mxu1 %vm906_vm1, %v5575_v11 }
 0x244   : > { %v5564_v17 = vpop.f32.mrb[32].mxu1  ;;  %v5566_v3 = vpop.f32.mrb[100].mxu0 }
 0x245   : > { %7498 = vst [vmem:[#allocation26_spill] sm:$0xff] %v5564_v17  ;;  %7499 = vst [vmem:[#allocation27_spill] sm:$0xff] %v5566_v3  ;;  %v4346_v15 = vpop.f32.mrb[33].mxu1  ;;  %v4462_v9 = vpop.f32.mrb[101].mxu0 }
 0x246   : > { %v5568_v18 = vpop.f32.mrb[34].mxu1  ;;  %v5570_v50 = vpop.f32.mrb[102].mxu0 }
 0x247   : > { %7500 = vst [vmem:[#allocation28_spill] sm:$0xff] %v5568_v18  ;;  %7501 = vst [vmem:[#allocation29_spill] sm:$0xff] %v5570_v50  ;;  %v4347_v46 = vpop.f32.mrb[35].mxu1  ;;  %v4463_v33 = vpop.f32.mrb[103].mxu0 }
 0x24c   : > { %v5579_v52 = vpop.f32.mrb[36].mxu1  ;;  %v5581_v13 = vpop.f32.mrb[104].mxu0 }
 0x24d   : > { %7502 = vst [vmem:[#allocation30_spill] sm:$0xff] %v5579_v52  ;;  %7503 = vst [vmem:[#allocation31_spill] sm:$0xff] %v5581_v13  ;;  %v4350_v15 = vpop.f32.mrb[37].mxu1  ;;  %v4466_v9 = vpop.f32.mrb[105].mxu0 }
 0x24e   : > { %v5583_v27 = vpop.f32.mrb[38].mxu1  ;;  %v5585_v18 = vpop.f32.mrb[106].mxu0 }
 0x24f   : > { %7504 = vst [vmem:[#allocation32_spill] sm:$0xff] %v5583_v27  ;;  %7505 = vst [vmem:[#allocation33_spill] sm:$0xff] %v5585_v18  ;;  %v4351_v46 = vpop.f32.mrb[39].mxu1  ;;  %v4467_v33 = vpop.f32.mrb[107].mxu0 }
 0x254   : > { %v5587_v17 = vpop.f32.mrb[40].mxu1  ;;  %v5589_v22 = vpop.f32.mrb[108].mxu0 }
 0x255   : > { %7506 = vst [vmem:[#allocation34_spill] sm:$0xff] %v5587_v17  ;;  %7507 = vst [vmem:[#allocation35_spill] sm:$0xff] %v5589_v22  ;;  %v4354_v38 = vpop.f32.mrb[41].mxu1  ;;  %v4470_v14 = vpop.f32.mrb[109].mxu0 }
 0x256   : > { %v5591_v10 = vpop.f32.mrb[42].mxu1  ;;  %v5593_v50 = vpop.f32.mrb[110].mxu0 }
 0x257   : > { %7508 = vst [vmem:[#allocation36_spill] sm:$0xff] %v5591_v10  ;;  %7509 = vst [vmem:[#allocation37_spill] sm:$0xff] %v5593_v50  ;;  %v4355_v52 = vpop.f32.mrb[43].mxu1  ;;  %v4471_v13 = vpop.f32.mrb[111].mxu0 }
 0x25c   : > { %v5595_v15 = vpop.f32.mrb[44].mxu1  ;;  %v5597_v9 = vpop.f32.mrb[112].mxu0 }
 0x25d   : > { %7510 = vst [vmem:[#allocation38_spill] sm:$0xff] %v5595_v15  ;;  %7511 = vst [vmem:[#allocation39_spill] sm:$0xff] %v5597_v9  ;;  %v4358_v27 = vpop.f32.mrb[45].mxu1  ;;  %v4474_v18 = vpop.f32.mrb[113].mxu0 }
 0x25e   : > { %v5599_v46 = vpop.f32.mrb[46].mxu1  ;;  %v5601_v33 = vpop.f32.mrb[114].mxu0 }
 0x25f   : > { %7512 = vst [vmem:[#allocation40_spill] sm:$0xff] %v5599_v46  ;;  %7513 = vst [vmem:[#allocation41_spill] sm:$0xff] %v5601_v33  ;;  %v4359_v17 = vpop.f32.mrb[47].mxu1  ;;  %v4475_v22 = vpop.f32.mrb[115].mxu0 }
 0x260   : > { %v5615_v22 = vld [vmem:[%s7408_s5] ss:$0 sm:$0xff] }
 0x264   : > { %v5603_v38 = vpop.f32.mrb[48].mxu1  ;;  %v5605_v14 = vpop.f32.mrb[116].mxu0 }
 0x265   : > { %7514 = vst [vmem:[#allocation42_spill] sm:$0xff] %v5603_v38  ;;  %7515 = vst [vmem:[#allocation43_spill] sm:$0xff] %v5605_v14  ;;  %v4362_v10 = vpop.f32.mrb[49].mxu1  ;;  %v4478_v50 = vpop.f32.mrb[117].mxu0 }
 0x266   : > { %v1059_v52 = vpop.f32.mrb[50].mxu1  ;;  %v5607_v13 = vpop.f32.mrb[118].mxu0 }
 0x267   : > { %7516 = vst [vmem:[#allocation44_spill] sm:$0xff] %v5607_v13  ;;  %v4363_v15 = vpop.f32.mrb[51].mxu1  ;;  %v4479_v43 = vpop.f32.mrb[119].mxu0 }
 0x26c   : > { %v1144_v9 = vpop.f32.mrb[52].mxu1  ;;  %v5609_v27 = vpop.f32.mrb[120].mxu0 }
 0x26d   : > { %7517 = vst [vmem:[#allocation45_spill] sm:$0xff] %v5609_v27  ;;  %v1145_v18 = vadd.f32 %v1144_v9, %v5482_v58  ;;  %v4368_v46 = vpop.f32.mrb[53].mxu1  ;;  %v4482_v33 = vpop.f32.mrb[121].mxu0 }
 0x26e   : > { %v1147_v17 = vpop.f32.mrb[54].mxu1  ;;  %v5617_v10 = vpop.f32.mrb[122].mxu0 }
 0x26f   : > { %7518 = vst [vmem:[#allocation46_spill] sm:$0xff] %v5617_v10  ;;  %v1494_v50 = vadd.f32 %v5500_v48, %v1145_v18  ;;  %v1148_v15 = vadd.f32 %v1147_v17, %v5484_v23  ;;  %v4369_v43 = vpop.f32.mrb[55].mxu1  ;;  %v4483_v52 = vpop.f32.mrb[123].mxu0 }
 0x271   : > { %v1530_v38 = vadd.f32 %v5615_v22, %v1494_v50  ;;  %v1495_v58 = vadd.f32 %v5504_v30, %v1148_v15 }
 0x273   : > { %v1559_v9 = vmax.f32 %v1530_v38, 0.0  ;;  %v1531_v46 = vadd.f32 %v5615_v22, %v1495_v58 }
 0x274   : > { %v1152_v33 = vpop.f32.mrb[56].mxu1  ;;  %v5624_v27 = vpop.f32.mrb[124].mxu0 }
 0x275   : > { %v1560_v13 = vmax.f32 %v1531_v46, 0.0  ;;  %v1153_v14 = vadd.f32 %v1152_v33, %v5490_v6  ;;  %v4372_v10 = vpop.f32.mrb[57].mxu1  ;;  %v4486_v3 = vpop.f32.mrb[125].mxu0  ;;  %v1618_v18 = vrot.slane %v1559_v9, 6  ;;  %v7520_v33 = vmax.f32 %v5066_v32, 0.0 }
 0x276   : > { %v1155_v48 = vpop.f32.mrb[58].mxu1  ;;  %v1491_v23 = vpop.f32.mrb[126].mxu0  ;;  %v7519_v10 = vmax.f32 %v5063_v31, 0.0 }
 0x277   : > { %v1619_v17 = vrot.slane %v1560_v13, 6  ;;  %v1496_v50 = vadd.f32 %v5510_v59, %v1153_v14  ;;  %v1156_v30 = vadd.f32 %v1155_v48, %v5492_v62  ;;  %v4373_v38 = vpop.f32.mrb[59].mxu1  ;;  %v4487_v15 = vpop.f32.mrb[127].mxu0  ;;  %v5640_v48 = vadd.f32 %v1618_v18, %v7520_v33 }
 0x279   : > { %v1620_v43 = vsel %vm1617_vm5, %v1618_v18, %v1619_v17  ;;  %v1532_v52 = vadd.f32 %v5615_v22, %v1496_v50  ;;  %v1497_v58 = vadd.f32 %v5514_v21, %v1156_v30  ;;  %v7521_v18 = vmax.f32 %v5070_v35, 0.0 }
 0x27a   : > { %v5635_v46 = vadd.f32 %v1620_v43, %v7519_v10 }
 0x27b   : > { %v1561_v6 = vmax.f32 %v1532_v52, 0.0  ;;  %v1533_v3 = vadd.f32 %v5615_v22, %v1497_v58 }
 0x27c   : > { %v1160_v13 = vpop.f32.mrb[60].mxu1  ;;  %v1735_v15 = vpack.c.bf16 %v5635_v46, %v5640_v48 }
 0x27d   : > { %v1621_v9 = vrot.slane %v1561_v6, 6  ;;  %v1562_v59 = vmax.f32 %v1533_v3, 0.0  ;;  %v1161_v62 = vadd.f32 %v1160_v13, %v5498_v60  ;;  %v4376_v14 = vpop.f32.mrb[61].mxu1 }
 0x27e   : > { %v1163_v23 = vpop.f32.mrb[62].mxu1  ;;  %v1769_v10 = vrot.slane %v1735_v15, 3  ;;  %v2210_v33 = vrot.slane %v1735_v15, 5 }
 0x27f   : > { %v1622_v21 = vsel %vm1617_vm5, %v1619_v17, %v1621_v9  ;;  %v1623_v50 = vrot.slane %v1562_v59, 6  ;;  %v1498_v30 = vadd.f32 %v5518_v47, %v1161_v62  ;;  %v1164_v31 = vadd.f32 %v1163_v23, %v5502_v54  ;;  %v4377_v38 = vpop.f32.mrb[63].mxu1 }
 0x280   : > { %v5652_v52 = vadd.f32 %v1622_v21, %v7521_v18  ;;  %v7522_v17 = vmax.f32 %v5074_v39, 0.0  ;;  %v1988_v59 = vrot.slane %v1735_v15, 1 }
 0x281   : > { %v1624_v43 = vsel %vm1617_vm5, %v1621_v9, %v1623_v50  ;;  %v1534_v60 = vadd.f32 %v5615_v22, %v1498_v30  ;;  %v1499_v32 = vadd.f32 %v5522_v20, %v1164_v31 }
 0x282   : > { %v5656_v58 = vadd.f32 %v1624_v43, %v7522_v17  ;;  %v7524_v17 = vmax.f32 %v5100_v53, 0.0 }
 0x283   : > { %v1563_v47 = vmax.f32 %v1534_v60, 0.0  ;;  %v1535_v54 = vadd.f32 %v5615_v22, %v1499_v32 }
 0x284   : > { %v1168_v6 = vpop.f32.mrb[64].mxu1  ;;  %v1736_v3 = vpack.c.bf16 %v5656_v58, %v5652_v52 }
 0x285   : > { %v1625_v13 = vrot.slane %v1563_v47, 6  ;;  %v1564_v20 = vmax.f32 %v1535_v54, 0.0  ;;  %v1169_v35 = vadd.f32 %v1168_v6, %v5508_v19  ;;  %v4380_v9 = vpop.f32.mrb[65].mxu1 }
 0x286   : > { %v1171_v62 = vpop.f32.mrb[66].mxu1  ;;  %v1770_v39 = vrot.slane %v1736_v3, 3  ;;  %v1989_v14 = vrot.slane %v1736_v3, 1  ;;  %v2211_v23 = vrot.slane %v1736_v3, 5 }
 0x287   : > { %v1626_v21 = vsel %vm1617_vm5, %v1623_v50, %v1625_v13  ;;  %v1627_v30 = vrot.slane %v1564_v20, 6  ;;  %v1500_v31 = vadd.f32 %v5526_v63, %v1169_v35  ;;  %v1172_v38 = vadd.f32 %v1171_v62, %v5512_v45  ;;  %v4381_v43 = vpop.f32.mrb[67].mxu1 }
 0x288   : > { %v1771_v60 = vsel %vm1768_vm6, %v1769_v10, %v1770_v39  ;;  %v5667_v32 = vsel %vm830_vm2, %v1988_v59, %v1989_v14  ;;  %v5670_v19 = vsel %vm2209_vm7, %v2210_v33, %v2211_v23  ;;  %v7523_v63 = vmax.f32 %v5096_v49, 0.0 }
 0x289   : > { %v1628_v18 = vsel %vm1617_vm5, %v1625_v13, %v1627_v30  ;;  %v1536_v15 = vadd.f32 %v5615_v22, %v1500_v31  ;;  %v1501_v50 = vadd.f32 %v5530_v44, %v1172_v38  ;;  %4490 = vmatprep.mubr.msk.bf16.mxu1 %vm860_vm3, %v1771_v60  ;;  %v2060_v59 = vsel %vm906_vm1, %v5575_v11, 0 }
 0x28a   : > { %v5678_v45 = vadd.f32 %v1626_v21, %v7523_v63  ;;  %v5682_v47 = vadd.f32 %v1628_v18, %v7524_v17 }
 0x28b   : > { %v1565_v54 = vmax.f32 %v1536_v15, 0.0  ;;  %v1537_v6 = vadd.f32 %v5615_v22, %v1501_v50  ;;  %v7526_v50 = vmax.f32 %v5120_v0, 0.0 }
 0x28c   : > { %v1737_v3 = vpack.c.bf16 %v5682_v47, %v5678_v45  ;;  %v1176_v10 = vpop.f32.mrb[68].mxu1 }
 0x28d   : > { %v1629_v13 = vrot.slane %v1565_v54, 6  ;;  %v1566_v20 = vmax.f32 %v1537_v6, 0.0  ;;  %v1177_v44 = vadd.f32 %v1176_v10, %v5516_v7  ;;  %v4384_v35 = vpop.f32.mrb[69].mxu1  ;;  %v5697_v7 = vld [vmem:[%s7407_s4 + $0x8] sm:$0xf] }
 0x28e   : > { %v1179_v9 = vpop.f32.mrb[70].mxu1  ;;  %v1772_v49 = vrot.slane %v1737_v3, 3  ;;  %v1991_v53 = vrot.slane %v1737_v3, 1  ;;  %v2213_v62 = vrot.slane %v1737_v3, 5 }
 0x28f   : > { %v1630_v33 = vsel %vm1617_vm5, %v1627_v30, %v1629_v13  ;;  %v1631_v21 = vrot.slane %v1566_v20, 6  ;;  %v1502_v31 = vadd.f32 %v5534_v24, %v1177_v44  ;;  %v1180_v38 = vadd.f32 %v1179_v9, %v5520_v28  ;;  %v4385_v43 = vpop.f32.mrb[71].mxu1 }
 0x290   : > { %v1773_v60 = vsel %vm1768_vm6, %v1770_v39, %v1772_v49  ;;  %v5700_v18 = vsel %vm830_vm2, %v1989_v14, %v1991_v53  ;;  %v5703_v11 = vsel %vm2209_vm7, %v2211_v23, %v2213_v62  ;;  %v7525_v39 = vmax.f32 %v5117_v61, 0.0 }
 0x291   : > { %v1632_v30 = vsel %vm1617_vm5, %v1629_v13, %v1631_v21  ;;  %v1538_v24 = vadd.f32 %v5615_v22, %v1502_v31  ;;  %v1503_v28 = vadd.f32 %v5538_v4, %v1180_v38  ;;  %4491 = vmatmul.mubr.msk.bf16.vlgmr.msra.gmra.mrb[112].mxu1 %vm860_vm3, %v1773_v60 }
 0x292   : > { %v5711_v15 = vadd.f32 %v1630_v33, %v7525_v39  ;;  %v5715_v63 = vadd.f32 %v1632_v30, %v7526_v50  ;;  %4519 = vmatpush3.bf16.msra.mxu1 %v2060_v59 }
 0x293   : > { %v1567_v14 = vmax.f32 %v1538_v24, 0.0  ;;  %v1539_v23 = vadd.f32 %v5615_v22, %v1503_v28  ;;  %4692 = vmatprep.subr.msk.bf16.mxu1 %vm906_vm1, %v5697_v7 }
 0x294   : > { %v1184_v17 = vpop.f32.mrb[72].mxu1  ;;  %v1738_v4 = vpack.c.bf16 %v5715_v63, %v5711_v15 }
 0x295   : > { %v1633_v54 = vrot.slane %v1567_v14, 6  ;;  %v1568_v6 = vmax.f32 %v1539_v23, 0.0  ;;  %v1185_v61 = vadd.f32 %v1184_v17, %v5524_v5  ;;  %v4388_v3 = vpop.f32.mrb[73].mxu1 }
 0x296   : > { %v1187_v10 = vpop.f32.mrb[74].mxu1  ;;  %v1774_v0 = vrot.slane %v1738_v4, 3  ;;  %v1993_v13 = vrot.slane %v1738_v4, 1  ;;  %v2215_v20 = vrot.slane %v1738_v4, 5 }
 0x297   : > { %v1634_v44 = vsel %vm1617_vm5, %v1631_v21, %v1633_v54  ;;  %v1635_v35 = vrot.slane %v1568_v6, 6  ;;  %v1504_v9 = vadd.f32 %v5542_v1, %v1185_v61  ;;  %v1188_v59 = vadd.f32 %v1187_v10, %v5528_v41  ;;  %v4389_v33 = vpop.f32.mrb[75].mxu1 }
 0x298   : > { %v1775_v31 = vsel %vm1768_vm6, %v1772_v49, %v1774_v0  ;;  %v5728_v38 = vsel %vm830_vm2, %v1991_v53, %v1993_v13  ;;  %v5731_v5 = vsel %vm2209_vm7, %v2213_v62, %v2215_v20  ;;  %v7527_v1 = vmax.f32 %v5141_v12, 0.0 }
 0x299   : > { %v1636_v43 = vsel %vm1617_vm5, %v1633_v54, %v1635_v35  ;;  %v1540_v60 = vadd.f32 %v5615_v22, %v1504_v9  ;;  %v1505_v21 = vadd.f32 %v5546_v36, %v1188_v59  ;;  %4494 = vmatprep.mubr.msk.bf16.mxu1 %vm860_vm3, %v1775_v31  ;;  %v7528_v49 = vmax.f32 %v5145_v16, 0.0 }
 0x29a   : > { %v5739_v41 = vadd.f32 %v1634_v44, %v7527_v1 }
 0x29b   : > { %v5743_v30 = vadd.f32 %v1636_v43, %v7528_v49  ;;  %v1569_v53 = vmax.f32 %v1540_v60, 0.0  ;;  %v1541_v62 = vadd.f32 %v5615_v22, %v1505_v21 }
 0x29c   : > { %v1192_v24 = vpop.f32.mrb[76].mxu1 }
 0x29d   : > { %v1739_v28 = vpack.c.bf16 %v5743_v30, %v5739_v41  ;;  %v1637_v39 = vrot.slane %v1569_v53, 6  ;;  %v1570_v50 = vmax.f32 %v1541_v62, 0.0  ;;  %v1193_v36 = vadd.f32 %v1192_v24, %v5532_v25  ;;  %v4392_v14 = vpop.f32.mrb[77].mxu1 }
 0x29e   : > { %v1195_v23 = vpop.f32.mrb[78].mxu1 }
 0x29f   : > { %v1776_v12 = vrot.slane %v1739_v28, 3  ;;  %v1995_v17 = vrot.slane %v1739_v28, 1  ;;  %v2217_v4 = vrot.slane %v1739_v28, 5  ;;  %v1638_v16 = vsel %vm1617_vm5, %v1635_v35, %v1637_v39  ;;  %v4393_v3 = vpop.f32.mrb[79].mxu1 }
 0x2a0   : > { %v1639_v54 = vrot.slane %v1570_v50, 6  ;;  %v1506_v6 = vadd.f32 %v5550_v56, %v1193_v36  ;;  %v1196_v61 = vadd.f32 %v1195_v23, %v5536_v2  ;;  %v7529_v56 = vmax.f32 %v5166_v26, 0.0 }
 0x2a1   : > { %v1777_v10 = vsel %vm1768_vm6, %v1774_v0, %v1776_v12  ;;  %v5754_v44 = vsel %vm830_vm2, %v1993_v13, %v1995_v17  ;;  %v5757_v25 = vsel %vm2209_vm7, %v2215_v20, %v2217_v4  ;;  %v7530_v0 = vmax.f32 %v5169_v29, 0.0 }
 0x2a2   : > { %v1640_v9 = vsel %vm1617_vm5, %v1637_v39, %v1639_v54  ;;  %v1542_v59 = vadd.f32 %v5615_v22, %v1506_v6  ;;  %v1507_v35 = vadd.f32 %v5554_v42, %v1196_v61  ;;  %4495 = vmatmul.mubr.msk.bf16.gmra.mrb[116].mxu1 %vm860_vm3, %v1777_v10  ;;  %v5765_v2 = vadd.f32 %v1638_v16, %v7529_v56 }
 0x2a3   : > { %v5769_v33 = vadd.f32 %v1640_v9, %v7530_v0 }
 0x2a4   : > { %v1571_v13 = vmax.f32 %v1542_v59, 0.0  ;;  %v1543_v20 = vadd.f32 %v5615_v22, %v1507_v35  ;;  %v1200_v31 = vpop.f32.mrb[80].mxu1 }
 0x2a5   : > { %v1740_v43 = vpack.c.bf16 %v5769_v33, %v5765_v2  ;;  %v1201_v42 = vadd.f32 %v1200_v31, %v5540_v40  ;;  %v4396_v1 = vpop.f32.mrb[81].mxu1 }
 0x2a6   : > { %v1641_v60 = vrot.slane %v1571_v13, 6  ;;  %v1572_v21 = vmax.f32 %v1543_v20, 0.0  ;;  %v1203_v49 = vpop.f32.mrb[82].mxu1  ;;  %v7533_v20 = vld [vmem:[#allocation27_spill] sm:$0xff] }
 0x2a7   : > { %v1778_v26 = vrot.slane %v1740_v43, 3  ;;  %v1997_v53 = vrot.slane %v1740_v43, 1  ;;  %v2219_v62 = vrot.slane %v1740_v43, 5  ;;  %v1508_v28 = vadd.f32 %v5558_v34, %v1201_v42  ;;  %v4397_v50 = vpop.f32.mrb[83].mxu1  ;;  %v7534_v43 = vld [vmem:[#allocation23_spill] sm:$0xff] }
 0x2a8   : > { %v1642_v29 = vsel %vm1617_vm5, %v1639_v54, %v1641_v60  ;;  %v1643_v24 = vrot.slane %v1572_v21, 6  ;;  %v1204_v39 = vadd.f32 %v1203_v49, %v5544_v37  ;;  %v7531_v34 = vmax.f32 %v5190_v51, 0.0 }
 0x2a9   : > { %v1779_v36 = vsel %vm1768_vm6, %v1776_v12, %v1778_v26  ;;  %v5780_v14 = vsel %vm830_vm2, %v1995_v17, %v1997_v53  ;;  %v5783_v40 = vsel %vm2209_vm7, %v2217_v4, %v2219_v62  ;;  %v1544_v16 = vadd.f32 %v5615_v22, %v1508_v28  ;;  %v7535_v28 = vld [vmem:[#allocation29_spill] sm:$0xff] }
 0x2aa   : > { %v1644_v23 = vsel %vm1617_vm5, %v1641_v60, %v1643_v24  ;;  %v1509_v54 = vadd.f32 %v5562_v8, %v1204_v39  ;;  %4498 = vmatprep.mubr.msk.bf16.mxu1 %vm860_vm3, %v1779_v36  ;;  %v5791_v37 = vadd.f32 %v1642_v29, %v7531_v34  ;;  %v7532_v12 = vmax.f32 %v5193_v55, 0.0  ;;  %v7536_v39 = vld [vmem:[#allocation7_spill] sm:$0xff] }
 0x2ab   : > { %v1573_v17 = vmax.f32 %v1544_v16, 0.0  ;;  %v7537_v50 = vmax.f32 %v7536_v39, 0.0  ;;  %v7544_v39 = vld [vmem:[#allocation33_spill] sm:$0xff] }
 0x2ac   : > { %v5795_v6 = vadd.f32 %v1644_v23, %v7532_v12  ;;  %v1545_v4 = vadd.f32 %v5615_v22, %v1509_v54  ;;  %v1208_v61 = vpop.f32.mrb[84].mxu1  ;;  %v7539_v23 = vld [vmem:[#allocation8_spill] sm:$0xff] }
 0x2ad   : > { %v1645_v10 = vrot.slane %v1573_v17, 6  ;;  %v1209_v8 = vadd.f32 %v1208_v61, %v5548_v57  ;;  %v4400_v59 = vpop.f32.mrb[85].mxu1 }
 0x2ae   : > { %v1741_v3 = vpack.c.bf16 %v5795_v6, %v5791_v37  ;;  %v1574_v9 = vmax.f32 %v1545_v4, 0.0  ;;  %v1211_v35 = vpop.f32.mrb[86].mxu1  ;;  %v7541_v4 = vld [vmem:[#allocation24_spill] sm:$0xff] }
 0x2af   : > { %v1646_v55 = vsel %vm1617_vm5, %v1643_v24, %v1645_v10  ;;  %v1510_v31 = vadd.f32 %v7533_v20, %v1209_v8  ;;  %v1212_v60 = vadd.f32 %v1211_v35, %v7534_v43  ;;  %v4401_v21 = vpop.f32.mrb[87].mxu1  ;;  %v7542_v20 = vld [vmem:[#allocation31_spill] sm:$0xff]  ;;  %v7543_v43 = vld [vmem:[#allocation25_spill] sm:$0xff] }
 0x2b0   : > { %v1780_v51 = vrot.slane %v1741_v3, 3  ;;  %v1999_v56 = vrot.slane %v1741_v3, 1  ;;  %v2221_v0 = vrot.slane %v1741_v3, 5  ;;  %v1647_v13 = vrot.slane %v1574_v9, 6 }
 0x2b1   : > { %v1546_v29 = vadd.f32 %v5615_v22, %v1510_v31  ;;  %v1511_v24 = vadd.f32 %v7535_v28, %v1212_v60  ;;  %v5817_v36 = vadd.f32 %v1646_v55, %v7537_v50  ;;  %v7545_v50 = vld [vmem:[#allocation9_spill] sm:$0xff] }
 0x2b2   : > { %v1781_v42 = vsel %vm1768_vm6, %v1778_v26, %v1780_v51  ;;  %v5806_v1 = vsel %vm830_vm2, %v1997_v53, %v1999_v56  ;;  %v5809_v57 = vsel %vm2209_vm7, %v2219_v62, %v2221_v0  ;;  %v1648_v49 = vsel %vm1617_vm5, %v1645_v10, %v1647_v13 }
 0x2b3   : > { %4499 = vmatmul.mubr.msk.bf16.gmra.mrb[120].mxu1 %vm860_vm3, %v1781_v42  ;;  %7538 = vst [vmem:[#allocation27_spill] sm:$0xff] %v5817_v36  ;;  %v7540_v26 = vmax.f32 %v7539_v23, 0.0  ;;  %v1575_v53 = vmax.f32 %v1546_v29, 0.0  ;;  %v1547_v62 = vadd.f32 %v5615_v22, %v1511_v24  ;;  %v7546_v23 = vmax.f32 %v7545_v50, 0.0 }
 0x2b4   : > { %v1216_v54 = vpop.f32.mrb[88].mxu1 }
 0x2b5   : > { %v5821_v16 = vadd.f32 %v1648_v49, %v7540_v26  ;;  %v1649_v12 = vrot.slane %v1575_v53, 6  ;;  %v1576_v17 = vmax.f32 %v1547_v62, 0.0  ;;  %v1217_v61 = vadd.f32 %v1216_v54, %v7541_v4  ;;  %v4404_v3 = vpop.f32.mrb[89].mxu1  ;;  %v7548_v53 = vld [vmem:[#allocation10_spill] sm:$0xff] }
 0x2b6   : > { %v1219_v10 = vpop.f32.mrb[90].mxu1  ;;  %v7551_v4 = vld [vmem:[#allocation26_spill] sm:$0xff] }
 0x2b7   : > { %v1742_v34 = vpack.c.bf16 %v5821_v16, %v5817_v36  ;;  %v1650_v35 = vsel %vm1617_vm5, %v1647_v13, %v1649_v12  ;;  %v1651_v55 = vrot.slane %v1576_v17, 6  ;;  %v1512_v31 = vadd.f32 %v7542_v20, %v1217_v61  ;;  %v4405_v21 = vpop.f32.mrb[91].mxu1 }
 0x2b8   : > { %v1220_v60 = vadd.f32 %v1219_v10, %v7543_v43  ;;  %v5843_v26 = vadd.f32 %v1650_v35, %v7546_v23  ;;  %v7552_v21 = vld [vmem:[#allocation35_spill] sm:$0xff] }
 0x2b9   : > { %v1782_v9 = vrot.slane %v1742_v34, 3  ;;  %v2001_v8 = vrot.slane %v1742_v34, 1  ;;  %v2223_v59 = vrot.slane %v1742_v34, 5  ;;  %v1652_v28 = vsel %vm1617_vm5, %v1649_v12, %v1651_v55 }
 0x2ba   : > { %v1548_v24 = vadd.f32 %v5615_v22, %v1512_v31  ;;  %v1513_v13 = vadd.f32 %v7544_v39, %v1220_v60  ;;  %7547 = vst [vmem:[#allocation23_spill] sm:$0xff] %v5843_v26 }
 0x2bb   : > { %v1783_v42 = vsel %vm1768_vm6, %v1780_v51, %v1782_v9  ;;  %v5832_v49 = vsel %vm830_vm2, %v1999_v56, %v2001_v8  ;;  %v5835_v29 = vsel %vm2209_vm7, %v2221_v0, %v2223_v59  ;;  %v7549_v51 = vmax.f32 %v7548_v53, 0.0 }
 0x2bc   : > { %4502 = vmatprep.mubr.msk.bf16.mxu1 %vm860_vm3, %v1783_v42  ;;  %v1577_v56 = vmax.f32 %v1548_v24, 0.0  ;;  %v1549_v0 = vadd.f32 %v5615_v22, %v1513_v13  ;;  %v1224_v54 = vpop.f32.mrb[92].mxu1 }
 0x2bd   : > { %v5847_v62 = vadd.f32 %v1652_v28, %v7549_v51  ;;  %v1225_v61 = vadd.f32 %v1224_v54, %v7551_v4  ;;  %v4408_v3 = vpop.f32.mrb[93].mxu1  ;;  %v7553_v28 = vld [vmem:[#allocation28_spill] sm:$0xff] }
 0x2be   : > { %v1653_v12 = vrot.slane %v1577_v56, 6  ;;  %v1578_v17 = vmax.f32 %v1549_v0, 0.0  ;;  %v1227_v10 = vpop.f32.mrb[94].mxu1  ;;  %v7554_v56 = vld [vmem:[#allocation37_spill] sm:$0xff]  ;;  %v7555_v0 = vld [vmem:[#allocation11_spill] sm:$0xff] }
 0x2bf   : > { %7550 = vst [vmem:[#allocation29_spill] sm:$0xff] %v5847_v62  ;;  %v1743_v34 = vpack.c.bf16 %v5847_v62, %v5843_v26  ;;  %v1514_v42 = vadd.f32 %v7552_v21, %v1225_v61  ;;  %v1228_v24 = vadd.f32 %v1227_v10, %v7553_v28  ;;  %v4409_v39 = vpop.f32.mrb[95].mxu1  ;;  %v7556_v54 = vmax.f32 %v7555_v0, 0.0  ;;  %v7561_v21 = vld [vmem:[#allocation30_spill] sm:$0xff]  ;;  %v7562_v0 = vld [vmem:[#allocation39_spill] sm:$0xff]  ;;  %v7573_v62 = vld [vmem:[#allocation36_spill] sm:$0xff] }
 0x2c0   : > { %v1654_v43 = vsel %vm1617_vm5, %v1651_v55, %v1653_v12  ;;  %v1655_v60 = vrot.slane %v1578_v17, 6  ;;  %v7558_v17 = vld [vmem:[#allocation12_spill] sm:$0xff] }
 0x2c1   : > { %v1784_v20 = vrot.slane %v1743_v34, 3  ;;  %v2003_v35 = vrot.slane %v1743_v34, 1  ;;  %v2225_v31 = vrot.slane %v1743_v34, 5  ;;  %v1550_v51 = vadd.f32 %v5615_v22, %v1514_v42 }
 0x2c2   : > { %v1656_v53 = vsel %vm1617_vm5, %v1653_v12, %v1655_v60  ;;  %v1515_v55 = vadd.f32 %v7554_v56, %v1228_v24  ;;  %v5869_v34 = vadd.f32 %v1654_v43, %v7556_v54  ;;  %v7563_v54 = vld [vmem:[#allocation32_spill] sm:$0xff] }
 0x2c3   : > { %v1785_v13 = vsel %vm1768_vm6, %v1782_v9, %v1784_v20  ;;  %v5858_v50 = vsel %vm830_vm2, %v2001_v8, %v2003_v35  ;;  %v5861_v23 = vsel %vm2209_vm7, %v2223_v59, %v2225_v31  ;;  %v7559_v9 = vmax.f32 %v7558_v17, 0.0 }
 0x2c4   : > { %4503 = vmatmul.mubr.msk.bf16.gmra.mrb[124].mxu1 %vm860_vm3, %v1785_v13  ;;  %7557 = vst [vmem:[#allocation7_spill] sm:$0xff] %v5869_v34  ;;  %v1579_v8 = vmax.f32 %v1550_v51, 0.0  ;;  %v1551_v59 = vadd.f32 %v5615_v22, %v1515_v55  ;;  %v1232_v61 = vpop.f32.mrb[96].mxu1 }
 0x2c5   : > { %v5873_v4 = vadd.f32 %v1656_v53, %v7559_v9  ;;  %v1233_v42 = vadd.f32 %v1232_v61, %v7561_v21  ;;  %v4412_v28 = vpop.f32.mrb[97].mxu1  ;;  %v7564_v21 = vld [vmem:[#allocation41_spill] sm:$0xff] }
 0x2c6   : > { %v1657_v3 = vrot.slane %v1579_v8, 6  ;;  %v1580_v10 = vmax.f32 %v1551_v59, 0.0  ;;  %v1235_v24 = vpop.f32.mrb[98].mxu1 }
 0x2c7   : > { %7560 = vst [vmem:[#allocation8_spill] sm:$0xff] %v5873_v4  ;;  %v1744_v12 = vpack.c.bf16 %v5873_v4, %v5869_v34  ;;  %v1516_v51 = vadd.f32 %v7562_v0, %v1233_v42  ;;  %v1236_v55 = vadd.f32 %v1235_v24, %v7563_v54  ;;  %v4413_v17 = vpop.f32.mrb[99].mxu1  ;;  %v7568_v24 = vld [vmem:[#allocation14_spill] sm:$0xff] }
 0x2c8   : > { %v1658_v56 = vsel %vm1617_vm5, %v1655_v60, %v1657_v3  ;;  %v1659_v53 = vrot.slane %v1580_v10, 6  ;;  %v7565_v10 = vld [vmem:[#allocation13_spill] sm:$0xff] }
 0x2c9   : > { %v1786_v39 = vrot.slane %v1744_v12, 3  ;;  %v2005_v43 = vrot.slane %v1744_v12, 1  ;;  %v2227_v13 = vrot.slane %v1744_v12, 5  ;;  %v1552_v12 = vadd.f32 %v5615_v22, %v1516_v51 }
 0x2ca   : > { %v1660_v61 = vsel %vm1617_vm5, %v1657_v3, %v1659_v53  ;;  %v1517_v60 = vadd.f32 %v7564_v21, %v1236_v55  ;;  %v7566_v42 = vmax.f32 %v7565_v10, 0.0  ;;  %v7571_v55 = vld [vmem:[#allocation34_spill] sm:$0xff] }
 0x2cb   : > { %v1787_v9 = vsel %vm1768_vm6, %v1784_v20, %v1786_v39  ;;  %v5884_v8 = vsel %vm830_vm2, %v2003_v35, %v2005_v43  ;;  %v5887_v59 = vsel %vm2209_vm7, %v2225_v31, %v2227_v13  ;;  %v7569_v20 = vmax.f32 %v7568_v24, 0.0 }
 0x2cc   : > { %4506 = vmatprep.mubr.msk.bf16.mxu1 %vm860_vm3, %v1787_v9  ;;  %v5895_v28 = vadd.f32 %v1658_v56, %v7566_v42  ;;  %v1581_v35 = vmax.f32 %v1552_v12, 0.0  ;;  %v1553_v31 = vadd.f32 %v5615_v22, %v1517_v60  ;;  %v1240_v54 = vpop.f32.mrb[100].mxu1 }
 0x2cd   : > { %v5899_v0 = vadd.f32 %v1660_v61, %v7569_v20  ;;  %v1241_v21 = vadd.f32 %v1240_v54, %v7571_v55  ;;  %v4416_v9 = vpop.f32.mrb[101].mxu1  ;;  %v7572_v20 = vld [vmem:[#allocation43_spill] sm:$0xff]  ;;  %v7574_v55 = vld [vmem:[#allocation44_spill] sm:$0xff] }
 0x2ce   : > { %7567 = vst [vmem:[#allocation24_spill] sm:$0xff] %v5895_v28  ;;  %v1661_v51 = vrot.slane %v1581_v35, 6  ;;  %v1582_v17 = vmax.f32 %v1553_v31, 0.0  ;;  %v1243_v34 = vpop.f32.mrb[102].mxu1 }
 0x2cf   : > { %7570 = vst [vmem:[#allocation31_spill] sm:$0xff] %v5899_v0  ;;  %v1745_v3 = vpack.c.bf16 %v5899_v0, %v5895_v28  ;;  %v1518_v12 = vadd.f32 %v7572_v20, %v1241_v21  ;;  %v1244_v60 = vadd.f32 %v1243_v34, %v7573_v62  ;;  %v4417_v4 = vpop.f32.mrb[103].mxu1  ;;  %v7578_v34 = vld [vmem:[#allocation16_spill] sm:$0xff] }
 0x2d0   : > { %v1662_v24 = vsel %vm1617_vm5, %v1659_v53, %v1661_v51  ;;  %v1663_v61 = vrot.slane %v1582_v17, 6  ;;  %v7575_v17 = vld [vmem:[#allocation15_spill] sm:$0xff]  ;;  %v7579_v4 = vmax.f32 %v7578_v34, 0.0  ;;  %v7582_v34 = vld [vmem:[#allocation45_spill] sm:$0xff]  ;;  %v7583_v0 = vld [vmem:[#allocation40_spill] sm:$0xff] }
 0x2d1   : > { %v1788_v10 = vrot.slane %v1745_v3, 3  ;;  %v2007_v56 = vrot.slane %v1745_v3, 1  ;;  %v2229_v42 = vrot.slane %v1745_v3, 5  ;;  %v1554_v3 = vadd.f32 %v5615_v22, %v1518_v12 }
 0x2d2   : > { %v1664_v54 = vsel %vm1617_vm5, %v1661_v51, %v1663_v61  ;;  %v1519_v53 = vadd.f32 %v7574_v55, %v1244_v60  ;;  %v7576_v21 = vmax.f32 %v7575_v17, 0.0  ;;  %v7581_v60 = vld [vmem:[#allocation38_spill] sm:$0xff] }
 0x2d3   : > { %v1789_v26 = vsel %vm1768_vm6, %v1786_v39, %v1788_v10  ;;  %v5910_v35 = vsel %vm830_vm2, %v2005_v43, %v2007_v56  ;;  %v5913_v31 = vsel %vm2209_vm7, %v2227_v13, %v2229_v42  ;;  %v5925_v39 = vadd.f32 %v1664_v54, %v7579_v4 }
 0x2d4   : > { %4507 = vmatmul.mubr.msk.bf16.gmra.mrb[128].mxu1 %vm860_vm3, %v1789_v26  ;;  %v5921_v62 = vadd.f32 %v1662_v24, %v7576_v21  ;;  %v1583_v43 = vmax.f32 %v1554_v3, 0.0  ;;  %v1555_v13 = vadd.f32 %v5615_v22, %v1519_v53  ;;  %v1248_v9 = vpop.f32.mrb[104].mxu1 }
 0x2d5   : > { %7580 = vst [vmem:[#allocation33_spill] sm:$0xff] %v5925_v39  ;;  %v1249_v26 = vadd.f32 %v1248_v9, %v7581_v60  ;;  %v4420_v55 = vpop.f32.mrb[105].mxu1 }
 0x2d6   : > { %7577 = vst [vmem:[#allocation25_spill] sm:$0xff] %v5921_v62  ;;  %v5930_v51 = vpack.c.bf16 %v5925_v39, %v5921_v62  ;;  %v1665_v20 = vrot.slane %v1583_v43, 6  ;;  %v1584_v12 = vmax.f32 %v1555_v13, 0.0  ;;  %v1251_v17 = vpop.f32.mrb[106].mxu1 }
 0x2d7   : > { %v1520_v4 = vadd.f32 %v7582_v34, %v1249_v26  ;;  %v1252_v62 = vadd.f32 %v1251_v17, %v7583_v0  ;;  %v4421_v39 = vpop.f32.mrb[107].mxu1  ;;  %v7585_v26 = vld [vmem:[#allocation17_spill] sm:$0xff] }
 0x2d8   : > { %v1790_v24 = vrot.slane %v5930_v51, 3  ;;  %v7471_v21 = vrot.slane %v5930_v51, 1  ;;  %v2231_v54 = vrot.slane %v5930_v51, 5  ;;  %v1666_v3 = vsel %vm1617_vm5, %v1663_v61, %v1665_v20  ;;  %v7584_v61 = vld [vmem:[#allocation46_spill] sm:$0xff] }
 0x2d9   : > { %v1667_v53 = vrot.slane %v1584_v12, 6  ;;  %v1556_v55 = vadd.f32 %v5615_v22, %v1520_v4  ;;  %v1521_v12 = vadd.f32 %v7584_v61, %v1252_v62  ;;  %v7586_v0 = vmax.f32 %v7585_v26, 0.0  ;;  %v7590_v62 = vld [vmem:[#allocation42_spill] sm:$0xff] }
 0x2da   : > { %v1791_v43 = vsel %vm1768_vm6, %v1788_v10, %v1790_v24  ;;  %v2010_v13 = vsel %vm830_vm2, %v2007_v56, %v7471_v21  ;;  %v5944_v9 = vsel %vm2209_vm7, %v2229_v42, %v2231_v54  ;;  %v7587_v10 = vld [vmem:[#allocation18_spill] sm:$0xff] }
 0x2db   : > { %v1668_v60 = vsel %vm1617_vm5, %v1665_v20, %v1667_v53  ;;  %4510 = vmatprep.mubr.msk.bf16.mxu1 %vm860_vm3, %v1791_v43  ;;  %v5952_v39 = vadd.f32 %v1666_v3, %v7586_v0  ;;  %v7588_v17 = vmax.f32 %v7587_v10, 0.0  ;;  %v1585_v56 = vmax.f32 %v1556_v55, 0.0 }
 0x2dc   : > { %v1557_v42 = vadd.f32 %v5615_v22, %v1521_v12  ;;  %v1256_v21 = vpop.f32.mrb[108].mxu1  ;;  %v2864_v12 = vld [vmem:[%s7410_s7] sm:$0xf] }
 0x2dd   : > { %v5956_v34 = vadd.f32 %v1668_v60, %v7588_v17  ;;  %v1669_v4 = vrot.slane %v1585_v56, 6  ;;  %v1257_v61 = vadd.f32 %v1256_v21, %v7590_v62  ;;  %v4424_v43 = vpop.f32.mrb[109].mxu1  ;;  %v7593_v62 = vld [vmem:[#allocation20_spill] sm:$0xff] }
 0x2de   : > { %v1586_v28 = vmax.f32 %v1557_v42, 0.0  ;;  %v1259_v36 = vpop.f32.mrb[110].mxu1 }
 0x2df   : > { %7589 = vst [vmem:[#allocation9_spill] sm:$0xff] %v5956_v34  ;;  %v1747_v20 = vpack.c.bf16 %v5956_v34, %v5952_v39  ;;  %v1670_v0 = vsel %vm1617_vm5, %v1667_v53, %v1669_v4  ;;  %v1522_v60 = vadd.f32 %v5624_v27, %v1257_v61  ;;  %v4425_v55 = vpop.f32.mrb[111].mxu1  ;;  %v2946_v53 = vsel %vm906_vm1, %v2864_v12, 0 }
 0x2e0   : > { %v1671_v10 = vrot.slane %v1586_v28, 6  ;;  %v7591_v28 = vld [vmem:[#allocation19_spill] sm:$0xff]  ;;  %v7594_v61 = vmax.f32 %v7593_v62, 0.0  ;;  %4579 = vmatpush3.bf16.msra.mxu0 %v2946_v53 }
 0x2e1   : > { %v1792_v26 = vrot.slane %v1747_v20, 3  ;;  %v2233_v3 = vrot.slane %v1747_v20, 5  ;;  %v1558_v36 = vadd.f32 %v5615_v22, %v1522_v60  ;;  %v7592_v42 = vmax.f32 %v7591_v28, 0.0  ;;  %v7597_v28 = vld [vmem:[#allocation21_spill] sm:$0xff] }
 0x2e2   : > { %v1672_v21 = vsel %vm1617_vm5, %v1669_v4, %v1671_v10 }
 0x2e3   : > { %v1793_v17 = vsel %vm1768_vm6, %v1790_v24, %v1792_v26  ;;  %v2234_v56 = vsel %vm2209_vm7, %v2231_v54, %v2233_v3  ;;  %v5975_v27 = vadd.f32 %v1670_v0, %v7592_v42  ;;  %v5979_v43 = vadd.f32 %v1672_v21, %v7594_v61 }
 0x2e4   : > { %4511 = vmatmul.mubr.msk.bf16.gmra.mrb[132].mxu1 %vm860_vm3, %v1793_v17  ;;  %v1587_v24 = vmax.f32 %v1558_v36, 0.0  ;;  %v7595_v17 = vld [vmem:[#allocation22_spill] sm:$0xff]  ;;  %v7598_v0 = vmax.f32 %v7597_v28, 0.0 }
 0x2e5   : > { %v1748_v54 = vpack.c.bf16 %v5979_v43, %v5975_v27  ;;  %v7596_v12 = vmax.f32 %v7595_v17, 0.0 }
 0x2e6   : > { %v1673_v4 = vrot.slane %v1587_v24, 6 }
 0x2e7   : > { %v1794_v55 = vrot.slane %v1748_v54, 3  ;;  %v2235_v22 = vrot.slane %v1748_v54, 5 }
 0x2e8   : > { %v1674_v60 = vsel %vm1617_vm5, %v1671_v10, %v1673_v4  ;;  %v1734_v34 = vadd.f32 %v1673_v4, %v7596_v12 }
 0x2e9   : > { %v5988_v42 = vadd.f32 %v1674_v60, %v7598_v0  ;;  %v1795_v21 = vsel %vm1768_vm6, %v1792_v26, %v1794_v55  ;;  %v2236_v53 = vsel %vm2209_vm7, %v2233_v3, %v2235_v22  ;;  %v2282_v26 = vsel %vm906_vm1, %v5697_v7, 0 }
 0x2ea   : > { %4514 = vmatprep.mubr.msk.bf16.mxu1 %vm860_vm3, %v1795_v21  ;;  %v2013_v7 = vrot.slane %v1748_v54, 1 }
 0x2eb   : > { %v1749_v36 = vpack.c.bf16 %v1734_v34, %v5988_v42 }
 0x2ed   : > { %v1796_v62 = vrot.slane %v1749_v36, 3  ;;  %v2237_v61 = vrot.slane %v1749_v36, 5 }
 0x2ef   : > { %v1797_v24 = vsel %vm1768_vm6, %v1794_v55, %v1796_v62  ;;  %v2238_v10 = vsel %vm2209_vm7, %v2235_v22, %v2237_v61 }
 0x2f0   : > { %4515 = vmatmul.mubr.msk.bf16.gmra.mrb[136].mxu1 %vm860_vm3, %v1797_v24 }
 0x2f1   : > { %4520 = vmatprep.mubr.msk.bf16.mxu1 %vm860_vm3, %v5667_v32  ;;  %v2011_v32 = vrot.slane %v1747_v20, 1 }
 0x2f8   : > { %4521 = vmatmul.mubr.msk.bf16.vlgmr.msra.gmra.mrb[112].mxu1 %vm860_vm3, %v5700_v18  ;;  %v7599_v18 = vrot.slane %v5930_v51, 1 }
 0x2f9   : > { %4549 = vmatpush3.bf16.msra.mxu1 %v2282_v26  ;;  %4524 = vmatprep.mubr.msk.bf16.mxu1 %vm860_vm3, %v5728_v38 }
 0x2fa   : > { %v2012_v38 = vsel %vm830_vm2, %v7599_v18, %v2011_v32 }
 0x300   : > { %4525 = vmatmul.mubr.msk.bf16.gmra.mrb[116].mxu1 %vm860_vm3, %v5754_v44  ;;  %v2014_v44 = vsel %vm830_vm2, %v2011_v32, %v2013_v7 }
 0x301   : > { %4528 = vmatprep.mubr.msk.bf16.mxu1 %vm860_vm3, %v5780_v14  ;;  %v2015_v14 = vrot.slane %v1749_v36, 1 }
 0x308   : > { %4529 = vmatmul.mubr.msk.bf16.gmra.mrb[120].mxu1 %vm860_vm3, %v5806_v1  ;;  %v2016_v1 = vsel %vm830_vm2, %v2013_v7, %v2015_v14 }
 0x309   : > { %4532 = vmatprep.mubr.msk.bf16.mxu1 %vm860_vm3, %v5832_v49 }
 0x310   : > { %4533 = vmatmul.mubr.msk.bf16.gmra.mrb[124].mxu1 %vm860_vm3, %v5858_v50 }
 0x311   : > { %4536 = vmatprep.mubr.msk.bf16.mxu1 %vm860_vm3, %v5884_v8 }
 0x318   : > { %4537 = vmatmul.mubr.msk.bf16.gmra.mrb[128].mxu1 %vm860_vm3, %v5910_v35 }
 0x319   : > { %4540 = vmatprep.mubr.msk.bf16.mxu1 %vm860_vm3, %v2010_v13 }
 0x320   : > { %4541 = vmatmul.mubr.msk.bf16.gmra.mrb[132].mxu1 %vm860_vm3, %v2012_v38 }
 0x321   : > { %4544 = vmatprep.mubr.msk.bf16.mxu1 %vm860_vm3, %v2014_v44 }
 0x328   : > { %4545 = vmatmul.mubr.msk.bf16.gmra.mrb[136].mxu1 %vm860_vm3, %v2016_v1 }
 0x329   : > { %4550 = vmatprep.mubr.msk.bf16.mxu1 %vm860_vm3, %v5670_v19  ;;  %v6056_v19 = vld [vmem:[%s7409_s6] ss:$0 sm:$0xff] }
 0x330   : > { %4551 = vmatmul.mubr.msk.bf16.vlgmr.msra.gmra.mrb[112].mxu1 %vm860_vm3, %v5703_v11 }
 0x331   : > { %4554 = vmatprep.mubr.msk.bf16.mxu1 %vm860_vm3, %v5731_v5 }
 0x338   : > { %4555 = vmatmul.mubr.msk.bf16.gmra.mrb[116].mxu1 %vm860_vm3, %v5757_v25 }
 0x339   : > { %4558 = vmatprep.mubr.msk.bf16.mxu1 %vm860_vm3, %v5783_v40 }
 0x340   : > { %4559 = vmatmul.mubr.msk.bf16.gmra.mrb[120].mxu1 %vm860_vm3, %v5809_v57 }
 0x341   : > { %4562 = vmatprep.mubr.msk.bf16.mxu1 %vm860_vm3, %v5835_v29 }
 0x348   : > { %4563 = vmatmul.mubr.msk.bf16.gmra.mrb[124].mxu1 %vm860_vm3, %v5861_v23 }
 0x349   : > { %4566 = vmatprep.mubr.msk.bf16.mxu1 %vm860_vm3, %v5887_v59 }
 0x350   : > { %4567 = vmatmul.mubr.msk.bf16.gmra.mrb[128].mxu1 %vm860_vm3, %v5913_v31 }
 0x351   : > { %4570 = vmatprep.mubr.msk.bf16.mxu1 %vm860_vm3, %v5944_v9 }
 0x358   : > { %4571 = vmatmul.mubr.msk.bf16.gmra.mrb[132].mxu1 %vm860_vm3, %v2234_v56 }
 0x359   : > { %4574 = vmatprep.mubr.msk.bf16.mxu1 %vm860_vm3, %v2236_v53 }
 0x360   : > { %4575 = vmatmul.mubr.msk.bf16.gmra.mrb[136].mxu1 %vm860_vm3, %v2238_v10 }
 0x403   : > { %v4552_v11 = vpop.f32.mrb[112].mxu1 }
 0x404   : > { %v2466_v5 = vadd.f32 %v4552_v11, %v6056_v19  ;;  %v2318_v25 = vpop.f32.mrb[113].mxu1 }
 0x405   : > { %v2464_v40 = vadd.f32 %v6056_v19, %v2318_v25  ;;  %v4553_v57 = vpop.f32.mrb[114].mxu1 }
 0x406   : > { %v2494_v49 = vmax.f32 %v2466_v5, 0.0  ;;  %v2467_v29 = vadd.f32 %v4553_v57, %v6056_v19  ;;  %v2321_v50 = vpop.f32.mrb[115].mxu1 }
 0x407   : > { %v2492_v23 = vmax.f32 %v2464_v40, 0.0  ;;  %v2465_v8 = vadd.f32 %v6056_v19, %v2321_v50 }
 0x408   : > { %v2495_v59 = vmax.f32 %v2467_v29, 0.0  ;;  %v2552_v51 = vrot.slane %v2494_v49, 2 }
 0x409   : > { %v2549_v35 = vrot.slane %v2492_v23, 2  ;;  %v2493_v31 = vmax.f32 %v2465_v8, 0.0 }
 0x40a   : > { %v2554_v13 = vrot.slane %v2495_v59, 2 }
 0x40b   : > { %v2550_v9 = vrot.slane %v2493_v31, 2  ;;  %v4556_v34 = vpop.f32.mrb[116].mxu1  ;;  %v2633_v20 = vadd.f32 %v2549_v35, %v5640_v48 }
 0x40c   : > { %v2555_v3 = vsel %vm1264_vm4, %v2552_v51, %v2554_v13  ;;  %v2470_v56 = vadd.f32 %v4556_v34, %v6056_v19  ;;  %v2334_v54 = vpop.f32.mrb[117].mxu1 }
 0x40d   : > { %v2636_v4 = vadd.f32 %v2555_v3, %v5656_v58  ;;  %v2551_v55 = vsel %vm1264_vm4, %v2549_v35, %v2550_v9  ;;  %v2553_v22 = vsel %vm1264_vm4, %v2550_v9, %v2552_v51  ;;  %v4557_v60 = vpop.f32.mrb[118].mxu1  ;;  %v2468_v28 = vadd.f32 %v6056_v19, %v2334_v54 }
 0x40e   : > { %v2634_v17 = vadd.f32 %v2551_v55, %v5635_v46  ;;  %v2635_v12 = vadd.f32 %v2553_v22, %v5652_v52  ;;  %v2337_v0 = vpop.f32.mrb[119].mxu1  ;;  %v2498_v21 = vmax.f32 %v2470_v56, 0.0  ;;  %v2471_v53 = vadd.f32 %v4557_v60, %v6056_v19 }
 0x40f   : > { %v2696_v48 = vrot.slane %v2636_v4, 6  ;;  %v2469_v36 = vadd.f32 %v6056_v19, %v2337_v0  ;;  %v2691_v62 = vrot.slane %v2633_v20, 6  ;;  %v2496_v10 = vmax.f32 %v2468_v28, 0.0 }
 0x410   : > { %v2692_v58 = vrot.slane %v2634_v17, 6  ;;  %v2694_v61 = vrot.slane %v2635_v12, 6  ;;  %v2850_v24 = vpack.c.bf16 %v2635_v12, %v2634_v17  ;;  %v2499_v26 = vmax.f32 %v2471_v53, 0.0 }
 0x411   : > { %v2497_v32 = vmax.f32 %v2469_v36, 0.0  ;;  %v2560_v44 = vrot.slane %v2498_v21, 2  ;;  %v2556_v14 = vrot.slane %v2496_v10, 2 }
 0x412   : > { %v2693_v46 = vsel %vm1617_vm5, %v2691_v62, %v2692_v58  ;;  %v2695_v52 = vsel %vm1617_vm5, %v2692_v58, %v2694_v61  ;;  %v2697_v7 = vsel %vm1617_vm5, %v2694_v61, %v2696_v48  ;;  %v2562_v5 = vrot.slane %v2499_v26, 2 }
 0x413   : > { %v2776_v18 = vsel %vm860_vm3, %v2693_v46, 0.0  ;;  %v2777_v38 = vsel %vm860_vm3, %v2695_v52, 0.0  ;;  %v4560_v1 = vpop.f32.mrb[120].mxu1  ;;  %v2558_v25 = vrot.slane %v2497_v32, 2  ;;  %v2779_v49 = vsel %vm860_vm3, %v2697_v7, 0.0 }
 0x414   : > { %v2778_v11 = vadd.f32 %v2777_v38, %v2776_v18  ;;  %v2474_v40 = vadd.f32 %v4560_v1, %v6056_v19  ;;  %v2350_v57 = vpop.f32.mrb[121].mxu1  ;;  %v2879_v29 = vrot.slane %v2850_v24, 3  ;;  %v2557_v50 = vsel %vm1264_vm4, %v2554_v13, %v2556_v14 }
 0x415   : > { %v2472_v23 = vadd.f32 %v6056_v19, %v2350_v57  ;;  %v4561_v8 = vpop.f32.mrb[122].mxu1  ;;  %v2637_v35 = vadd.f32 %v2557_v50, %v5678_v45  ;;  %v2563_v31 = vsel %vm1264_vm4, %v2560_v44, %v2562_v5  ;;  %v2559_v51 = vsel %vm1264_vm4, %v2556_v14, %v2558_v25 }
 0x416   : > { %v2780_v59 = vadd.f32 %v2779_v49, %v2778_v11  ;;  %v2353_v9 = vpop.f32.mrb[123].mxu1  ;;  %v6086_v34 = vadd.f32 %v2563_v31, %v5715_v63  ;;  %v2561_v20 = vsel %vm1264_vm4, %v2558_v25, %v2560_v44  ;;  %v6090_v3 = vadd.f32 %v2559_v51, %v5682_v47 }
 0x417   : > { %v2502_v13 = vmax.f32 %v2474_v40, 0.0  ;;  %v2698_v56 = vrot.slane %v2637_v35, 6  ;;  %v2851_v54 = vpack.c.bf16 %v2637_v35, %v2636_v4  ;;  %v6093_v55 = vadd.f32 %v2561_v20, %v5711_v15 }
 0x418   : > { %v2500_v45 = vmax.f32 %v2472_v23, 0.0  ;;  %v2704_v22 = vrot.slane %v6086_v34, 6  ;;  %v2700_v60 = vrot.slane %v6090_v3, 6  ;;  %v2475_v63 = vadd.f32 %v4561_v8, %v6056_v19 }
 0x419   : > { %v2568_v17 = vrot.slane %v2502_v13, 2  ;;  %v2699_v12 = vsel %vm1617_vm5, %v2696_v48, %v2698_v56  ;;  %v6099_v28 = vrot.slane %v2851_v54, 3  ;;  %v2702_v47 = vrot.slane %v6093_v55, 6 }
 0x41a   : > { %v2564_v0 = vrot.slane %v2500_v45, 2  ;;  %v2781_v4 = vsel %vm860_vm3, %v2699_v12, 0.0  ;;  %v2701_v15 = vsel %vm1617_vm5, %v2698_v56, %v2700_v60  ;;  %v2503_v21 = vmax.f32 %v2475_v63, 0.0 }
 0x41b   : > { %v2473_v53 = vadd.f32 %v6056_v19, %v2353_v9  ;;  %v4564_v36 = vpop.f32.mrb[124].mxu1  ;;  %v2782_v62 = vadd.f32 %v2781_v4, %v2780_v59  ;;  %v2703_v58 = vsel %vm1617_vm5, %v2700_v60, %v2702_v47  ;;  %v2705_v61 = vsel %vm1617_vm5, %v2702_v47, %v2704_v22 }
 0x41c   : > { %v2783_v48 = vsel %vm860_vm3, %v2701_v15, 0.0  ;;  %v2366_v24 = vpop.f32.mrb[125].mxu1  ;;  %v2785_v10 = vsel %vm860_vm3, %v2703_v58, 0.0  ;;  %v2787_v26 = vsel %vm860_vm3, %v2705_v61, 0.0  ;;  %v2565_v32 = vsel %vm1264_vm4, %v2562_v5, %v2564_v0 }
 0x41d   : > { %v2570_v46 = vrot.slane %v2503_v21, 2  ;;  %v4565_v52 = vpop.f32.mrb[126].mxu1  ;;  %v2784_v7 = vadd.f32 %v2783_v48, %v2782_v62  ;;  %v6112_v18 = vadd.f32 %v2565_v32, %v5739_v41  ;;  %v2501_v38 = vmax.f32 %v2473_v53, 0.0 }
 0x41e   : > { %v2478_v44 = vadd.f32 %v4564_v36, %v6056_v19  ;;  %v2369_v14 = vpop.f32.mrb[127].mxu1  ;;  %v2881_v11 = vsel %vm1768_vm6, %v2879_v29, %v6099_v28  ;;  %v2476_v25 = vadd.f32 %v6056_v19, %v2366_v24  ;;  %v2479_v40 = vadd.f32 %v4565_v52, %v6056_v19 }
 0x41f   : > { %v2571_v1 = vsel %vm1264_vm4, %v2568_v17, %v2570_v46  ;;  %v2786_v5 = vadd.f32 %v2785_v10, %v2784_v7  ;;  %v2706_v57 = vrot.slane %v6112_v18, 6  ;;  %v2566_v41 = vrot.slane %v2501_v38, 2  ;;  %4581 = vmatmul.mubr.msk.bf16.vlgmr.msra.gmra.mrb[128].mxu0 %vm860_vm3, %v2881_v11  ;;  %v7601_v11 = vld [vmem:[#allocation27_spill] sm:$0xff] }
 0x420   : > { %v6122_v49 = vadd.f32 %v2571_v1, %v5769_v33  ;;  %v2506_v50 = vmax.f32 %v2478_v44, 0.0  ;;  %v2504_v23 = vmax.f32 %v2476_v25, 0.0  ;;  %v2507_v8 = vmax.f32 %v2479_v40, 0.0 }
 0x421   : > { %v2477_v59 = vadd.f32 %v6056_v19, %v2369_v14  ;;  %v7600_v35 = vmov 0.0   ;;  %v2788_v29 = vadd.f32 %v2787_v26, %v2786_v5  ;;  %v2707_v31 = vsel %vm1617_vm5, %v2704_v22, %v2706_v57 }
 0x422   : > { %4584 = vmatprep.mubr.msk.bf16.mxu0 %vm4830_vm0, %v7600_v35  ;;  %v2712_v51 = vrot.slane %v6122_v49, 6  ;;  %v2567_v9 = vsel %vm1264_vm4, %v2564_v0, %v2566_v41  ;;  %v2789_v33 = vsel %vm860_vm3, %v2707_v31, 0.0  ;;  %v2569_v20 = vsel %vm1264_vm4, %v2566_v41, %v2568_v17 }
 0x423   : > { %v6134_v13 = vadd.f32 %v2567_v9, %v5743_v30  ;;  %v2576_v56 = vrot.slane %v2506_v50, 2  ;;  %v4568_v54 = vpop.f32.mrb[128].mxu1  ;;  %v2790_v45 = vadd.f32 %v2789_v33, %v2788_v29  ;;  %v6137_v60 = vadd.f32 %v2569_v20, %v5765_v2 }
 0x424   : > { %v2572_v63 = vrot.slane %v2504_v23, 2  ;;  %v2578_v12 = vrot.slane %v2507_v8, 2  ;;  %v2382_v22 = vpop.f32.mrb[129].mxu1  ;;  %v2505_v4 = vmax.f32 %v2477_v59, 0.0  ;;  %v2482_v0 = vadd.f32 %v4568_v54, %v6056_v19 }
 0x425   : > { %v2708_v47 = vrot.slane %v6134_v13, 6  ;;  %v2852_v17 = vpack.c.bf16 %v6093_v55, %v6090_v3  ;;  %v4569_v15 = vpop.f32.mrb[130].mxu1  ;;  %v2710_v30 = vrot.slane %v6137_v60, 6  ;;  %v2480_v2 = vadd.f32 %v6056_v19, %v2382_v22 }
 0x426   : > { %v2573_v21 = vsel %vm1264_vm4, %v2570_v46, %v2572_v63  ;;  %v2579_v53 = vsel %vm1264_vm4, %v2576_v56, %v2578_v12  ;;  %v2385_v36 = vpop.f32.mrb[131].mxu1  ;;  %v2574_v48 = vrot.slane %v2505_v4, 2  ;;  %v2510_v10 = vmax.f32 %v2482_v0, 0.0 }
 0x427   : > { %v2709_v62 = vsel %vm1617_vm5, %v2706_v57, %v2708_v47  ;;  %v6149_v58 = vadd.f32 %v2573_v21, %v5791_v37  ;;  %v6152_v61 = vadd.f32 %v2579_v53, %v5821_v16  ;;  %v2711_v3 = vsel %vm1617_vm5, %v2708_v47, %v2710_v30 }
 0x428   : > { %v2713_v55 = vsel %vm1617_vm5, %v2710_v30, %v2712_v51  ;;  %v2791_v24 = vsel %vm860_vm3, %v2709_v62, 0.0  ;;  %v2793_v32 = vsel %vm860_vm3, %v2711_v3, 0.0  ;;  %v2575_v16 = vsel %vm1264_vm4, %v2572_v63, %v2574_v48 }
 0x429   : > { %v2792_v26 = vadd.f32 %v2791_v24, %v2790_v45  ;;  %v2795_v46 = vsel %vm860_vm3, %v2713_v55, 0.0  ;;  %v2714_v52 = vrot.slane %v6149_v58, 6  ;;  %v2720_v37 = vrot.slane %v6152_v61, 6 }
 0x42a   : > { %v2577_v7 = vsel %vm1264_vm4, %v2574_v48, %v2576_v56  ;;  %v2584_v38 = vrot.slane %v2510_v10, 2  ;;  %v6165_v1 = vadd.f32 %v2575_v16, %v5795_v6  ;;  %v2882_v57 = vrot.slane %v2852_v17, 3 }
 0x42b   : > { %v2794_v44 = vadd.f32 %v2793_v32, %v2792_v26  ;;  %v2715_v14 = vsel %vm1617_vm5, %v2712_v51, %v2714_v52  ;;  %v6168_v25 = vadd.f32 %v2577_v7, %v7601_v11  ;;  %v4572_v40 = vpop.f32.mrb[132].mxu1  ;;  %v2508_v41 = vmax.f32 %v2480_v2, 0.0  ;;  %v7603_v26 = vld [vmem:[#allocation8_spill] sm:$0xff] }
 0x42c   : > { %v2797_v5 = vsel %vm860_vm3, %v2715_v14, 0.0  ;;  %v2483_v50 = vadd.f32 %v4569_v15, %v6056_v19  ;;  %v2398_v23 = vpop.f32.mrb[133].mxu1  ;;  %v2716_v59 = vrot.slane %v6165_v1, 6  ;;  %v2481_v31 = vadd.f32 %v6056_v19, %v2385_v36  ;;  %v7602_v15 = vld [vmem:[#allocation23_spill] sm:$0xff] }
 0x42d   : > { %v2796_v8 = vadd.f32 %v2795_v46, %v2794_v44  ;;  %v2718_v29 = vrot.slane %v6168_v25, 6  ;;  %v4573_v6 = vpop.f32.mrb[134].mxu1  ;;  %v2883_v51 = vsel %vm1768_vm6, %v6099_v28, %v2882_v57  ;;  %v2580_v9 = vrot.slane %v2508_v41, 2  ;;  %v7604_v41 = vld [vmem:[#allocation29_spill] sm:$0xff] }
 0x42e   : > { %v2511_v33 = vmax.f32 %v2483_v50, 0.0  ;;  %v2486_v20 = vadd.f32 %v4572_v40, %v6056_v19  ;;  %v2401_v56 = vpop.f32.mrb[135].mxu1  ;;  %v2717_v45 = vsel %vm1617_vm5, %v2714_v52, %v2716_v59  ;;  %4585 = vmatmul.mubr.msk.bf16.gmra.mrb[132].mxu0 %vm860_vm3, %v2883_v51  ;;  %v2509_v53 = vmax.f32 %v2481_v31, 0.0 }
 0x42f   : > { %v2798_v54 = vadd.f32 %v2797_v5, %v2796_v8  ;;  %v2719_v63 = vsel %vm1617_vm5, %v2716_v59, %v2718_v29  ;;  %v2721_v22 = vsel %vm1617_vm5, %v2718_v29, %v2720_v37  ;;  %v2799_v47 = vsel %vm860_vm3, %v2717_v45, 0.0  ;;  %4588 = vmatprep.mubr.msk.bf16.mxu0 %vm4830_vm0, %v7600_v35 }
 0x430   : > { %v2801_v4 = vsel %vm860_vm3, %v2719_v63, 0.0  ;;  %v2803_v28 = vsel %vm860_vm3, %v2721_v22, 0.0  ;;  %v2581_v0 = vsel %vm1264_vm4, %v2578_v12, %v2580_v9  ;;  %v2586_v21 = vrot.slane %v2511_v33, 2 }
 0x431   : > { %v2800_v17 = vadd.f32 %v2799_v47, %v2798_v54  ;;  %v6189_v30 = vadd.f32 %v2581_v0, %v7602_v15  ;;  %v2514_v2 = vmax.f32 %v2486_v20, 0.0  ;;  %v2853_v36 = vpack.c.bf16 %v6112_v18, %v6086_v34 }
 0x432   : > { %v2484_v62 = vadd.f32 %v6056_v19, %v2398_v23  ;;  %v2487_v48 = vadd.f32 %v4573_v6, %v6056_v19  ;;  %v2587_v55 = vsel %vm1264_vm4, %v2584_v38, %v2586_v21  ;;  %v2582_v24 = vrot.slane %v2509_v53, 2  ;;  %v7605_v23 = vld [vmem:[#allocation7_spill] sm:$0xff] }
 0x433   : > { %v2802_v3 = vadd.f32 %v2801_v4, %v2800_v17  ;;  %v2722_v12 = vrot.slane %v6189_v30, 6  ;;  %v4576_v10 = vpop.f32.mrb[136].mxu1  ;;  %v6198_v32 = vadd.f32 %v2587_v55, %v7603_v26  ;;  %v2592_v46 = vrot.slane %v2514_v2, 2 }
 0x434   : > { %v2884_v52 = vrot.slane %v2853_v36, 3  ;;  %v2512_v16 = vmax.f32 %v2484_v62, 0.0  ;;  %v2414_v7 = vpop.f32.mrb[137].mxu1  ;;  %v2583_v18 = vsel %vm1264_vm4, %v2580_v9, %v2582_v24  ;;  %v2585_v14 = vsel %vm1264_vm4, %v2582_v24, %v2584_v38 }
 0x435   : > { %v2804_v44 = vadd.f32 %v2803_v28, %v2802_v3  ;;  %v2723_v34 = vsel %vm1617_vm5, %v2720_v37, %v2722_v12  ;;  %v4577_v11 = vpop.f32.mrb[138].mxu1  ;;  %v2728_v5 = vrot.slane %v6198_v32, 6  ;;  %v6206_v50 = vadd.f32 %v2583_v18, %v7604_v41 }
 0x436   : > { %v2805_v40 = vsel %vm860_vm3, %v2723_v34, 0.0  ;;  %v6209_v8 = vadd.f32 %v2585_v14, %v7605_v23  ;;  %v2417_v59 = vpop.f32.mrb[139].mxu1  ;;  %v2885_v31 = vsel %vm1768_vm6, %v2882_v57, %v2884_v52  ;;  %v2588_v37 = vrot.slane %v2512_v16, 2 }
 0x437   : > { %v2806_v29 = vadd.f32 %v2805_v40, %v2804_v44  ;;  %v2515_v6 = vmax.f32 %v2487_v48, 0.0  ;;  %v2724_v51 = vrot.slane %v6206_v50, 6  ;;  %4589 = vmatmul.mubr.msk.bf16.gmra.mrb[136].mxu0 %vm860_vm3, %v2885_v31  ;;  %v2485_v9 = vadd.f32 %v6056_v19, %v2401_v56  ;;  %v7606_v56 = vld [vmem:[#allocation24_spill] sm:$0xff]  ;;  %v7608_v40 = vld [vmem:[#allocation31_spill] sm:$0xff] }
 0x438   : > { %v2726_v38 = vrot.slane %v6209_v8, 6  ;;  %v2490_v33 = vadd.f32 %v4576_v10, %v6056_v19  ;;  %v2589_v20 = vsel %vm1264_vm4, %v2586_v21, %v2588_v37  ;;  %4592 = vmatprep.mubr.msk.bf16.mxu0 %vm4830_vm0, %v7600_v35  ;;  %v2854_v57 = vpack.c.bf16 %v6137_v60, %v6134_v13  ;;  %v7607_v21 = vld [vmem:[#allocation33_spill] sm:$0xff] }
 0x439   : > { %v2594_v54 = vrot.slane %v2515_v6, 2  ;;  %v2488_v45 = vadd.f32 %v6056_v19, %v2414_v7  ;;  %v2725_v63 = vsel %vm1617_vm5, %v2722_v12, %v2724_v51  ;;  %v6227_v4 = vadd.f32 %v2589_v20, %v7606_v56 }
 0x43a   : > { %v2727_v22 = vsel %vm1617_vm5, %v2724_v51, %v2726_v38  ;;  %v2729_v47 = vsel %vm1617_vm5, %v2726_v38, %v2728_v5  ;;  %v2807_v28 = vsel %vm860_vm3, %v2725_v63, 0.0  ;;  %v2513_v2 = vmax.f32 %v2485_v9, 0.0 }
 0x43b   : > { %v2809_v0 = vsel %vm860_vm3, %v2727_v22, 0.0  ;;  %v2811_v17 = vsel %vm860_vm3, %v2729_v47, 0.0  ;;  %v2595_v15 = vsel %vm1264_vm4, %v2592_v46, %v2594_v54  ;;  %v2808_v13 = vadd.f32 %v2807_v28, %v2806_v29 }
 0x43c   : > { %v2730_v60 = vrot.slane %v6227_v4, 6  ;;  %v6235_v53 = vadd.f32 %v2595_v15, %v7607_v21  ;;  %v2518_v36 = vmax.f32 %v2490_v33, 0.0  ;;  %v2886_v62 = vrot.slane %v2854_v57, 3 }
 0x43d   : > { %v2516_v48 = vmax.f32 %v2488_v45, 0.0  ;;  %v2491_v3 = vadd.f32 %v4577_v11, %v6056_v19  ;;  %v2810_v12 = vadd.f32 %v2809_v0, %v2808_v13  ;;  %v2590_v10 = vrot.slane %v2513_v2, 2 }
 0x43e   : > { %v2731_v55 = vsel %vm1617_vm5, %v2728_v5, %v2730_v60  ;;  %v2736_v24 = vrot.slane %v6235_v53, 6  ;;  %v2600_v16 = vrot.slane %v2518_v36, 2  ;;  %v2887_v7 = vsel %vm1768_vm6, %v2884_v52, %v2886_v62  ;;  %v7609_v5 = vld [vmem:[#allocation25_spill] sm:$0xff] }
 0x43f   : > { %v2813_v26 = vsel %vm860_vm3, %v2731_v55, 0.0  ;;  %v2596_v44 = vrot.slane %v2516_v48, 2  ;;  %v2812_v34 = vadd.f32 %v2811_v17, %v2810_v12  ;;  %v2591_v18 = vsel %vm1264_vm4, %v2588_v37, %v2590_v10  ;;  %4593 = vmatmul.mubr.msk.bf16.gmra.mrb[140].mxu0 %vm860_vm3, %v2887_v7 }
 0x440   : > { %v2593_v14 = vsel %vm1264_vm4, %v2590_v10, %v2592_v46  ;;  %v2519_v11 = vmax.f32 %v2491_v3, 0.0  ;;  %v2654_v41 = vadd.f32 %v2591_v18, %v7608_v40  ;;  %v2489_v31 = vadd.f32 %v6056_v19, %v2417_v59  ;;  %4596 = vmatprep.mubr.msk.bf16.mxu0 %vm4830_vm0, %v7600_v35 }
 0x441   : > { %v2655_v23 = vadd.f32 %v2593_v14, %v7609_v5  ;;  %v2597_v29 = vsel %vm1264_vm4, %v2594_v54, %v2596_v44  ;;  %v2814_v52 = vadd.f32 %v2813_v26, %v2812_v34  ;;  %v2855_v46 = vpack.c.bf16 %v6149_v58, %v6122_v49 }
 0x442   : > { %v2657_v6 = vadd.f32 %v2597_v29, %v5952_v39  ;;  %v2602_v37 = vrot.slane %v2519_v11, 2  ;;  %v2732_v51 = vrot.slane %v2654_v41, 6  ;;  %v2517_v9 = vmax.f32 %v2489_v31, 0.0 }
 0x443   : > { %v2734_v38 = vrot.slane %v2655_v23, 6  ;;  %v2856_v33 = vpack.c.bf16 %v6168_v25, %v6165_v1  ;;  %v2888_v59 = vrot.slane %v2855_v46, 3  ;;  %v2857_v17 = vpack.c.bf16 %v6189_v30, %v6152_v61 }
 0x444   : > { %v2738_v20 = vrot.slane %v2657_v6, 6  ;;  %v2603_v54 = vsel %vm1264_vm4, %v2600_v16, %v2602_v37  ;;  %v2661_v19 = vadd.f32 %v2602_v37, %v5988_v42  ;;  %v2733_v57 = vsel %vm1617_vm5, %v2730_v60, %v2732_v51 }
 0x445   : > { %v2735_v39 = vsel %vm1617_vm5, %v2732_v51, %v2734_v38  ;;  %v2737_v45 = vsel %vm1617_vm5, %v2734_v38, %v2736_v24  ;;  %v2660_v49 = vadd.f32 %v2603_v54, %v5979_v43  ;;  %v2815_v58 = vsel %vm860_vm3, %v2733_v57, 0.0 }
 0x446   : > { %v2817_v63 = vsel %vm860_vm3, %v2735_v39, 0.0  ;;  %v2739_v1 = vsel %vm1617_vm5, %v2736_v24, %v2738_v20  ;;  %v2816_v25 = vadd.f32 %v2815_v58, %v2814_v52  ;;  %v2819_v22 = vsel %vm860_vm3, %v2737_v45, 0.0 }
 0x447   : > { %v2744_v47 = vrot.slane %v2660_v49, 6  ;;  %v2746_v42 = vrot.slane %v2661_v19, 6  ;;  %v2598_v56 = vrot.slane %v2517_v9, 2  ;;  %v2889_v28 = vsel %vm1768_vm6, %v2886_v62, %v2888_v59  ;;  %v7610_v62 = vld [vmem:[#allocation9_spill] sm:$0xff] }
 0x448   : > { %v2890_v0 = vrot.slane %v2856_v33, 3  ;;  %v2818_v15 = vadd.f32 %v2817_v63, %v2816_v25  ;;  %4597 = vmatmul.mubr.msk.bf16.gmra.mrb[144].mxu0 %vm860_vm3, %v2889_v28  ;;  %v2858_v13 = vpack.c.bf16 %v6209_v8, %v6206_v50  ;;  %v2859_v60 = vpack.c.bf16 %v6227_v4, %v6198_v32 }
 0x449   : > { %v2747_v43 = vsel %vm1617_vm5, %v2744_v47, %v2746_v42  ;;  %v2821_v21 = vsel %vm860_vm3, %v2739_v1, 0.0  ;;  %v2599_v2 = vsel %vm1264_vm4, %v2596_v44, %v2598_v56  ;;  %v2601_v36 = vsel %vm1264_vm4, %v2598_v56, %v2600_v16  ;;  %4600 = vmatprep.mubr.msk.bf16.mxu0 %vm4830_vm0, %v7600_v35 }
 0x44a   : > { %v2891_v61 = vsel %vm1768_vm6, %v2888_v59, %v2890_v0  ;;  %v2820_v30 = vadd.f32 %v2819_v22, %v2818_v15  ;;  %v2658_v48 = vadd.f32 %v2599_v2, %v7610_v62  ;;  %v2659_v3 = vadd.f32 %v2601_v36, %v5975_v27 }
 0x44b   : > { %v2892_v50 = vrot.slane %v2857_v17, 3  ;;  %v2894_v8 = vrot.slane %v2858_v13, 3  ;;  %v2896_v12 = vrot.slane %v2859_v60, 3  ;;  %v2860_v32 = vpack.c.bf16 %v2655_v23, %v2654_v41 }
 0x44c   : > { %v2861_v4 = vpack.c.bf16 %v2657_v6, %v6235_v53  ;;  %v2822_v55 = vadd.f32 %v2821_v21, %v2820_v30  ;;  %v2740_v24 = vrot.slane %v2658_v48, 6  ;;  %v2742_v10 = vrot.slane %v2659_v3, 6 }
 0x44d   : > { %v2893_v26 = vsel %vm1768_vm6, %v2890_v0, %v2892_v50  ;;  %v2895_v16 = vsel %vm1768_vm6, %v2892_v50, %v2894_v8  ;;  %v2897_v7 = vsel %vm1768_vm6, %v2894_v8, %v2896_v12  ;;  %v2898_v44 = vrot.slane %v2860_v32, 3 }
 0x44e   : > { %v2900_v34 = vrot.slane %v2861_v4, 3  ;;  %v2741_v18 = vsel %vm1617_vm5, %v2738_v20, %v2740_v24  ;;  %v2743_v27 = vsel %vm1617_vm5, %v2740_v24, %v2742_v10  ;;  %v2745_v14 = vsel %vm1617_vm5, %v2742_v10, %v2744_v47 }
 0x44f   : > { %v2862_v11 = vpack.c.bf16 %v2659_v3, %v2658_v48  ;;  %v2823_v53 = vsel %vm860_vm3, %v2741_v18, 0.0  ;;  %v2899_v40 = vsel %vm1768_vm6, %v2896_v12, %v2898_v44  ;;  %v2863_v29 = vpack.c.bf16 %v2660_v49, %v2660_v49 }
 0x450   : > { %v2824_v41 = vadd.f32 %v2823_v53, %v2822_v55  ;;  %4601 = vmatmul.mubr.msk.bf16.gmra.mrb[148].mxu0 %vm860_vm3, %v2891_v61  ;;  %v2901_v5 = vsel %vm1768_vm6, %v2898_v44, %v2900_v34  ;;  %v2825_v31 = vsel %vm860_vm3, %v2743_v27, 0.0  ;;  %v2827_v46 = vsel %vm860_vm3, %v2745_v14, 0.0 }
 0x451   : > { %v2902_v23 = vrot.slane %v2862_v11, 3  ;;  %4604 = vmatprep.mubr.msk.bf16.mxu0 %vm4830_vm0, %v7600_v35  ;;  %v2904_v37 = vrot.slane %v2863_v29, 3  ;;  %v2829_v9 = vsel %vm860_vm3, %v2747_v43, 0.0  ;;  %v3111_v20 = vlaneseq }
 0x452   : > { %v2826_v52 = vadd.f32 %v2825_v31, %v2824_v41 }
 0x453   : > { %v2903_v6 = vsel %vm1768_vm6, %v2900_v34, %v2902_v23  ;;  %v2905_v51 = vsel %vm1768_vm6, %v2902_v23, %v2904_v37  ;;  %v6322_v54 = vshrl.u32 %v3111_v20, 7 }
 0x454   : > { %v2828_v38 = vadd.f32 %v2827_v46, %v2826_v52 }
 0x455   : > { %vm3113_vm8 = vcmp.lt.s32.totalorder %v6322_v54, 7  ;;  %vm3244_vm9 = vcmp.lt.s32.totalorder %v6322_v54, 6  ;;  %vm3375_vm10 = vcmp.lt.s32.totalorder %v6322_v54, 4 }
 0x456   : > { %v6301_v33 = vadd.f32 %v2829_v9, %v2828_v38 }
 0x458   : > { %4605 = vmatmul.mubr.msk.bf16.gmra.mrb[152].mxu0 %vm860_vm3, %v2893_v26 }
 0x459   : > { %4608 = vmatprep.mubr.msk.bf16.mxu0 %vm4830_vm0, %v7600_v35 }
 0x460   : > { %4609 = vmatmul.mubr.msk.bf16.gmra.mrb[156].mxu0 %vm860_vm3, %v2895_v16 }
 0x461   : > { %4612 = vmatprep.mubr.msk.bf16.mxu0 %vm4830_vm0, %v7600_v35 }
 0x468   : > { %4613 = vmatmul.mubr.msk.bf16.gmra.mrb[160].mxu0 %vm860_vm3, %v2897_v7 }
 0x469   : > { %4616 = vmatprep.mubr.msk.bf16.mxu0 %vm4830_vm0, %v7600_v35 }
 0x470   : > { %4617 = vmatmul.mubr.msk.bf16.gmra.mrb[164].mxu0 %vm860_vm3, %v2899_v40 }
 0x471   : > { %4620 = vmatprep.mubr.msk.bf16.mxu0 %vm4830_vm0, %v7600_v35 }
 0x478   : > { %4621 = vmatmul.mubr.msk.bf16.gmra.mrb[168].mxu0 %vm860_vm3, %v2901_v5 }
 0x479   : > { %4624 = vmatprep.mubr.msk.bf16.mxu0 %vm4830_vm0, %v7600_v35 }
 0x480   : > { %4625 = vmatmul.mubr.msk.bf16.gmra.mrb[172].mxu0 %vm860_vm3, %v2903_v6 }
 0x481   : > { %4628 = vmatprep.mubr.msk.bf16.mxu0 %vm4830_vm0, %v7600_v35 }
 0x488   : > { %4629 = vmatmul.mubr.msk.bf16.gmra.mrb[176].mxu0 %vm860_vm3, %v2905_v51 }
 0x4f2   : > { %v6324_v19 = vpop.f32.mrb[128].mxu0 }
 0x4f3   : > { %v4582_v59 = vpop.f32.mrb[129].mxu0  ;;  %v3085_v39 = vrot.slane %v6324_v19, 1 }
 0x4f4   : > { %v6326_v57 = vpop.f32.mrb[130].mxu0 }
 0x4f5   : > { %v3086_v45 = vrot.slane %v6326_v57, 1  ;;  %v4583_v49 = vpop.f32.mrb[131].mxu0 }
 0x4f7   : > { %v6335_v35 = vsel %vm3113_vm8, %v3085_v39, %v3086_v45 }
 0x501   : > { %v6337_v58 = vpop.f32.mrb[132].mxu0 }
 0x502   : > { %v3087_v63 = vrot.slane %v6337_v58, 1  ;;  %v4586_v1 = vpop.f32.mrb[133].mxu0 }
 0x503   : > { %v6340_v25 = vpop.f32.mrb[134].mxu0 }
 0x504   : > { %v3088_v22 = vrot.slane %v6340_v25, 1  ;;  %v4587_v47 = vpop.f32.mrb[135].mxu0  ;;  %v6345_v42 = vsel %vm3113_vm8, %v3086_v45, %v3087_v63 }
 0x506   : > { %v6349_v56 = vsel %vm3113_vm8, %v3087_v63, %v3088_v22 }
 0x50a   : > { %v6351_v28 = vpop.f32.mrb[136].mxu0 }
 0x50b   : > { %v3089_v0 = vrot.slane %v6351_v28, 1  ;;  %v4590_v17 = vpop.f32.mrb[137].mxu0 }
 0x50c   : > { %v6354_v15 = vpop.f32.mrb[138].mxu0 }
 0x50d   : > { %v3090_v43 = vrot.slane %v6354_v15, 1  ;;  %v4591_v13 = vpop.f32.mrb[139].mxu0  ;;  %v6359_v60 = vsel %vm3113_vm8, %v3088_v22, %v3089_v0 }
 0x50f   : > { %v6363_v21 = vsel %vm3113_vm8, %v3089_v0, %v3090_v43 }
 0x512   : > { %v6365_v2 = vpop.f32.mrb[140].mxu0 }
 0x513   : > { %v3091_v36 = vrot.slane %v6365_v2, 1  ;;  %v4594_v61 = vpop.f32.mrb[141].mxu0 }
 0x514   : > { %v6368_v30 = vpop.f32.mrb[142].mxu0 }
 0x515   : > { %v3092_v62 = vrot.slane %v6368_v30, 1  ;;  %v4595_v48 = vpop.f32.mrb[143].mxu0  ;;  %v6373_v3 = vsel %vm3113_vm8, %v3090_v43, %v3091_v36 }
 0x517   : > { %v6377_v50 = vsel %vm3113_vm8, %v3091_v36, %v3092_v62 }
 0x51b   : > { %v6379_v8 = vpop.f32.mrb[144].mxu0 }
 0x51c   : > { %v3093_v12 = vrot.slane %v6379_v8, 1  ;;  %v4598_v32 = vpop.f32.mrb[145].mxu0 }
 0x51d   : > { %v6382_v4 = vpop.f32.mrb[146].mxu0 }
 0x51e   : > { %v3094_v55 = vrot.slane %v6382_v4, 1  ;;  %v4599_v24 = vpop.f32.mrb[147].mxu0  ;;  %v6387_v10 = vsel %vm3113_vm8, %v3092_v62, %v3093_v12 }
 0x520   : > { %v6391_v26 = vsel %vm3113_vm8, %v3093_v12, %v3094_v55 }
 0x523   : > { %v6393_v16 = vpop.f32.mrb[148].mxu0 }
 0x524   : > { %v3095_v7 = vrot.slane %v6393_v16, 1  ;;  %v4602_v44 = vpop.f32.mrb[149].mxu0 }
 0x525   : > { %v6396_v34 = vpop.f32.mrb[150].mxu0 }
 0x526   : > { %v3096_v18 = vrot.slane %v6396_v34, 1  ;;  %v4603_v27 = vpop.f32.mrb[151].mxu0  ;;  %v6401_v14 = vsel %vm3113_vm8, %v3094_v55, %v3095_v7 }
 0x528   : > { %v6405_v11 = vsel %vm3113_vm8, %v3095_v7, %v3096_v18 }
 0x52b   : > { %v6407_v53 = vpop.f32.mrb[152].mxu0 }
 0x52c   : > { %v3097_v40 = vrot.slane %v6407_v53, 1  ;;  %v4606_v41 = vpop.f32.mrb[153].mxu0 }
 0x52d   : > { %v6410_v5 = vpop.f32.mrb[154].mxu0 }
 0x52e   : > { %v3098_v23 = vrot.slane %v6410_v5, 1  ;;  %v4607_v29 = vpop.f32.mrb[155].mxu0  ;;  %v6415_v31 = vsel %vm3113_vm8, %v3096_v18, %v3097_v40 }
 0x530   : > { %v6419_v52 = vsel %vm3113_vm8, %v3097_v40, %v3098_v23 }
 0x533   : > { %v6421_v6 = vpop.f32.mrb[156].mxu0 }
 0x534   : > { %v3099_v37 = vrot.slane %v6421_v6, 1  ;;  %v4610_v46 = vpop.f32.mrb[157].mxu0 }
 0x535   : > { %v6424_v51 = vpop.f32.mrb[158].mxu0 }
 0x536   : > { %v3100_v38 = vrot.slane %v6424_v51, 1  ;;  %v4611_v9 = vpop.f32.mrb[159].mxu0  ;;  %v6429_v20 = vsel %vm3113_vm8, %v3098_v23, %v3099_v37 }
 0x538   : > { %v6433_v59 = vsel %vm3113_vm8, %v3099_v37, %v3100_v38 }
 0x53b   : > { %v6435_v45 = vpop.f32.mrb[160].mxu0 }
 0x53c   : > { %v3101_v49 = vrot.slane %v6435_v45, 1  ;;  %v4614_v63 = vpop.f32.mrb[161].mxu0 }
 0x53d   : > { %v6438_v1 = vpop.f32.mrb[162].mxu0 }
 0x53e   : > { %v3102_v22 = vrot.slane %v6438_v1, 1  ;;  %v4615_v47 = vpop.f32.mrb[163].mxu0  ;;  %v3123_v0 = vsel %vm3113_vm8, %v3100_v38, %v3101_v49 }
 0x53f   : > { %3170 = vrot.lane.b32.xlu0 %v3123_v0, %s4831_s18 }
 0x540   : > { %v3122_v17 = vsel %vm3113_vm8, %v3101_v49, %v3102_v22 }
 0x543   : > { %3172 = vrot.lane.b32.xlu0 %v3122_v17, %s4831_s18  ;;  %v6447_v43 = vpop.f32.mrb[164].mxu0 }
 0x544   : > { %v3103_v13 = vrot.slane %v6447_v43, 1  ;;  %v4618_v36 = vpop.f32.mrb[165].mxu0 }
 0x545   : > { %v6450_v61 = vpop.f32.mrb[166].mxu0 }
 0x546   : > { %v3104_v62 = vrot.slane %v6450_v61, 1  ;;  %v4619_v48 = vpop.f32.mrb[167].mxu0  ;;  %v3121_v12 = vsel %vm3113_vm8, %v3102_v22, %v3103_v13 }
 0x547   : > { %3174 = vrot.lane.b32.xlu1 %v3121_v12, %s4831_s18 }
 0x548   : > { %v3120_v32 = vsel %vm3113_vm8, %v3103_v13, %v3104_v62 }
 0x54b   : > { %3176 = vrot.lane.b32.xlu1 %v3120_v32, %s4831_s18  ;;  %v6459_v55 = vpop.f32.mrb[168].mxu0 }
 0x54c   : > { %v3105_v24 = vrot.slane %v6459_v55, 1  ;;  %v4622_v7 = vpop.f32.mrb[169].mxu0 }
 0x54d   : > { %v6462_v44 = vpop.f32.mrb[170].mxu0 }
 0x54e   : > { %v3106_v18 = vrot.slane %v6462_v44, 1  ;;  %v4623_v27 = vpop.f32.mrb[171].mxu0  ;;  %v3119_v40 = vsel %vm3113_vm8, %v3104_v62, %v3105_v24 }
 0x54f   : > { %3178 = vrot.lane.b32.xlu0 %v3119_v40, %s4831_s18 }
 0x550   : > { %v3118_v41 = vsel %vm3113_vm8, %v3105_v24, %v3106_v18 }
 0x551   : > { %3180 = vrot.lane.b32.xlu1 %v3118_v41, %s4831_s18 }
 0x553   : > { %v6471_v23 = vpop.f32.mrb[172].mxu0 }
 0x554   : > { %v3107_v29 = vrot.slane %v6471_v23, 1  ;;  %v4626_v37 = vpop.f32.mrb[173].mxu0 }
 0x555   : > { %v6474_v46 = vpop.f32.mrb[174].mxu0 }
 0x556   : > { %v3108_v38 = vrot.slane %v6474_v46, 1  ;;  %v4627_v9 = vpop.f32.mrb[175].mxu0  ;;  %v3117_v49 = vsel %vm3113_vm8, %v3106_v18, %v3107_v29 }
 0x557   : > { %3182 = vrot.lane.b32.xlu0 %v3117_v49, %s4831_s18 }
 0x558   : > { %v3116_v63 = vsel %vm3113_vm8, %v3107_v29, %v3108_v38 }
 0x559   : > { %3184 = vrot.lane.b32.xlu1 %v3116_v63, %s4831_s18 }
 0x55b   : > { %v6483_v22 = vpop.f32.mrb[176].mxu0 }
 0x55c   : > { %v3109_v47 = vrot.slane %v6483_v22, 1  ;;  %v4630_v0 = vpop.f32.mrb[177].mxu0 }
 0x55d   : > { %v6486_v17 = vpop.f32.mrb[178].mxu0 }
 0x55e   : > { %v3110_v13 = vrot.slane %v6486_v17, 1  ;;  %v4631_v36 = vpop.f32.mrb[179].mxu0  ;;  %v3115_v62 = vsel %vm3113_vm8, %v3108_v38, %v3109_v47 }
 0x55f   : > { %3186 = vrot.lane.b32.xlu0 %v3115_v62, %s4831_s18 }
 0x560   : > { %v3114_v48 = vsel %vm3113_vm8, %v3109_v47, %v3110_v13  ;;  %v3139_v12 = vsel %vm3113_vm8, %v3110_v13, %v3085_v39 }
 0x561   : > { %3188 = vrot.lane.b32.xlu1 %v3114_v48, %s4831_s18 }
 0x563   : > { %3190 = vrot.lane.b32.xlu0 %v3139_v12, %s4831_s18 }
 0x565   : > { %3140 = vrot.lane.b32.xlu1 %v6335_v35, %s4831_s18 }
 0x567   : > { %3142 = vrot.lane.b32.xlu0 %v6345_v42, %s4831_s18 }
 0x569   : > { %3144 = vrot.lane.b32.xlu1 %v6349_v56, %s4831_s18 }
 0x56b   : > { %3146 = vrot.lane.b32.xlu0 %v6359_v60, %s4831_s18 }
 0x56d   : > { %3148 = vrot.lane.b32.xlu1 %v6363_v21, %s4831_s18 }
 0x56f   : > { %3150 = vrot.lane.b32.xlu0 %v6373_v3, %s4831_s18 }
 0x571   : > { %3152 = vrot.lane.b32.xlu1 %v6377_v50, %s4831_s18 }
 0x573   : > { %3154 = vrot.lane.b32.xlu0 %v6387_v10, %s4831_s18 }
 0x575   : > { %3156 = vrot.lane.b32.xlu1 %v6391_v26, %s4831_s18 }
 0x577   : > { %3158 = vrot.lane.b32.xlu0 %v6401_v14, %s4831_s18 }
 0x579   : > { %3160 = vrot.lane.b32.xlu1 %v6405_v11, %s4831_s18 }
 0x57b   : > { %3162 = vrot.lane.b32.xlu0 %v6415_v31, %s4831_s18 }
 0x57d   : > { %3164 = vrot.lane.b32.xlu1 %v6419_v52, %s4831_s18 }
 0x57f   : > { %3166 = vrot.lane.b32.xlu0 %v6429_v20, %s4831_s18 }
 0x581   : > { %3168 = vrot.lane.b32.xlu1 %v6433_v59, %s4831_s18 }
 0x5b1   : > { %v3171_v39 = vpop.permute.xlu0 %3170 }
 0x5b2   : > { %v6531_v35 = vadd.f32 %v3171_v39, %v6424_v51 }
 0x5b4   : > { %v3233_v60 = vrot.slane %v6531_v35, 2 }
 0x5b5   : > { %v3173_v42 = vpop.permute.xlu0 %3172 }
 0x5b6   : > { %v6534_v56 = vadd.f32 %v3173_v42, %v6435_v45 }
 0x5b8   : > { %v3234_v21 = vrot.slane %v6534_v56, 2 }
 0x5b9   : > { %v3175_v3 = vpop.permute.xlu1 %3174 }
 0x5ba   : > { %v6540_v50 = vadd.f32 %v3175_v3, %v6438_v1  ;;  %v3254_v10 = vsel %vm3244_vm9, %v3233_v60, %v3234_v21 }
 0x5bb   : > { %3301 = vrot.lane.b32.xlu0 %v3254_v10, %s4832_s19 }
 0x5bc   : > { %v3235_v26 = vrot.slane %v6540_v50, 2 }
 0x5bd   : > { %v3177_v14 = vpop.permute.xlu1 %3176 }
 0x5be   : > { %v6549_v11 = vadd.f32 %v3177_v14, %v6447_v43  ;;  %v3253_v31 = vsel %vm3244_vm9, %v3234_v21, %v3235_v26 }
 0x5bf   : > { %3303 = vrot.lane.b32.xlu1 %v3253_v31, %s4832_s19 }
 0x5c0   : > { %v3236_v52 = vrot.slane %v6549_v11, 2 }
 0x5c1   : > { %v3179_v51 = vpop.permute.xlu0 %3178 }
 0x5c2   : > { %v6556_v20 = vadd.f32 %v3179_v51, %v6450_v61  ;;  %v3252_v59 = vsel %vm3244_vm9, %v3235_v26, %v3236_v52 }
 0x5c3   : > { %v3181_v45 = vpop.permute.xlu1 %3180  ;;  %3305 = vrot.lane.b32.xlu0 %v3252_v59, %s4832_s19 }
 0x5c4   : > { %v3237_v1 = vrot.slane %v6556_v20, 2  ;;  %v6563_v43 = vadd.f32 %v3181_v45, %v6459_v55 }
 0x5c6   : > { %v3238_v32 = vrot.slane %v6563_v43, 2  ;;  %v3251_v24 = vsel %vm3244_vm9, %v3236_v52, %v3237_v1 }
 0x5c7   : > { %3307 = vrot.lane.b32.xlu1 %v3251_v24, %s4832_s19 }
 0x5c8   : > { %v3250_v61 = vsel %vm3244_vm9, %v3237_v1, %v3238_v32 }
 0x5c9   : > { %v3183_v7 = vpop.permute.xlu0 %3182  ;;  %3309 = vrot.lane.b32.xlu0 %v3250_v61, %s4832_s19 }
 0x5ca   : > { %v6573_v18 = vadd.f32 %v3183_v7, %v6462_v44 }
 0x5cb   : > { %v3185_v27 = vpop.permute.xlu1 %3184 }
 0x5cc   : > { %v3239_v55 = vrot.slane %v6573_v18, 2  ;;  %v6577_v40 = vadd.f32 %v3185_v27, %v6471_v23 }
 0x5ce   : > { %v3240_v41 = vrot.slane %v6577_v40, 2  ;;  %v3249_v29 = vsel %vm3244_vm9, %v3238_v32, %v3239_v55 }
 0x5cf   : > { %3311 = vrot.lane.b32.xlu1 %v3249_v29, %s4832_s19 }
 0x5d0   : > { %v3248_v37 = vsel %vm3244_vm9, %v3239_v55, %v3240_v41 }
 0x5d1   : > { %v3187_v38 = vpop.permute.xlu0 %3186  ;;  %3313 = vrot.lane.b32.xlu0 %v3248_v37, %s4832_s19 }
 0x5d2   : > { %v6587_v44 = vadd.f32 %v3187_v38, %v6474_v46 }
 0x5d3   : > { %v3189_v9 = vpop.permute.xlu1 %3188 }
 0x5d4   : > { %v3241_v23 = vrot.slane %v6587_v44, 2  ;;  %v6591_v49 = vadd.f32 %v3189_v9, %v6483_v22 }
 0x5d5   : > { %v3191_v63 = vpop.permute.xlu0 %3190 }
 0x5d6   : > { %v3242_v47 = vrot.slane %v6591_v49, 2  ;;  %v6595_v0 = vadd.f32 %v3191_v63, %v6486_v17  ;;  %v3247_v13 = vsel %vm3244_vm9, %v3240_v41, %v3241_v23 }
 0x5d7   : > { %3315 = vrot.lane.b32.xlu1 %v3247_v13, %s4832_s19  ;;  %v3141_v36 = vpop.permute.xlu1 %3140 }
 0x5d8   : > { %v3243_v46 = vrot.slane %v6595_v0, 2  ;;  %v6602_v62 = vadd.f32 %v3141_v36, %v6324_v19  ;;  %v3246_v22 = vsel %vm3244_vm9, %v3241_v23, %v3242_v47 }
 0x5d9   : > { %v3143_v48 = vpop.permute.xlu0 %3142  ;;  %3317 = vrot.lane.b32.xlu0 %v3246_v22, %s4832_s19 }
 0x5da   : > { %v3218_v17 = vrot.slane %v6602_v62, 2  ;;  %v6609_v12 = vadd.f32 %v3143_v48, %v6326_v57  ;;  %v3245_v39 = vsel %vm3244_vm9, %v3242_v47, %v3243_v46 }
 0x5db   : > { %3319 = vrot.lane.b32.xlu1 %v3245_v39, %s4832_s19  ;;  %v3145_v42 = vpop.permute.xlu1 %3144 }
 0x5dc   : > { %v3219_v19 = vrot.slane %v6609_v12, 2  ;;  %v6616_v21 = vadd.f32 %v3145_v42, %v6337_v58  ;;  %v3270_v3 = vsel %vm3244_vm9, %v3243_v46, %v3218_v17 }
 0x5dd   : > { %v3147_v10 = vpop.permute.xlu0 %3146  ;;  %3321 = vrot.lane.b32.xlu0 %v3270_v3, %s4832_s19 }
 0x5de   : > { %v3220_v57 = vrot.slane %v6616_v21, 2  ;;  %v6623_v26 = vadd.f32 %v3147_v10, %v6340_v25  ;;  %v3269_v14 = vsel %vm3244_vm9, %v3218_v17, %v3219_v19 }
 0x5df   : > { %3271 = vrot.lane.b32.xlu1 %v3269_v14, %s4832_s19  ;;  %v3149_v31 = vpop.permute.xlu1 %3148 }
 0x5e0   : > { %v3221_v58 = vrot.slane %v6623_v26, 2  ;;  %v6630_v52 = vadd.f32 %v3149_v31, %v6351_v28  ;;  %v3268_v51 = vsel %vm3244_vm9, %v3219_v19, %v3220_v57 }
 0x5e1   : > { %v3151_v59 = vpop.permute.xlu0 %3150  ;;  %3273 = vrot.lane.b32.xlu0 %v3268_v51, %s4832_s19 }
 0x5e2   : > { %v3222_v25 = vrot.slane %v6630_v52, 2  ;;  %v6637_v45 = vadd.f32 %v3151_v59, %v6354_v15  ;;  %v3267_v1 = vsel %vm3244_vm9, %v3220_v57, %v3221_v58 }
 0x5e3   : > { %3275 = vrot.lane.b32.xlu1 %v3267_v1, %s4832_s19  ;;  %v3153_v32 = vpop.permute.xlu1 %3152 }
 0x5e4   : > { %v3223_v28 = vrot.slane %v6637_v45, 2  ;;  %v6644_v24 = vadd.f32 %v3153_v32, %v6365_v2  ;;  %v3266_v61 = vsel %vm3244_vm9, %v3221_v58, %v3222_v25 }
 0x5e5   : > { %v3155_v7 = vpop.permute.xlu0 %3154  ;;  %3277 = vrot.lane.b32.xlu0 %v3266_v61, %s4832_s19 }
 0x5e6   : > { %v3224_v15 = vrot.slane %v6644_v24, 2  ;;  %v6651_v27 = vadd.f32 %v3155_v7, %v6368_v30  ;;  %v3265_v55 = vsel %vm3244_vm9, %v3222_v25, %v3223_v28 }
 0x5e7   : > { %3279 = vrot.lane.b32.xlu1 %v3265_v55, %s4832_s19  ;;  %v3157_v41 = vpop.permute.xlu1 %3156 }
 0x5e8   : > { %v3225_v2 = vrot.slane %v6651_v27, 2  ;;  %v6658_v29 = vadd.f32 %v3157_v41, %v6379_v8  ;;  %v3264_v37 = vsel %vm3244_vm9, %v3223_v28, %v3224_v15 }
 0x5e9   : > { %v3159_v38 = vpop.permute.xlu0 %3158  ;;  %3281 = vrot.lane.b32.xlu0 %v3264_v37, %s4832_s19 }
 0x5ea   : > { %v3226_v30 = vrot.slane %v6658_v29, 2  ;;  %v6665_v9 = vadd.f32 %v3159_v38, %v6382_v4  ;;  %v3263_v23 = vsel %vm3244_vm9, %v3224_v15, %v3225_v2 }
 0x5eb   : > { %3283 = vrot.lane.b32.xlu1 %v3263_v23, %s4832_s19  ;;  %v3161_v63 = vpop.permute.xlu1 %3160 }
 0x5ec   : > { %v3227_v8 = vrot.slane %v6665_v9, 2  ;;  %v6672_v47 = vadd.f32 %v3161_v63, %v6393_v16  ;;  %v3262_v13 = vsel %vm3244_vm9, %v3225_v2, %v3226_v30 }
 0x5ed   : > { %v3163_v36 = vpop.permute.xlu0 %3162  ;;  %3285 = vrot.lane.b32.xlu0 %v3262_v13, %s4832_s19 }
 0x5ee   : > { %v3228_v4 = vrot.slane %v6672_v47, 2  ;;  %v6679_v46 = vadd.f32 %v3163_v36, %v6396_v34  ;;  %v3261_v22 = vsel %vm3244_vm9, %v3226_v30, %v3227_v8 }
 0x5ef   : > { %3287 = vrot.lane.b32.xlu1 %v3261_v22, %s4832_s19  ;;  %v3165_v48 = vpop.permute.xlu1 %3164 }
 0x5f0   : > { %v6685_v16 = vadd.f32 %v3165_v48, %v6407_v53  ;;  %v3260_v17 = vsel %vm3244_vm9, %v3227_v8, %v3228_v4  ;;  %v3229_v42 = vrot.slane %v6679_v46, 2 }
 0x5f1   : > { %v3167_v39 = vpop.permute.xlu0 %3166  ;;  %3289 = vrot.lane.b32.xlu0 %v3260_v17, %s4832_s19 }
 0x5f2   : > { %v3230_v34 = vrot.slane %v6685_v16, 2  ;;  %v6693_v19 = vadd.f32 %v3167_v39, %v6410_v5  ;;  %v3259_v58 = vsel %vm3244_vm9, %v3228_v4, %v3229_v42 }
 0x5f3   : > { %v3169_v3 = vpop.permute.xlu1 %3168 }
 0x5f4   : > { %v3231_v10 = vrot.slane %v6693_v19, 2  ;;  %v6697_v57 = vadd.f32 %v3169_v3, %v6421_v6  ;;  %v3258_v53 = vsel %vm3244_vm9, %v3229_v42, %v3230_v34 }
 0x5f5   : > { %3293 = vrot.lane.b32.xlu1 %v3258_v53, %s4832_s19 }
 0x5f6   : > { %v3232_v14 = vrot.slane %v6697_v57, 2  ;;  %v3257_v31 = vsel %vm3244_vm9, %v3230_v34, %v3231_v10 }
 0x5f7   : > { %3295 = vrot.lane.b32.xlu0 %v3257_v31, %s4832_s19 }
 0x5f8   : > { %v3256_v5 = vsel %vm3244_vm9, %v3231_v10, %v3232_v14  ;;  %v3255_v6 = vsel %vm3244_vm9, %v3232_v14, %v3233_v60 }
 0x5f9   : > { %3297 = vrot.lane.b32.xlu1 %v3256_v5, %s4832_s19 }
 0x5fb   : > { %3299 = vrot.lane.b32.xlu0 %v3255_v6, %s4832_s19 }
 0x5fd   : > { %3291 = vrot.lane.b32.xlu1 %v3259_v58, %s4832_s19 }
 0x62d   : > { %v3302_v51 = vpop.permute.xlu0 %3301 }
 0x62e   : > { %v6718_v59 = vadd.f32 %v3302_v51, %v6531_v35 }
 0x630   : > { %v3364_v60 = vrot.slane %v6718_v59, 4 }
 0x631   : > { %v3304_v25 = vpop.permute.xlu1 %3303 }
 0x632   : > { %v6721_v1 = vadd.f32 %v3304_v25, %v6534_v56 }
 0x634   : > { %v3365_v32 = vrot.slane %v6721_v1, 4 }
 0x635   : > { %v3306_v28 = vpop.permute.xlu0 %3305 }
 0x636   : > { %v3385_v61 = vsel %vm3375_vm10, %v3364_v60, %v3365_v32  ;;  %v6734_v35 = vadd.f32 %v3306_v28, %v6540_v50 }
 0x637   : > { %3432 = vrot.lane.b32.xlu0 %v3385_v61, %s4833_s20 }
 0x638   : > { %v3366_v15 = vrot.slane %v6734_v35, 4 }
 0x639   : > { %v3308_v56 = vpop.permute.xlu1 %3307 }
 0x63a   : > { %v6737_v7 = vadd.f32 %v3308_v56, %v6549_v11 }
 0x63b   : > { %v3310_v41 = vpop.permute.xlu0 %3309 }
 0x63c   : > { %v3367_v55 = vrot.slane %v6737_v7, 4  ;;  %v6747_v37 = vadd.f32 %v3310_v41, %v6556_v20 }
 0x63e   : > { %v3383_v2 = vsel %vm3375_vm10, %v3366_v15, %v3367_v55  ;;  %v3368_v11 = vrot.slane %v6747_v37, 4 }
 0x63f   : > { %3436 = vrot.lane.b32.xlu0 %v3383_v2, %s4833_s20 }
 0x641   : > { %v3312_v50 = vpop.permute.xlu1 %3311 }
 0x642   : > { %v6750_v38 = vadd.f32 %v3312_v50, %v6563_v43  ;;  %v3384_v50 = vsel %vm3375_vm10, %v3365_v32, %v3366_v15  ;;  %v3382_v32 = vsel %vm3375_vm10, %v3367_v55, %v3368_v11 }
 0x643   : > { %v3314_v23 = vpop.permute.xlu0 %3313 }
 0x644   : > { %v3369_v30 = vrot.slane %v6750_v38, 4  ;;  %v6760_v8 = vadd.f32 %v3314_v23, %v6573_v18 }
 0x646   : > { %v3381_v63 = vsel %vm3375_vm10, %v3368_v11, %v3369_v30  ;;  %v3370_v36 = vrot.slane %v6760_v8, 4 }
 0x647   : > { %3440 = vrot.lane.b32.xlu0 %v3381_v63, %s4833_s20 }
 0x648   : > { %v3380_v55 = vsel %vm3375_vm10, %v3369_v30, %v3370_v36 }
 0x649   : > { %v3316_v20 = vpop.permute.xlu1 %3315 }
 0x64a   : > { %v6763_v13 = vadd.f32 %v3316_v20, %v6577_v40 }
 0x64b   : > { %v3318_v43 = vpop.permute.xlu0 %3317 }
 0x64c   : > { %v3371_v4 = vrot.slane %v6763_v13, 4  ;;  %v6768_v22 = vadd.f32 %v3318_v43, %v6587_v44 }
 0x64d   : > { %v3320_v48 = vpop.permute.xlu1 %3319 }
 0x64e   : > { %v6771_v17 = vadd.f32 %v3320_v48, %v6591_v49  ;;  %v3379_v18 = vsel %vm3375_vm10, %v3370_v36, %v3371_v4  ;;  %v3372_v40 = vrot.slane %v6768_v22, 4 }
 0x64f   : > { %v3322_v39 = vpop.permute.xlu0 %3321  ;;  %3444 = vrot.lane.b32.xlu0 %v3379_v18, %s4833_s20 }
 0x650   : > { %v3373_v42 = vrot.slane %v6771_v17, 4  ;;  %v6779_v34 = vadd.f32 %v3322_v39, %v6595_v0 }
 0x651   : > { %v3272_v3 = vpop.permute.xlu1 %3271 }
 0x652   : > { %v6782_v44 = vadd.f32 %v3272_v3, %v6602_v62  ;;  %v3377_v49 = vsel %vm3375_vm10, %v3372_v40, %v3373_v42  ;;  %v3374_v53 = vrot.slane %v6779_v34, 4 }
 0x653   : > { %v3274_v10 = vpop.permute.xlu0 %3273  ;;  %3448 = vrot.lane.b32.xlu0 %v3377_v49, %s4833_s20 }
 0x654   : > { %v3349_v14 = vrot.slane %v6782_v44, 4  ;;  %v6790_v31 = vadd.f32 %v3274_v10, %v6609_v12 }
 0x655   : > { %v3276_v5 = vpop.permute.xlu1 %3275 }
 0x656   : > { %v3350_v0 = vrot.slane %v6790_v31, 4  ;;  %v6794_v6 = vadd.f32 %v3276_v5, %v6616_v21  ;;  %v3401_v62 = vsel %vm3375_vm10, %v3374_v53, %v3349_v14 }
 0x657   : > { %v3278_v58 = vpop.permute.xlu0 %3277  ;;  %3452 = vrot.lane.b32.xlu0 %v3401_v62, %s4833_s20  ;;  %v3376_v62 = vsel %vm3375_vm10, %v3373_v42, %v3374_v53 }
 0x658   : > { %v3351_v51 = vrot.slane %v6794_v6, 4  ;;  %v6801_v25 = vadd.f32 %v3278_v58, %v6623_v26  ;;  %v3400_v12 = vsel %vm3375_vm10, %v3349_v14, %v3350_v0 }
 0x659   : > { %3402 = vrot.lane.b32.xlu1 %v3400_v12, %s4833_s20  ;;  %v3280_v28 = vpop.permute.xlu1 %3279 }
 0x65a   : > { %v6807_v21 = vadd.f32 %v3280_v28, %v6630_v52  ;;  %v3399_v61 = vsel %vm3375_vm10, %v3350_v0, %v3351_v51  ;;  %v3352_v41 = vrot.slane %v6801_v25, 4 }
 0x65b   : > { %v3282_v56 = vpop.permute.xlu0 %3281  ;;  %3404 = vrot.lane.b32.xlu0 %v3399_v61, %s4833_s20 }
 0x65c   : > { %v3353_v26 = vrot.slane %v6807_v21, 4  ;;  %v6815_v2 = vadd.f32 %v3282_v56, %v6637_v45 }
 0x65d   : > { %3434 = vrot.lane.b32.xlu1 %v3384_v50, %s4833_s20  ;;  %v3284_v52 = vpop.permute.xlu1 %3283 }
 0x65e   : > { %v6823_v23 = vadd.f32 %v3284_v52, %v6644_v24  ;;  %v3397_v63 = vsel %vm3375_vm10, %v3352_v41, %v3353_v26  ;;  %v3354_v45 = vrot.slane %v6815_v2, 4 }
 0x65f   : > { %v3286_v20 = vpop.permute.xlu0 %3285  ;;  %3408 = vrot.lane.b32.xlu0 %v3397_v63, %s4833_s20 }
 0x660   : > { %v3355_v43 = vrot.slane %v6823_v23, 4  ;;  %v6831_v48 = vadd.f32 %v3286_v20, %v6651_v27  ;;  %v3396_v56 = vsel %vm3375_vm10, %v3353_v26, %v3354_v45 }
 0x661   : > { %3438 = vrot.lane.b32.xlu1 %v3382_v32, %s4833_s20  ;;  %v3288_v24 = vpop.permute.xlu1 %3287 }
 0x662   : > { %v3356_v15 = vrot.slane %v6831_v48, 4  ;;  %v6840_v18 = vadd.f32 %v3288_v24, %v6658_v29  ;;  %v3395_v39 = vsel %vm3375_vm10, %v3354_v45, %v3355_v43 }
 0x663   : > { %v3290_v3 = vpop.permute.xlu0 %3289  ;;  %3412 = vrot.lane.b32.xlu0 %v3395_v39, %s4833_s20 }
 0x664   : > { %v6846_v27 = vadd.f32 %v3290_v3, %v6665_v9  ;;  %v6854_v11 = vsel %vm3375_vm10, %v3355_v43, %v3356_v15  ;;  %v3357_v29 = vrot.slane %v6840_v18, 4  ;;  %v3378_v9 = vsel %vm3375_vm10, %v3371_v4, %v3372_v40 }
 0x665   : > { %3442 = vrot.lane.b32.xlu1 %v3380_v55, %s4833_s20 }
 0x666   : > { %v3358_v49 = vrot.slane %v6846_v27, 4 }
 0x667   : > { %v3294_v10 = vpop.permute.xlu1 %3293 }
 0x668   : > { %v3392_v14 = vsel %vm3375_vm10, %v3357_v29, %v3358_v49  ;;  %v6890_v53 = vadd.f32 %v3294_v10, %v6679_v46  ;;  %v3393_v46 = vsel %vm3375_vm10, %v3356_v15, %v3357_v29 }
 0x669   : > { %v3296_v5 = vpop.permute.xlu0 %3295  ;;  %3446 = vrot.lane.b32.xlu1 %v3378_v9, %s4833_s20  ;;  %3418 = vrot.lane.b32.xlu0 %v3392_v14, %s4833_s20 }
 0x66a   : > { %v6866_v30 = vadd.f32 %v3296_v5, %v6685_v16 }
 0x66b   : > { %v3298_v36 = vpop.permute.xlu1 %3297 }
 0x66c   : > { %v6869_v0 = vadd.f32 %v3298_v36, %v6693_v19  ;;  %v3361_v4 = vrot.slane %v6866_v30, 4  ;;  %v3398_v19 = vsel %vm3375_vm10, %v3351_v51, %v3352_v41  ;;  %v3360_v51 = vrot.slane %v6890_v53, 4 }
 0x66d   : > { %v3300_v58 = vpop.permute.xlu0 %3299  ;;  %3450 = vrot.lane.b32.xlu1 %v3376_v62, %s4833_s20 }
 0x66e   : > { %v3362_v40 = vrot.slane %v6869_v0, 4  ;;  %v6877_v12 = vadd.f32 %v3300_v58, %v6697_v57  ;;  %v3389_v26 = vsel %vm3375_vm10, %v3360_v51, %v3361_v4 }
 0x66f   : > { %v3292_v28 = vpop.permute.xlu1 %3291 }
 0x670   : > { %v3363_v16 = vrot.slane %v6877_v12, 4  ;;  %v6881_v61 = vadd.f32 %v3292_v28, %v6672_v47  ;;  %v3388_v42 = vsel %vm3375_vm10, %v3361_v4, %v3362_v40 }
 0x671   : > { %3406 = vrot.lane.b32.xlu1 %v3398_v19, %s4833_s20  ;;  %3426 = vrot.lane.b32.xlu0 %v3388_v42, %s4833_s20 }
 0x672   : > { %v3359_v57 = vrot.slane %v6881_v61, 4  ;;  %v3386_v47 = vsel %vm3375_vm10, %v3363_v16, %v3364_v60  ;;  %v3387_v60 = vsel %vm3375_vm10, %v3362_v40, %v3363_v16 }
 0x674   : > { %v3390_v41 = vsel %vm3375_vm10, %v3359_v57, %v3360_v51  ;;  %v3391_v50 = vsel %vm3375_vm10, %v3358_v49, %v3359_v57 }
 0x675   : > { %3410 = vrot.lane.b32.xlu1 %v3396_v56, %s4833_s20  ;;  %3430 = vrot.lane.b32.xlu0 %v3386_v47, %s4833_s20 }
 0x679   : > { %3416 = vrot.lane.b32.xlu1 %v3393_v46, %s4833_s20  ;;  %3422 = vrot.lane.b32.xlu0 %v3390_v41, %s4833_s20 }
 0x67d   : > { %3424 = vrot.lane.b32.xlu1 %v3389_v26, %s4833_s20 }
 0x681   : > { %3428 = vrot.lane.b32.xlu1 %v3387_v60, %s4833_s20 }
 0x685   : > { %3420 = vrot.lane.b32.xlu1 %v3391_v50, %s4833_s20 }
 0x6a9   : > { %v3433_v52 = vpop.permute.xlu0 %3432 }
 0x6aa   : > { %v6918_v63 = vadd.f32 %v3433_v52, %v6718_v59 }
 0x6ac   : > { %3508 = vrot.lane.b32.xlu0 %v6918_v63, %s4834_s22 }
 0x6b1   : > { %v3437_v20 = vpop.permute.xlu0 %3436 }
 0x6b2   : > { %v6928_v59 = vadd.f32 %v3437_v20, %v6734_v35 }
 0x6b9   : > { %v3441_v45 = vpop.permute.xlu0 %3440 }
 0x6ba   : > { %v6938_v29 = vadd.f32 %v3441_v45, %v6747_v37 }
 0x6c1   : > { %v3445_v43 = vpop.permute.xlu0 %3444 }
 0x6c5   : > { %v3449_v54 = vpop.permute.xlu0 %3448 }
 0x6c9   : > { %v3453_v55 = vpop.permute.xlu0 %3452 }
 0x6cb   : > { %v3403_v32 = vpop.permute.xlu1 %3402 }
 0x6cc   : > { %v6968_v5 = vadd.f32 %v3403_v32, %v6782_v44 }
 0x6cd   : > { %v3405_v9 = vpop.permute.xlu0 %3404 }
 0x6ce   : > { %v6971_v36 = vadd.f32 %v3405_v9, %v6790_v31 }
 0x6cf   : > { %v3435_v24 = vpop.permute.xlu1 %3434 }
 0x6d0   : > { %v6923_v15 = vadd.f32 %v3435_v24, %v6721_v1 }
 0x6d2   : > { %3510 = vrot.lane.b32.xlu1 %v6923_v15, %s4834_s22 }
 0x6d3   : > { %v3439_v39 = vpop.permute.xlu1 %3438 }
 0x6d4   : > { %v6931_v3 = vadd.f32 %v3439_v39, %v6737_v7  ;;  %v6948_v7 = vadd.f32 %v3445_v43, %v6760_v8  ;;  %v3409_v8 = vpop.permute.xlu0 %3408 }
 0x6d6   : > { %3512 = vrot.lane.b32.xlu1 %v6928_v59, %s4834_s22  ;;  %3514 = vrot.lane.b32.xlu0 %v6931_v3, %s4834_s22 }
 0x6d7   : > { %v3443_v1 = vpop.permute.xlu1 %3442 }
 0x6d8   : > { %v6941_v49 = vadd.f32 %v3443_v1, %v6750_v38  ;;  %v6958_v38 = vadd.f32 %v3449_v54, %v6768_v22  ;;  %v3413_v58 = vpop.permute.xlu0 %3412 }
 0x6d9   : > { %v6988_v31 = vadd.f32 %v3413_v58, %v6815_v2 }
 0x6da   : > { %3516 = vrot.lane.b32.xlu1 %v6938_v29, %s4834_s22  ;;  %3518 = vrot.lane.b32.xlu0 %v6941_v49, %s4834_s22 }
 0x6db   : > { %v3447_v35 = vpop.permute.xlu1 %3446 }
 0x6dc   : > { %v6951_v10 = vadd.f32 %v3447_v35, %v6763_v13  ;;  %v3419_v40 = vpop.permute.xlu0 %3418 }
 0x6dd   : > { %v7002_v2 = vadd.f32 %v3419_v40, %v6840_v18 }
 0x6de   : > { %3520 = vrot.lane.b32.xlu1 %v6948_v7, %s4834_s22  ;;  %3522 = vrot.lane.b32.xlu0 %v6951_v10, %s4834_s22 }
 0x6df   : > { %v3451_v37 = vpop.permute.xlu1 %3450 }
 0x6e0   : > { %v6961_v14 = vadd.f32 %v3451_v37, %v6771_v17  ;;  %v6978_v17 = vadd.f32 %v3409_v8, %v6801_v25 }
 0x6e2   : > { %3524 = vrot.lane.b32.xlu1 %v6958_v38, %s4834_s22  ;;  %3526 = vrot.lane.b32.xlu0 %v6961_v14, %s4834_s22 }
 0x6e3   : > { %v3407_v13 = vpop.permute.xlu1 %3406  ;;  %v3427_v25 = vpop.permute.xlu0 %3426 }
 0x6e4   : > { %v6981_v62 = vadd.f32 %v3407_v13, %v6794_v6  ;;  %v3479_v6 = vadd.f32 %v3453_v55, %v6779_v34  ;;  %v7012_v19 = vadd.f32 %v3427_v25, %v6866_v30 }
 0x6e6   : > { %3480 = vrot.lane.b32.xlu1 %v6971_v36, %s4834_s22  ;;  %3530 = vrot.lane.b32.xlu0 %v6968_v5, %s4834_s22 }
 0x6e7   : > { %v3411_v22 = vpop.permute.xlu1 %3410  ;;  %v3431_v34 = vpop.permute.xlu0 %3430 }
 0x6e8   : > { %v6991_v4 = vadd.f32 %v3411_v22, %v6807_v21 }
 0x6ea   : > { %3484 = vrot.lane.b32.xlu1 %v6978_v17, %s4834_s22  ;;  %3482 = vrot.lane.b32.xlu0 %v6981_v62, %s4834_s22 }
 0x6eb   : > { %v3417_v44 = vpop.permute.xlu1 %3416 }
 0x6ec   : > { %v7005_v21 = vadd.f32 %v3417_v44, %v6831_v48  ;;  %v3468_v48 = vadd.f32 %v3431_v34, %v6877_v12 }
 0x6ee   : > { %3488 = vrot.lane.b32.xlu1 %v6988_v31, %s4834_s22  ;;  %3486 = vrot.lane.b32.xlu0 %v6991_v4, %s4834_s22 }
 0x6ef   : > { %v3425_v28 = vpop.permute.xlu1 %3424 }
 0x6f0   : > { %v7015_v42 = vadd.f32 %v3425_v28, %v6890_v53 }
 0x6f2   : > { %3528 = vrot.lane.b32.xlu1 %v3479_v6, %s4834_s22  ;;  %3414 = vrot.lane.b32.xlu0 %v6854_v11, %s4833_s20  ;;  %v3423_v11 = vpop.permute.xlu0 %3422  ;;  %s421_s20 = scalar_lea.vmem %s7415_s12, %s4973_s21 }
 0x6f3   : > { %v3429_v16 = vpop.permute.xlu1 %3428  ;;  %v7029_v30 = vadd.f32 %v3423_v11, %v6881_v61 }
 0x6f4   : > { %v7023_v18 = vadd.f32 %v3429_v16, %v6869_v0 }
 0x6f6   : > { %3494 = vrot.lane.b32.xlu0 %v7002_v2, %s4834_s22  ;;  %3492 = vrot.lane.b32.xlu1 %v7005_v21, %s4834_s22 }
 0x6f7   : > { %v3421_v57 = vpop.permute.xlu1 %3420 }
 0x6f8   : > { %v7032_v53 = vadd.f32 %v3421_v57, %v6846_v27 }
 0x6fa   : > { %3502 = vrot.lane.b32.xlu0 %v7012_v19, %s4834_s22  ;;  %3500 = vrot.lane.b32.xlu1 %v7015_v42, %s4834_s22 }
 0x6fe   : > { %3506 = vrot.lane.b32.xlu0 %v3468_v48, %s4834_s22  ;;  %3504 = vrot.lane.b32.xlu1 %v7023_v18, %s4834_s22 }
 0x702   : > { %3498 = vrot.lane.b32.xlu0 %v7029_v30, %s4834_s22  ;;  %3496 = vrot.lane.b32.xlu1 %v7032_v53, %s4834_s22 }
 0x71e   : > { %v3509_v0 = vpop.permute.xlu0 %3508 }
 0x71f   : > { %v7038_v12 = vadd.f32 %v3509_v0, %v3468_v48 }
 0x721   : > { %3582 = vrot.lane.b32.xlu0 %v7038_v12, %s4835_s13 }
 0x744   : > { %v3511_v56 = vpop.permute.xlu1 %3510 }
 0x745   : > { %v7043_v61 = vadd.f32 %v3511_v56, %v6918_v63 }
 0x747   : > { %3584 = vrot.lane.b32.xlu1 %v7043_v61, %s4835_s13 }
 0x748   : > { %v3515_v27 = vpop.permute.xlu0 %3514  ;;  %v3513_v47 = vpop.permute.xlu1 %3512 }
 0x749   : > { %v7048_v51 = vadd.f32 %v3515_v27, %v6928_v59  ;;  %v7051_v46 = vadd.f32 %v3513_v47, %v6923_v15 }
 0x74b   : > { %3588 = vrot.lane.b32.xlu0 %v7048_v51, %s4835_s13  ;;  %3586 = vrot.lane.b32.xlu1 %v7051_v46, %s4835_s13 }
 0x74c   : > { %v3519_v41 = vpop.permute.xlu0 %3518  ;;  %v3517_v26 = vpop.permute.xlu1 %3516 }
 0x74d   : > { %v7058_v60 = vadd.f32 %v3519_v41, %v6938_v29  ;;  %v7061_v50 = vadd.f32 %v3517_v26, %v6931_v3 }
 0x74f   : > { %3592 = vrot.lane.b32.xlu0 %v7058_v60, %s4835_s13  ;;  %3590 = vrot.lane.b32.xlu1 %v7061_v50, %s4835_s13 }
 0x750   : > { %v3523_v52 = vpop.permute.xlu0 %3522  ;;  %v3521_v63 = vpop.permute.xlu1 %3520 }
 0x751   : > { %v7068_v20 = vadd.f32 %v3523_v52, %v6948_v7  ;;  %v7071_v45 = vadd.f32 %v3521_v63, %v6941_v49 }
 0x753   : > { %3596 = vrot.lane.b32.xlu0 %v7068_v20, %s4835_s13  ;;  %3594 = vrot.lane.b32.xlu1 %v7071_v45, %s4835_s13 }
 0x754   : > { %v3527_v43 = vpop.permute.xlu0 %3526  ;;  %v3525_v32 = vpop.permute.xlu1 %3524 }
 0x755   : > { %v7078_v24 = vadd.f32 %v3527_v43, %v6958_v38  ;;  %v7081_v15 = vadd.f32 %v3525_v32, %v6951_v10 }
 0x757   : > { %3600 = vrot.lane.b32.xlu0 %v7078_v24, %s4835_s13  ;;  %3598 = vrot.lane.b32.xlu1 %v7081_v15, %s4835_s13 }
 0x758   : > { %v3531_v54 = vpop.permute.xlu0 %3530  ;;  %v3481_v39 = vpop.permute.xlu1 %3480 }
 0x759   : > { %v7087_v59 = vadd.f32 %v3531_v54, %v3479_v6  ;;  %v7090_v3 = vadd.f32 %v3481_v39, %v6968_v5 }
 0x75b   : > { %3604 = vrot.lane.b32.xlu0 %v7087_v59, %s4835_s13  ;;  %3606 = vrot.lane.b32.xlu1 %v7090_v3, %s4835_s13 }
 0x75c   : > { %v3483_v55 = vpop.permute.xlu0 %3482  ;;  %v3485_v1 = vpop.permute.xlu1 %3484 }
 0x75d   : > { %v7097_v29 = vadd.f32 %v3483_v55, %v6971_v36  ;;  %v7100_v49 = vadd.f32 %v3485_v1, %v6981_v62 }
 0x75f   : > { %3608 = vrot.lane.b32.xlu0 %v7097_v29, %s4835_s13  ;;  %3558 = vrot.lane.b32.xlu1 %v7100_v49, %s4835_s13 }
 0x760   : > { %v3487_v35 = vpop.permute.xlu0 %3486  ;;  %v3489_v7 = vpop.permute.xlu1 %3488 }
 0x761   : > { %v7107_v10 = vadd.f32 %v3487_v35, %v6978_v17  ;;  %v7110_v9 = vadd.f32 %v3489_v7, %v6991_v4 }
 0x763   : > { %3560 = vrot.lane.b32.xlu0 %v7107_v10, %s4835_s13  ;;  %3562 = vrot.lane.b32.xlu1 %v7110_v9, %s4835_s13 }
 0x764   : > { %v3415_v37 = vpop.permute.xlu0 %3414  ;;  %v3529_v38 = vpop.permute.xlu1 %3528 }
 0x765   : > { %v3460_v8 = vadd.f32 %v3415_v37, %v6823_v23  ;;  %v3556_v40 = vadd.f32 %v3529_v38, %v6961_v14 }
 0x767   : > { %3490 = vrot.lane.b32.xlu0 %v3460_v8, %s4834_s22  ;;  %s3861_s22 = sld [smem:[#allocation2]] }
 0x768   : > { %v3495_v13 = vpop.permute.xlu0 %3494  ;;  %v3493_v5 = vpop.permute.xlu1 %3492 }
 0x769   : > { %v7119_v36 = vadd.f32 %v3495_v13, %v7005_v21  ;;  %v7121_v22 = vadd.f32 %v3493_v5, %v3460_v8 }
 0x76b   : > { %3568 = vrot.lane.b32.xlu0 %v7119_v36, %s4835_s13  ;;  %3566 = vrot.lane.b32.xlu1 %v7121_v22, %s4835_s13 }
 0x76c   : > { %v3503_v17 = vpop.permute.xlu0 %3502  ;;  %v3501_v62 = vpop.permute.xlu1 %3500 }
 0x76d   : > { %v7128_v58 = vadd.f32 %v3503_v17, %v7015_v42  ;;  %v7131_v23 = vadd.f32 %v3501_v62, %v7029_v30 }
 0x76f   : > { %3576 = vrot.lane.b32.xlu0 %v7128_v58, %s4835_s13  ;;  %3574 = vrot.lane.b32.xlu1 %v7131_v23, %s4835_s13 }
 0x770   : > { %v3507_v44 = vpop.permute.xlu0 %3506  ;;  %v3505_v4 = vpop.permute.xlu1 %3504 }
 0x771   : > { %v3544_v6 = vadd.f32 %v3505_v4, %v7012_v19  ;;  %v3545_v28 = vadd.f32 %v3507_v44, %v7023_v18 }
 0x773   : > { %3602 = vrot.lane.b32.xlu1 %v3556_v40, %s4835_s13  ;;  %3578 = vrot.lane.b32.xlu0 %v3544_v6, %s4835_s13 }
 0x774   : > { %v3497_v25 = vpop.permute.xlu1 %3496  ;;  %v3499_v34 = vpop.permute.xlu0 %3498 }
 0x775   : > { %v7143_v21 = vadd.f32 %v3497_v25, %v7002_v2  ;;  %v7149_v14 = vadd.f32 %v3499_v34, %v7032_v53 }
 0x777   : > { %3580 = vrot.lane.b32.xlu0 %v3545_v28, %s4835_s13  ;;  %3570 = vrot.lane.b32.xlu1 %v7143_v21, %s4835_s13 }
 0x77b   : > { %3572 = vrot.lane.b32.xlu1 %v7149_v14, %s4835_s13 }
 0x793   : > { %v3583_v16 = vpop.permute.xlu0 %3582 }
 0x794   : > { %v7153_v19 = vadd.f32 %v3583_v16, %v3544_v6 }
 0x796   : > { %3652 = vrot.lane.b32.xlu1 %v7153_v19, %s4836_s23 }
 0x7b9   : > { %v3585_v2 = vpop.permute.xlu1 %3584 }
 0x7ba   : > { %v7157_v42 = vadd.f32 %v3585_v2, %v3545_v28 }
 0x7bc   : > { %3654 = vrot.lane.b32.xlu0 %v7157_v42, %s4836_s23 }
 0x7bd   : > { %v3589_v48 = vpop.permute.xlu0 %3588  ;;  %v3587_v18 = vpop.permute.xlu1 %3586 }
 0x7be   : > { %v7162_v11 = vadd.f32 %v3589_v48, %v7043_v61  ;;  %v7165_v57 = vadd.f32 %v3587_v18, %v7038_v12 }
 0x7c0   : > { %3658 = vrot.lane.b32.xlu0 %v7162_v11, %s4836_s23  ;;  %3656 = vrot.lane.b32.xlu1 %v7165_v57, %s4836_s23 }
 0x7c1   : > { %v3593_v30 = vpop.permute.xlu0 %3592  ;;  %v3591_v53 = vpop.permute.xlu1 %3590 }
 0x7c2   : > { %v7172_v0 = vadd.f32 %v3593_v30, %v7048_v51  ;;  %v7175_v56 = vadd.f32 %v3591_v53, %v7051_v46 }
 0x7c4   : > { %3662 = vrot.lane.b32.xlu0 %v7172_v0, %s4836_s23  ;;  %3660 = vrot.lane.b32.xlu1 %v7175_v56, %s4836_s23 }
 0x7c5   : > { %v3597_v12 = vpop.permute.xlu0 %3596  ;;  %v3595_v61 = vpop.permute.xlu1 %3594 }
 0x7c6   : > { %v7182_v27 = vadd.f32 %v3597_v12, %v7058_v60  ;;  %v7185_v47 = vadd.f32 %v3595_v61, %v7061_v50 }
 0x7c8   : > { %3666 = vrot.lane.b32.xlu0 %v7182_v27, %s4836_s23  ;;  %3664 = vrot.lane.b32.xlu1 %v7185_v47, %s4836_s23 }
 0x7c9   : > { %v3601_v51 = vpop.permute.xlu0 %3600  ;;  %v3599_v46 = vpop.permute.xlu1 %3598 }
 0x7ca   : > { %v7192_v41 = vadd.f32 %v3601_v51, %v7068_v20  ;;  %v7195_v26 = vadd.f32 %v3599_v46, %v7071_v45 }
 0x7cc   : > { %3670 = vrot.lane.b32.xlu0 %v7192_v41, %s4836_s23  ;;  %3668 = vrot.lane.b32.xlu1 %v7195_v26, %s4836_s23 }
 0x7cd   : > { %v3605_v60 = vpop.permute.xlu0 %3604  ;;  %v3607_v50 = vpop.permute.xlu1 %3606 }
 0x7ce   : > { %v7202_v52 = vadd.f32 %v3605_v60, %v7078_v24  ;;  %v7204_v63 = vadd.f32 %v3607_v50, %v3556_v40 }
 0x7d0   : > { %3674 = vrot.lane.b32.xlu0 %v7202_v52, %s4836_s23  ;;  %3676 = vrot.lane.b32.xlu1 %v7204_v63, %s4836_s23 }
 0x7d1   : > { %v3609_v20 = vpop.permute.xlu0 %3608  ;;  %v3559_v45 = vpop.permute.xlu1 %3558 }
 0x7d2   : > { %v3635_v43 = vadd.f32 %v3609_v20, %v7087_v59  ;;  %v7212_v32 = vadd.f32 %v3559_v45, %v7090_v3  ;;  %v2831_v45 = vrot.slane %v6301_v33, 4 }
 0x7d4   : > { %3678 = vrot.lane.b32.xlu0 %v3635_v43, %s4836_s23  ;;  %3680 = vrot.lane.b32.xlu1 %v7212_v32, %s4836_s23 }
 0x7d5   : > { %v3561_v24 = vpop.permute.xlu0 %3560  ;;  %v3563_v54 = vpop.permute.xlu1 %3562 }
 0x7d6   : > { %v7218_v39 = vadd.f32 %v3561_v24, %v7097_v29  ;;  %v7221_v55 = vadd.f32 %v3563_v54, %v7100_v49 }
 0x7d8   : > { %3682 = vrot.lane.b32.xlu0 %v7218_v39, %s4836_s23  ;;  %3684 = vrot.lane.b32.xlu1 %v7221_v55, %s4836_s23 }
 0x7d9   : > { %v3491_v59 = vpop.permute.xlu0 %3490 }
 0x7da   : > { %v3537_v3 = vadd.f32 %v3491_v59, %v6988_v31 }
 0x7dd   : > { %v3569_v1 = vpop.permute.xlu0 %3568  ;;  %v3567_v35 = vpop.permute.xlu1 %3566 }
 0x7de   : > { %v7228_v7 = vadd.f32 %v3569_v1, %v3537_v3  ;;  %v7231_v37 = vadd.f32 %v3567_v35, %v7110_v9 }
 0x7e0   : > { %3638 = vrot.lane.b32.xlu1 %v7228_v7, %s4836_s23  ;;  %3636 = vrot.lane.b32.xlu0 %v7231_v37, %s4836_s23 }
 0x7e1   : > { %v3575_v29 = vpop.permute.xlu1 %3574  ;;  %v3577_v17 = vpop.permute.xlu0 %3576 }
 0x7e2   : > { %v3618_v5 = vadd.f32 %v3575_v29, %v7143_v21 }
 0x7e4   : > { %3564 = vrot.lane.b32.xlu0 %v3537_v3, %s4835_s13  ;;  %s407_s13 = sand.u32 1, %s4819_s26  }
 0x7e5   : > { %v3603_v49 = vpop.permute.xlu1 %3602  ;;  %v3579_v62 = vpop.permute.xlu0 %3578  ;;  %s3866_s21 = scalar_lea.sflag [#allocation5], %s407_s13 }
 0x7e6   : > { %v3632_v9 = vadd.f32 %v3603_v49, %v7081_v15 }
 0x7e9   : > { %v3571_v38 = vpop.permute.xlu1 %3570  ;;  %v3581_v4 = vpop.permute.xlu0 %3580 }
 0x7ea   : > { %v7239_v31 = vadd.f32 %v3571_v38, %v7121_v22  ;;  %v3619_v22 = vadd.f32 %v3577_v17, %v7149_v14  ;;  %v3621_v40 = vadd.f32 %v3581_v4, %v7128_v58 }
 0x7ec   : > { %3640 = vrot.lane.b32.xlu1 %v7239_v31, %s4836_s23 }
 0x7ed   : > { %v3573_v8 = vpop.permute.xlu1 %3572 }
 0x7ee   : > { %v7245_v13 = vadd.f32 %v3573_v8, %v7119_v36  ;;  %v3620_v36 = vadd.f32 %v3579_v62, %v7131_v23 }
 0x7f0   : > { %3672 = vrot.lane.b32.xlu1 %v3632_v9, %s4836_s23  ;;  %3642 = vrot.lane.b32.xlu0 %v7245_v13, %s4836_s23 }
 0x7f4   : > { %3644 = vrot.lane.b32.xlu0 %v3618_v5, %s4836_s23 }
 0x7f8   : > { %3646 = vrot.lane.b32.xlu0 %v3619_v22, %s4836_s23 }
 0x808   : > { %v3653_v44 = vpop.permute.xlu1 %3652 }
 0x809   : > { %v7254_v15 = vadd.f32 %v3653_v44, %v3618_v5 }
 0x80b   : > { %3711 = vrot.lane.b32.xlu0 %v7254_v15, %s4837_s24 }
 0x80f   : > { %3648 = vrot.lane.b32.xlu0 %v3620_v36, %s4836_s23 }
 0x813   : > { %3650 = vrot.lane.b32.xlu0 %v3621_v40, %s4836_s23  ;;  %s4093_s23 = sshll.u32 %s4931_s9, 4  ;;  %s4838_s9 = smov [#allocation4]  }
 0x814   : > { %s4769_s19 = sshll.u32 %s4838_s9, 4  ;;  %s4770_s19 = int_to_ptr.vmem [resolvable:$false] %s4769_s19 }
 0x82e   : > { %v3655_v6 = vpop.permute.xlu0 %3654 }
 0x82f   : > { %v7262_v25 = vadd.f32 %v3655_v6, %v3619_v22 }
 0x831   : > { %3713 = vrot.lane.b32.xlu1 %v7262_v25, %s4837_s24 }
 0x832   : > { %v3659_v28 = vpop.permute.xlu0 %3658  ;;  %v3657_v21 = vpop.permute.xlu1 %3656 }
 0x833   : > { %v7266_v34 = vadd.f32 %v3657_v21, %v3620_v36  ;;  %v7270_v16 = vadd.f32 %v3659_v28, %v3621_v40 }
 0x835   : > { %3715 = vrot.lane.b32.xlu1 %v7266_v34, %s4837_s24 }
 0x836   : > { %v3663_v23 = vpop.permute.xlu0 %3662  ;;  %v3661_v14 = vpop.permute.xlu1 %3660 }
 0x837   : > { %v7275_v48 = vadd.f32 %v3661_v14, %v7153_v19  ;;  %v7285_v12 = vadd.f32 %v3663_v23, %v7157_v42 }
 0x839   : > { %3717 = vrot.lane.b32.xlu1 %v7270_v16, %s4837_s24 }
 0x83a   : > { %v3667_v58 = vpop.permute.xlu0 %3666  ;;  %v3665_v2 = vpop.permute.xlu1 %3664 }
 0x83b   : > { %v7278_v18 = vadd.f32 %v3667_v58, %v7162_v11  ;;  %v7292_v11 = vadd.f32 %v3665_v2, %v7165_v57 }
 0x83d   : > { %3725 = vrot.lane.b32.xlu0 %v7278_v18, %s4837_s24  ;;  %3719 = vrot.lane.b32.xlu1 %v7275_v48, %s4837_s24 }
 0x83e   : > { %v3671_v30 = vpop.permute.xlu0 %3670  ;;  %v3669_v53 = vpop.permute.xlu1 %3668 }
 0x83f   : > { %v3703_v61 = vadd.f32 %v3671_v30, %v7172_v0  ;;  %v7299_v0 = vadd.f32 %v3669_v53, %v7175_v56 }
 0x841   : > { %3729 = vrot.lane.b32.xlu0 %v3703_v61, %s4837_s24  ;;  %3721 = vrot.lane.b32.xlu1 %v7285_v12, %s4837_s24 }
 0x842   : > { %v3675_v19 = vpop.permute.xlu0 %3674  ;;  %v3677_v46 = vpop.permute.xlu1 %3676 }
 0x843   : > { %v3705_v51 = vadd.f32 %v3675_v19, %v7182_v27  ;;  %v3706_v27 = vadd.f32 %v3677_v46, %v7195_v26 }
 0x845   : > { %3733 = vrot.lane.b32.xlu0 %v3705_v51, %s4837_s24  ;;  %3723 = vrot.lane.b32.xlu1 %v7292_v11, %s4837_s24 }
 0x846   : > { %v3679_v42 = vpop.permute.xlu0 %3678  ;;  %v3681_v57 = vpop.permute.xlu1 %3680 }
 0x847   : > { %v3707_v60 = vadd.f32 %v3679_v42, %v7192_v41  ;;  %v3708_v56 = vadd.f32 %v3681_v57, %v3632_v9  ;;  %v2832_v41 = vadd.f32 %v2831_v45, %v6301_v33  ;;  %v2839_v33 = vld [vmem:[%s7411_s8] sm:$0x1] }
 0x849   : > { %3737 = vrot.lane.b32.xlu0 %v3707_v60, %s4837_s24  ;;  %3727 = vrot.lane.b32.xlu1 %v7299_v0, %s4837_s24  ;;  %v2833_v54 = vrot.slane %v2832_v41, 2 }
 0x84a   : > { %v3683_v50 = vpop.permute.xlu0 %3682  ;;  %v3685_v43 = vpop.permute.xlu1 %3684 }
 0x84b   : > { %v3709_v20 = vadd.f32 %v3683_v50, %v7202_v52  ;;  %v3710_v24 = vadd.f32 %v3685_v43, %v7204_v63  ;;  %v2834_v26 = vadd.f32 %v2833_v54, %v2832_v41 }
 0x84d   : > { %3741 = vrot.lane.b32.xlu0 %v3709_v20, %s4837_s24  ;;  %3735 = vrot.lane.b32.xlu1 %v3706_v27, %s4837_s24  ;;  %v2835_v52 = vrot.slane %v2834_v26, 1 }
 0x84f   : > { %v2836_v1 = vadd.f32 %v2835_v52, %v2834_v26 }
 0x851   : > { %3739 = vrot.lane.b32.xlu1 %v3708_v56, %s4837_s24  ;;  %v2838_v49 = vmul.f32 0.004464286, %v2836_v1 }
 0x852   : > { %v3639_v59 = vpop.permute.xlu1 %3638  ;;  %v3637_v8 = vpop.permute.xlu0 %3636 }
 0x853   : > { %v2840_v38 = vmul.f32 %v2839_v33, %v2838_v49  ;;  %v3686_v44 = vadd.f32 %v3637_v8, %v7212_v32 }
 0x855   : > { %3743 = vrot.lane.b32.xlu1 %v3710_v24, %s4837_s24  ;;  %v2842_v63 = vsel %vm2841_vm11, %v2840_v38, 0.0 }
 0x856   : > { %v3565_v9 = vpop.permute.xlu0 %3564 }
 0x857   : > { %v3613_v14 = vadd.f32 %v3565_v9, %v7107_v10 }
 0x85e   : > { %v3641_v3 = vpop.permute.xlu1 %3640 }
 0x85f   : > { %v3688_v6 = vadd.f32 %v3641_v3, %v7221_v55 }
 0x862   : > { %v3673_v35 = vpop.permute.xlu1 %3672  ;;  %v3643_v5 = vpop.permute.xlu0 %3642 }
 0x863   : > { %v3704_v29 = vadd.f32 %v3673_v35, %v7185_v47  ;;  %v3687_v47 = vadd.f32 %v3639_v59, %v7218_v39  ;;  %v3689_v30 = vadd.f32 %v3643_v5, %v3613_v14 }
 0x865   : > { %3731 = vrot.lane.b32.xlu1 %v3704_v29, %s4837_s24  ;;  %s408_s24 = scalar_lea.vmem [#allocation4], %s407_s13 }
 0x866   : > { %v3645_v17 = vpop.permute.xlu0 %3644  ;;  %s3881_s10 = sshll.u32 %s408_s24, 4  ;;  %s7363_s10 = int_to_ptr.vmem [resolvable:$true] %s3881_s10 }
 0x867   : > { %v3690_v51 = vadd.f32 %v3645_v17, %v7231_v37  ;;  %s4765_s18 = scalar_lea.vmem %s7363_s10, 16  ;;  %p4772_p0 = scmp.lt.s32.totalorder %s7363_s10, %s4770_s19 }
 0x868   : > { %p4766_p11 = scmp.ne.s32.totalorder %s7363_s10, %s4765_s18 }
 0x86a   : > { %v3647_v22 = vpop.permute.xlu0 %3646  ;;  %p4767_p12 = pnand %p4766_p11, %p4948_p5 }
 0x86b   : > { %v3691_v10 = vadd.f32 %v3647_v22, %v7228_v7 }
 0x86c   : > { %2843 = vadd.xlane.f32.xlu0 %v2842_v63  ;;  %p4768_p13 = pneg %p4767_p12 }
 0x87d   : > { %v3712_v62 = vpop.permute.xlu0 %3711 }
 0x87e   : > { %v3745_v36 = vadd.f32 %v3712_v62, %v3686_v44 }
 0x880   : > { %v3780_v28 = vrot.slane %v3745_v36, 3 }
 0x881   : > { %v3649_v19 = vpop.permute.xlu0 %3648 }
 0x882   : > { %v3692_v56 = vadd.f32 %v3649_v19, %v7239_v31 }
 0x885   : > { %v3651_v50 = vpop.permute.xlu0 %3650 }
 0x886   : > { %v3693_v24 = vadd.f32 %v3651_v50, %v7245_v13 }
 0x8a3   : > { %v3714_v4 = vpop.permute.xlu1 %3713 }
 0x8a4   : > { %v3746_v40 = vadd.f32 %v3714_v4, %v3687_v47 }
 0x8a6   : > { %v3781_v21 = vrot.slane %v3746_v40, 3 }
 0x8a7   : > { %v3716_v23 = vpop.permute.xlu1 %3715 }
 0x8a8   : > { %v3747_v58 = vadd.f32 %v3716_v23, %v3688_v6  ;;  %v3782_v2 = vsel %vm1768_vm6, %v3780_v28, %v3781_v21 }
 0x8a9   : > { %3829 = vxpose.xlu1.b32.start [1/16] (narrow) %v3782_v2, 8 }
 0x8aa   : > { %v3783_v53 = vrot.slane %v3747_v58, 3 }
 0x8ab   : > { %v3718_v61 = vpop.permute.xlu1 %3717 }
 0x8ac   : > { %v3748_v32 = vadd.f32 %v3718_v61, %v3689_v30  ;;  %v3784_v39 = vsel %vm1768_vm6, %v3781_v21, %v3783_v53 }
 0x8ad   : > { %3830 = vxpose.xlu1.b32.cont [2/16] (narrow) %v3784_v39, 8  ;;  %v3862_v39 = vstv %s3861_s22 }
 0x8ae   : > { %v3785_v55 = vrot.slane %v3748_v32, 3  ;;  %v2846_v32 = vstv %s2845_s17  ;;  %s7361_s17 = scalar_lea.hbm %s7414_s11, %s4093_s23 }
 0x8af   : > { %v3720_v46 = vpop.permute.xlu1 %3719  ;;  %v3726_v43 = vpop.permute.xlu0 %3725 }
 0x8b0   : > { %v3749_v42 = vadd.f32 %v3720_v46, %v3690_v51  ;;  %v3786_v60 = vsel %vm1768_vm6, %v3783_v53, %v3785_v55  ;;  %v3752_v59 = vadd.f32 %v3726_v43, %v3693_v24 }
 0x8b1   : > { %3831 = vxpose.xlu1.b32.cont [3/16] (narrow) %v3786_v60, 8 }
 0x8b2   : > { %v3787_v57 = vrot.slane %v3749_v42, 3  ;;  %v3793_v35 = vrot.slane %v3752_v59, 3 }
 0x8b3   : > { %v3722_v27 = vpop.permute.xlu1 %3721  ;;  %v3730_v29 = vpop.permute.xlu0 %3729 }
 0x8b4   : > { %v3750_v20 = vadd.f32 %v3722_v27, %v3691_v10  ;;  %v3788_v45 = vsel %vm1768_vm6, %v3785_v55, %v3787_v57  ;;  %v3754_v13 = vadd.f32 %v3730_v29, %v7262_v25 }
 0x8b5   : > { %3832 = vxpose.xlu1.b32.cont [4/16] (narrow) %v3788_v45, 8 }
 0x8b6   : > { %v3789_v41 = vrot.slane %v3750_v20, 3  ;;  %v3797_v38 = vrot.slane %v3754_v13, 3 }
 0x8b7   : > { %v3724_v37 = vpop.permute.xlu1 %3723  ;;  %v3734_v5 = vpop.permute.xlu0 %3733 }
 0x8b8   : > { %v3751_v54 = vadd.f32 %v3724_v37, %v3692_v56  ;;  %v3790_v26 = vsel %vm1768_vm6, %v3787_v57, %v3789_v41  ;;  %v3756_v62 = vadd.f32 %v3734_v5, %v7270_v16 }
 0x8b9   : > { %3833 = vxpose.xlu1.b32.cont [5/16] (narrow) %v3790_v26, 8 }
 0x8ba   : > { %v3791_v7 = vrot.slane %v3751_v54, 3  ;;  %v3801_v36 = vrot.slane %v3756_v62, 3 }
 0x8bb   : > { %v3728_v52 = vpop.permute.xlu1 %3727  ;;  %v3738_v4 = vpop.permute.xlu0 %3737 }
 0x8bc   : > { %v3753_v3 = vadd.f32 %v3728_v52, %v7254_v15  ;;  %v3792_v1 = vsel %vm1768_vm6, %v3789_v41, %v3791_v7  ;;  %v3794_v49 = vsel %vm1768_vm6, %v3791_v7, %v3793_v35  ;;  %v3758_v28 = vadd.f32 %v3738_v4, %v7285_v12 }
 0x8bd   : > { %3834 = vxpose.xlu1.b32.cont [6/16] (narrow) %v3792_v1, 8 }
 0x8be   : > { %v3795_v31 = vrot.slane %v3753_v3, 3  ;;  %v3805_v16 = vrot.slane %v3758_v28, 3 }
 0x8bf   : > { %v3736_v63 = vpop.permute.xlu1 %3735  ;;  %v3742_v23 = vpop.permute.xlu0 %3741 }
 0x8c0   : > { %v3796_v33 = vsel %vm1768_vm6, %v3793_v35, %v3795_v31  ;;  %v3798_v8 = vsel %vm1768_vm6, %v3795_v31, %v3797_v38  ;;  %v3757_v47 = vadd.f32 %v3736_v63, %v7275_v48  ;;  %v3760_v58 = vadd.f32 %v3742_v23, %v7278_v18 }
 0x8c1   : > { %3835 = vxpose.xlu1.b32.cont [7/16] (narrow) %v3794_v49, 8 }
 0x8c2   : > { %v3803_v40 = vrot.slane %v3757_v47, 3  ;;  %v3809_v12 = vrot.slane %v3760_v58, 3 }
 0x8c3   : > { %v3740_v15 = vpop.permute.xlu1 %3739 }
 0x8c4   : > { %v3759_v21 = vadd.f32 %v3740_v15, %v7292_v11  ;;  %v3806_v14 = vsel %vm1768_vm6, %v3803_v40, %v3805_v16 }
 0x8c5   : > { %3836 = vxpose.xlu1.b32.cont [8/16] (narrow) %v3796_v33, 8 }
 0x8c6   : > { %v3807_v48 = vrot.slane %v3759_v21, 3 }
 0x8c7   : > { %v3744_v9 = vpop.permute.xlu1 %3743 }
 0x8c8   : > { %v3761_v2 = vadd.f32 %v3744_v9, %v7299_v0  ;;  %v3808_v30 = vsel %vm1768_vm6, %v3805_v16, %v3807_v48  ;;  %v3810_v53 = vsel %vm1768_vm6, %v3807_v48, %v3809_v12 }
 0x8c9   : > { %3837 = vxpose.xlu1.b32.cont [9/16] (narrow) %v3798_v8, 8 }
 0x8ca   : > { %v3811_v11 = vrot.slane %v3761_v2, 3 }
 0x8cc   : > { %v3812_v61 = vsel %vm1768_vm6, %v3809_v12, %v3811_v11 }
 0x8d7   : > { %v3732_v17 = vpop.permute.xlu1 %3731 }
 0x8d8   : > { %v3755_v22 = vadd.f32 %v3732_v17, %v7266_v34  ;;  %v3804_v34 = vsel %vm1768_vm6, %v3801_v36, %v3803_v40 }
 0x8da   : > { %v3799_v44 = vrot.slane %v3755_v22, 3 }
 0x8dc   : > { %v3800_v25 = vsel %vm1768_vm6, %v3797_v38, %v3799_v44  ;;  %v3802_v6 = vsel %vm1768_vm6, %v3799_v44, %v3801_v36 }
 0x8dd   : > { %3838 = vxpose.xlu1.b32.cont [10/16] (narrow) %v3800_v25, 8 }
 0x8e1   : > { %3839 = vxpose.xlu1.b32.cont [11/16] (narrow) %v3802_v6, 8 }
 0x8e5   : > { %3840 = vxpose.xlu1.b32.cont [12/16] (narrow) %v3804_v34, 8 }
 0x8e9   : > { %3841 = vxpose.xlu1.b32.cont [13/16] (narrow) %v3806_v14, 8 }
 0x8ed   : > { %3842 = vxpose.xlu1.b32.cont [14/16] (narrow) %v3808_v30, 8 }
 0x8f1   : > { %3843 = vxpose.xlu1.b32.cont [15/16] (narrow) %v3810_v53, 8 }
 0x8f5   : > { %3844 = vxpose.xlu1.b32.end [16/16] (narrow) %v3812_v61, 8 }
 0x8f9   : > { %v2844_v18 = vpop.xlane.xlu0 %2843 }
 0x8fa   : > { %v2847_v0 = vadd.f32 %v2846_v32, %v2844_v18 }
 0x8fc   : > { %2849 = vst.msk [vmem:[%s421_s20] sm:$0x1] %vm2848_vm12, %v2847_v0  ;;  %s4771_s20 = scalar_lea.vmem %s4770_s19, 32 }
 0x8fd   : > { %p4773_p1 = scmp.lt.s32.totalorder %s4771_s20, %s4765_s18 }
 0x8ff   : > { %p4774_p2 = por %p4773_p1, %p4772_p0 }
 0x901   : > { %p4775_p3 = pnand %p4774_p2, %p4768_p13 }
 0x939   : > { %v3845_v19 = vpop.trf.xlu1 }
 0x93a   : > { %v3863_v51 = vadd.f32 %v3862_v39, %v3845_v19 }
 0x93c   : > { %3864 = vst [vmem:[%s408_s24] sm:$0x1] %v3863_v51 }
 0x93d   : > { %4778 = shalt.err (!%p4775_p3)
}
 0x93e   : > { %s4779_s0 = scalar_lea.hbm %s7361_s17, 16  ;;  %s4783_s23 = scalar_lea.hbm %s7414_s11, 32 }
 0x93f   : > { %p4780_p4 = scmp.ne.s32.totalorder %s7361_s17, %s4779_s0  ;;  %p4784_p9 = scmp.lt.u32.totalorder %s7361_s17, %s7414_s11 }
 0x940   : > { %p4785_p10 = scmp.lt.u32.totalorder %s4783_s23, %s4779_s0  ;;  %p4787_p12 = scmp.lt.u32.totalorder %s4779_s0, %s7361_s17 }
 0x941   : > { %p4781_p7 = pnand %p4780_p4, %p4948_p5 }
 0x942   : > { %p4786_p11 = por %p4785_p10, %p4784_p9 }
 0x943   : > { %p4782_p8 = pneg %p4781_p7 }
 0x944   : > { %p4788_p13 = por %p4787_p12, %p4786_p11 }
 0x946   : > { %p4789_p0 = pnand %p4788_p13, %p4782_p8 }
 0x948   : > { %4792 = shalt.err (!%p4789_p0)
}
 0x949   : > { %4694 = dma.vmem_to_hbm [thread:$0]  (%p4948_p5), %s7363_s10, 16, %s7361_s17, %s3866_s21  }
 0x94a PF: > { %p4700_p1 = scmp.ge.s32.totalorder %s4827_s28, 2  ;;  %s3896_s18 = sand.u32 1, %s4815_s25  }
 0x94b   : > { %s3897_s9 = scalar_lea.sflag [#allocation5], %s3896_s18 }
 0x94c   : > { %p4697_p2 = pnand %p4700_p1, %p4952_p6 }
 0x94e   : > { %4810 = dma.done.wait (!%p4697_p2), %s3897_s9, 16  }
 0x94f   : > { %4812 = vsyncadd (!%p4697_p2), %s3897_s9, 4294967280  ;;  %p25_p3 = scmp.ge.s32.totalorder %s4935_s29, 4   ;;  %s7611_s25 = smov %s4819_s26 }
 0x950   : > { %s7612_s26 = smov %s4823_s27  ;;  %s7613_s27 = smov %s4946_s14 }
 0x951   : > { %s7614_s28 = smov %s4935_s29  ;;  %27 = sbr.rel (!%p25_p3) target bundleno = 7 (0x7), region = 115 }
 0x958   :  { %3907 = vsyncpa [#allocation5], 1 }
 0x959   :  { %3909 = vsyncpa [#allocation5 + $0x1], 1 }

</bundles_post_ra>
